<compile_context>
chip_gen: v6e
topology: v6e:2x2x1
jax: 0.10.0
libtpu: 0.0.40
codegen_flags: <defaults>
</compile_context>

<pallas_src>
import numpy as np

import jax
import jax.numpy as jnp
from jax import lax
from jax.experimental import pallas as pl
from jax.experimental.pallas import tpu as pltpu


def _round_up(x, m):
    return (x + m - 1) // m * m


# ---------------------------------------------------------------------------
# Fused kernel: all Conv3d(+PReLU) layers for one batch element.
# ---------------------------------------------------------------------------
def _make_sigmanet_kernel(layer_specs, D, H, W, out_channels):
    """layer_specs: static tuple of (cin_pad, cout_pad, n_taps_pad, pair)."""
    n_layers = len(layer_specs)
    DHW = D * H * W
    # Tap order t = kd*9 + kh*3 + kw; flat-index offset of each tap.
    kdhw = tuple((kd, kh, kw)
                 for kd in range(3) for kh in range(3) for kw in range(3))
    offsets = tuple((kd - 1) * H * W + (kh - 1) * W + (kw - 1)
                    for (kd, kh, kw) in kdhw)

    def kernel(*refs):
        # refs = [x, dhw_idx, w_0..w_{L-1}, b_pack, alphas] + [out] + [col]
        x_ref = refs[0]
        idx_ref = refs[1]                           # (3, DHW) int32 d/h/w rows
        w_refs = refs[2:2 + n_layers]               # (cout_pad, K_l) bf16
        b_ref = refs[2 + n_layers]                  # (cmax_pad, n_layers) f32
        alpha_ref = refs[3 + n_layers]              # SMEM (n_layers - 1,) f32
        o_ref = refs[4 + n_layers]                  # (1, out_channels, DHW)
        col_ref = refs[5 + n_layers]                # VMEM scratch, bf16

        # ---- 6 boundary predicates, built once from the voxel coordinates ----
        d_idx = idx_ref[0:1, :]
        h_idx = idx_ref[1:2, :]
        w_idx = idx_ref[2:3, :]
        lo_hi = {
            (0, 0): d_idx >= 1, (0, 2): d_idx < D - 1,
            (1, 0): h_idx >= 1, (1, 2): h_idx < H - 1,
            (2, 0): w_idx >= 1, (2, 2): w_idx < W - 1,
        }

        def tap_mask(kd, kh, kw):                   # None == center (no mask)
            m = None
            for ax, k in enumerate((kd, kh, kw)):
                if k == 1:
                    continue
                c = lo_hi[(ax, k)]
                m = c if m is None else (m & c)
            return m

        def tap_piece(act, t):
            """Shifted + boundary-masked activations for tap t (f32)."""
            off = offsets[t]
            kd, kh, kw = kdhw[t]
            if off == 0:
                shifted = act
            else:
                shifted = pltpu.roll(act, shift=(-off) % DHW, axis=1)
            m = tap_mask(kd, kh, kw)
            return shifted if m is None else jnp.where(m, shifted, 0.0)

        act = x_ref[0]                              # (cin_pad0, DHW) f32

        for l, (cin_pad, cout_pad, n_taps_pad, pair) in enumerate(layer_specs):
            # ---- im2col into the bf16 scratch; full (16,128)-tile stores ----
            if pair:
                for g in range(n_taps_pad // 2):
                    t0, t1 = 2 * g, 2 * g + 1
                    p0 = tap_piece(act, t0)
                    p1 = tap_piece(act, t1) if t1 < 27 else jnp.zeros_like(p0)
                    blk = jnp.concatenate([p0, p1], axis=0)        # (2*cin_pad, DHW) f32
                    col_ref[g * 2 * cin_pad:(g + 1) * 2 * cin_pad, :] = (
                        blk.astype(jnp.bfloat16))
            else:   # cin_pad is a multiple of 16 -> per-tap stores are aligned
                for t in range(n_taps_pad):
                    col_ref[t * cin_pad:(t + 1) * cin_pad, :] = (
                        tap_piece(act, t).astype(jnp.bfloat16))

            k_l = n_taps_pad * cin_pad
            col = col_ref[0:k_l, :]                                # bf16

            # ---- one fused-K MXU matmul per layer ---------------------------
            acc = jnp.dot(w_refs[l][...], col,
                          preferred_element_type=jnp.float32)      # (cout_pad, DHW)
            acc = acc + b_ref[0:cout_pad, l:l + 1]                  # bias (f32)
            if l < n_layers - 1:                                    # PReLU (static)
                alpha = alpha_ref[l]
                acc = jnp.where(acc >= 0.0, acc, alpha * acc)
            act = acc                                               # stays resident

        o_ref[0] = act[0:out_channels, :].astype(o_ref.dtype)

    return kernel


# ---------------------------------------------------------------------------
# Parameters & forward pass.
# ---------------------------------------------------------------------------
def init_sigmanet_params(key, in_channels, out_channels, depth=3, num_filter=64):
    """Mimics PyTorch Conv3d/PReLU default init.

    weights: (3,3,3,Cin,Cout) (DHWIO); biases: (Cout,); alphas: scalar 0.25
    (single shared PReLU parameter) for every layer except the last conv.
    """
    chans = [in_channels] + [num_filter] * (depth + 1) + [out_channels]
    n_convs = depth + 2
    weights, biases, alphas = [], [], []
    for i in range(n_convs):
        cin, cout = chans[i], chans[i + 1]
        key, kw, kb = jax.random.split(key, 3)
        bound = 1.0 / float(np.sqrt(cin * 27))
        weights.append(jax.random.uniform(kw, (3, 3, 3, cin, cout),
                                          jnp.float32, -bound, bound))
        biases.append(jax.random.uniform(kb, (cout,), jnp.float32, -bound, bound))
        if i < n_convs - 1:
            alphas.append(jnp.float32(0.25))
    return {"weights": weights, "biases": biases, "alphas": alphas}


@jax.jit
def sigmanet_forward(x_ncdhw, params):
    """Forward pass. Input is NCDHW (PyTorch convention)."""
    weights, biases, alphas = params["weights"], params["biases"], params["alphas"]
    n_layers = len(weights)
    N, C0, D, H, W = x_ncdhw.shape
    DHW = D * H * W
    dims = tuple((int(w.shape[3]), int(w.shape[4])) for w in weights)
    assert dims[0][0] == C0
    cout_last = dims[-1][1]

    # Static per-layer padding plan (channels -> multiple of 8 sublanes).
    layer_specs = []
    for cin, cout in dims:
        cin_pad = _round_up(cin, 8)
        cout_pad = _round_up(cout, 8)
        if cin_pad % 16 == 8:           # pair taps -> 16-row bf16 tile stores
            n_taps_pad, pair = 28, True
        else:                           # cin_pad multiple of 16 -> already aligned
            n_taps_pad, pair = 27, False
        layer_specs.append((cin_pad, cout_pad, n_taps_pad, pair))
    layer_specs = tuple(layer_specs)
    for l in range(n_layers - 1):       # padded channel counts must chain
        assert layer_specs[l + 1][0] == layer_specs[l][1]

    cin_pad0 = layer_specs[0][0]
    cmax_out_pad = max(s[1] for s in layer_specs)
    max_k = max(s[2] * s[0] for s in layer_specs)

    # Channels-on-sublanes / flat-spatial-on-lanes layout, zero-padded channels.
    x_flat = x_ncdhw.reshape(N, C0, DHW).astype(jnp.float32)
    if cin_pad0 > C0:
        x_flat = jnp.pad(x_flat, ((0, 0), (0, cin_pad0 - C0), (0, 0)))

    # (3, DHW) int32 voxel coordinates (d, h, w) for in-kernel boundary masks.
    dd, hh, ww = jnp.meshgrid(jnp.arange(D, dtype=jnp.int32),
                              jnp.arange(H, dtype=jnp.int32),
                              jnp.arange(W, dtype=jnp.int32), indexing="ij")
    dhw_idx = jnp.stack([dd.reshape(-1), hh.reshape(-1), ww.reshape(-1)], axis=0)

    # Lane-dense weight matrices: K index = tap*cin_pad + cin (matches col rows);
    # padded channels / the dummy 28th tap get zero weights.
    w_mats = []
    for w, (cin, cout), (cin_pad, cout_pad, n_taps_pad, _) in zip(
            weights, dims, layer_specs):
        w_r = jnp.reshape(w.astype(jnp.float32), (27, cin, cout))
        w_pad = jnp.zeros((n_taps_pad, cin_pad, cout_pad), jnp.float32)
        w_pad = w_pad.at[:27, :cin, :cout].set(w_r)
        w_mats.append(jnp.transpose(
            w_pad.reshape(n_taps_pad * cin_pad, cout_pad)).astype(jnp.bfloat16))

    # All biases packed into one (cmax_out_pad, n_layers) f32 input.
    b_pack = jnp.zeros((cmax_out_pad, n_layers), jnp.float32)
    for l, (b, (_, cout)) in enumerate(zip(biases, dims)):
        b_pack = b_pack.at[:cout, l].set(b.astype(jnp.float32))

    alpha_vec = jnp.stack([jnp.asarray(a, jnp.float32) for a in alphas])

    kernel = _make_sigmanet_kernel(layer_specs, D, H, W, cout_last)

    in_specs = [
        pl.BlockSpec((1, cin_pad0, DHW), lambda n: (n, 0, 0)),       # activation
        pl.BlockSpec((3, DHW), lambda n: (0, 0)),                    # d/h/w rows
    ]
    in_specs += [pl.BlockSpec((cout_pad, n_taps_pad * cin_pad), lambda n: (0, 0))
                 for (cin_pad, cout_pad, n_taps_pad, _) in layer_specs]  # weights
    in_specs += [pl.BlockSpec((cmax_out_pad, n_layers), lambda n: (0, 0))]  # biases
    in_specs += [pl.BlockSpec(memory_space=pltpu.MemorySpace.SMEM)]  # alphas

    flops = 2 * N * DHW * sum(27 * ci * co for ci, co in dims)
    bytes_accessed = (x_flat.size * 4 + dhw_idx.size * 4 + N * cout_last * DHW * 4
                      + sum(w.size * 2 for w in w_mats)
                      + b_pack.size * 4 + alpha_vec.size * 4)

    out_flat = pl.pallas_call(
        kernel,
        out_shape=jax.ShapeDtypeStruct((N, cout_last, DHW), jnp.float32),
        grid=(N,),
        in_specs=in_specs,
        out_specs=pl.BlockSpec((1, cout_last, DHW), lambda n: (n, 0, 0)),
        scratch_shapes=[pltpu.VMEM((max_k, DHW), jnp.bfloat16)],     # bf16 im2col
        compiler_params=pltpu.CompilerParams(
            dimension_semantics=("parallel",)),
        cost_estimate=pl.CostEstimate(flops=int(flops), transcendentals=0,
                                      bytes_accessed=int(bytes_accessed)),
    )(x_flat, dhw_idx, *w_mats, b_pack, alpha_vec)

    return out_flat.reshape(N, cout_last, D, H, W)


# ---------------------------------------------------------------------------
# Pure-JAX reference (lax.conv).  Uses the same bf16-operand / f32-accumulate
# rounding as the kernel so the comparison tolerance can stay tight.
# ---------------------------------------------------------------------------
def sigmanet_reference(x_ncdhw, params):
    weights, biases, alphas = params["weights"], params["biases"], params["alphas"]
    n_layers = len(weights)
    x = jnp.transpose(x_ncdhw, (0, 2, 3, 4, 1)).astype(jnp.float32)  # NDHWC
    dn = lax.conv_dimension_numbers(x.shape, weights[0].shape,
                                    ("NDHWC", "DHWIO", "NDHWC"))
    for i in range(n_layers):
        y = lax.conv_general_dilated(
            x.astype(jnp.bfloat16), weights[i].astype(jnp.bfloat16),
            (1, 1, 1), "SAME", dimension_numbers=dn,
            preferred_element_type=jnp.float32)
        y = y + biases[i]
        if i < n_layers - 1:
            y = jnp.where(y >= 0.0, y, alphas[i] * y)
        x = y
    return jnp.transpose(x, (0, 4, 1, 2, 3))                         # NCDHW


if __name__ == "__main__":
    # Small shapes consistent with the module: SigmaNet(in=2, out=1, depth=2,
    # num_filter=8) on a (2, 2, 8, 8, 8) NCDHW input.
    N, C_IN, C_OUT = 2, 2, 1
    D = H = W = 8
    DEPTH, NUM_FILTER = 2, 8

    key = jax.random.PRNGKey(0)
    key, xkey = jax.random.split(key)
    x = jax.random.normal(xkey, (N, C_IN, D, H, W), jnp.float32)
    params = init_sigmanet_params(key, C_IN, C_OUT,
                                  depth=DEPTH, num_filter=NUM_FILTER)

    out = jax.block_until_ready(sigmanet_forward(x, params))
    assert out.shape == (N, C_OUT, D, H, W), out.shape

    ref = jax.block_until_ready(sigmanet_reference(x, params))
    max_err = float(jnp.max(jnp.abs(out - ref)))
    assert jnp.allclose(out, ref, rtol=5e-3, atol=5e-3), max_err

    print("KERNEL_OK")
</pallas_src>

<mosaic_0001>
module attributes {stable_mosaic.version = 11 : i64} {
  func.func @kernel(%arg0: i32, %arg1: memref<1x8x512xf32, #tpu.memory_space<vmem>>, %arg2: memref<3x512xi32, #tpu.memory_space<vmem>>, %arg3: memref<8x224xbf16, #tpu.memory_space<vmem>>, %arg4: memref<8x224xbf16, #tpu.memory_space<vmem>>, %arg5: memref<8x224xbf16, #tpu.memory_space<vmem>>, %arg6: memref<8x224xbf16, #tpu.memory_space<vmem>>, %arg7: memref<8x4xf32, #tpu.memory_space<vmem>>, %arg8: memref<3xf32, #tpu.memory_space<smem>>, %arg9: memref<1x1x512xf32, #tpu.memory_space<vmem>>, %arg10: memref<224x512xbf16, #tpu.memory_space<vmem>>) attributes {dimension_semantics = [#tpu.dimension_semantics<parallel>], iteration_bounds = array<i64: 2>, scalar_prefetch = 0 : i64, scratch_operands = 1 : i64, tpu.core_type = #tpu.core_type<tc>, window_params = [{transform_indices = @transform_0, window_bounds = array<i64: 1, 8, 512>}, {pipeline_mode = #tpu.pipeline_mode<synchronous>, transform_indices = @transform_1, window_bounds = array<i64: 3, 512>}, {pipeline_mode = #tpu.pipeline_mode<synchronous>, transform_indices = @transform_2, window_bounds = array<i64: 8, 224>}, {pipeline_mode = #tpu.pipeline_mode<synchronous>, transform_indices = @transform_3, window_bounds = array<i64: 8, 224>}, {pipeline_mode = #tpu.pipeline_mode<synchronous>, transform_indices = @transform_4, window_bounds = array<i64: 8, 224>}, {pipeline_mode = #tpu.pipeline_mode<synchronous>, transform_indices = @transform_5, window_bounds = array<i64: 8, 224>}, {pipeline_mode = #tpu.pipeline_mode<synchronous>, transform_indices = @transform_6, window_bounds = array<i64: 8, 4>}, {transform_indices = @transform_7, window_bounds = array<i64: 3>}, {transform_indices = @transform_8, window_bounds = array<i64: 1, 1, 512>}]} {
    %c0 = arith.constant 0 : index
    %c0_0 = arith.constant 0 : index
    %0 = vector.load %arg2[%c0, %c0_0] : memref<3x512xi32, #tpu.memory_space<vmem>>, vector<1x512xi32>
    %c1 = arith.constant 1 : index
    %c0_1 = arith.constant 0 : index
    %1 = vector.load %arg2[%c1, %c0_1] : memref<3x512xi32, #tpu.memory_space<vmem>>, vector<1x512xi32>
    %c2 = arith.constant 2 : index
    %c0_2 = arith.constant 0 : index
    %2 = vector.load %arg2[%c2, %c0_2] : memref<3x512xi32, #tpu.memory_space<vmem>>, vector<1x512xi32>
    %c1_i32 = arith.constant 1 : i32
    %3 = vector.broadcast %c1_i32 : i32 to vector<1x512xi32>
    %4 = arith.cmpi sge, %0, %3 : vector<1x512xi32>
    %c7_i32 = arith.constant 7 : i32
    %5 = vector.broadcast %c7_i32 : i32 to vector<1x512xi32>
    %6 = arith.cmpi slt, %0, %5 : vector<1x512xi32>
    %c1_i32_3 = arith.constant 1 : i32
    %7 = vector.broadcast %c1_i32_3 : i32 to vector<1x512xi32>
    %8 = arith.cmpi sge, %1, %7 : vector<1x512xi32>
    %c7_i32_4 = arith.constant 7 : i32
    %9 = vector.broadcast %c7_i32_4 : i32 to vector<1x512xi32>
    %10 = arith.cmpi slt, %1, %9 : vector<1x512xi32>
    %c1_i32_5 = arith.constant 1 : i32
    %11 = vector.broadcast %c1_i32_5 : i32 to vector<1x512xi32>
    %12 = arith.cmpi sge, %2, %11 : vector<1x512xi32>
    %c7_i32_6 = arith.constant 7 : i32
    %13 = vector.broadcast %c7_i32_6 : i32 to vector<1x512xi32>
    %14 = arith.cmpi slt, %2, %13 : vector<1x512xi32>
    %c0_7 = arith.constant 0 : index
    %c0_8 = arith.constant 0 : index
    %c0_9 = arith.constant 0 : index
    %15 = vector.load %arg1[%c0_7, %c0_8, %c0_9] : memref<1x8x512xf32, #tpu.memory_space<vmem>>, vector<1x8x512xf32>
    %16 = vector.shape_cast %15 : vector<1x8x512xf32> to vector<8x512xf32>
    %c73_i32 = arith.constant 73 : i32
    %17 = tpu.dynamic_rotate %16 by %c73_i32 dim 1 : vector<8x512xf32>, i32 -> vector<8x512xf32>
    %18 = arith.andi %4, %8 : vector<1x512xi1>
    %19 = arith.andi %18, %12 : vector<1x512xi1>
    %cst = arith.constant 0.000000e+00 : f32
    %20 = vector.shape_cast %19 : vector<1x512xi1> to vector<1x512xi1>
    %21 = vector.broadcast %20 : vector<1x512xi1> to vector<8x512xi1>
    %22 = vector.broadcast %cst : f32 to vector<8x512xf32>
    %23 = arith.select %21, %17, %22 : vector<8x512xi1>, vector<8x512xf32>
    %c72_i32 = arith.constant 72 : i32
    %24 = tpu.dynamic_rotate %16 by %c72_i32 dim 1 : vector<8x512xf32>, i32 -> vector<8x512xf32>
    %25 = arith.andi %4, %8 : vector<1x512xi1>
    %cst_10 = arith.constant 0.000000e+00 : f32
    %26 = vector.shape_cast %25 : vector<1x512xi1> to vector<1x512xi1>
    %27 = vector.broadcast %26 : vector<1x512xi1> to vector<8x512xi1>
    %28 = vector.broadcast %cst_10 : f32 to vector<8x512xf32>
    %29 = arith.select %27, %24, %28 : vector<8x512xi1>, vector<8x512xf32>
    %30 = tpu.concatenate %23, %29 in 0 : vector<8x512xf32>, vector<8x512xf32> -> vector<16x512xf32>
    %31 = arith.truncf %30 : vector<16x512xf32> to vector<16x512xbf16>
    %c0_11 = arith.constant 0 : index
    %c0_12 = arith.constant 0 : index
    %32 = vector.load %arg10[%c0_11, %c0_12] : memref<224x512xbf16, #tpu.memory_space<vmem>>, vector<16x512xbf16>
    tpu.vector_store %arg10[%c0_11, %c0_12], %31 {strides = array<i32>} : memref<224x512xbf16, #tpu.memory_space<vmem>>, vector<16x512xbf16>,
    %c71_i32 = arith.constant 71 : i32
    %33 = tpu.dynamic_rotate %16 by %c71_i32 dim 1 : vector<8x512xf32>, i32 -> vector<8x512xf32>
    %34 = arith.andi %4, %8 : vector<1x512xi1>
    %35 = arith.andi %34, %14 : vector<1x512xi1>
    %cst_13 = arith.constant 0.000000e+00 : f32
    %36 = vector.shape_cast %35 : vector<1x512xi1> to vector<1x512xi1>
    %37 = vector.broadcast %36 : vector<1x512xi1> to vector<8x512xi1>
    %38 = vector.broadcast %cst_13 : f32 to vector<8x512xf32>
    %39 = arith.select %37, %33, %38 : vector<8x512xi1>, vector<8x512xf32>
    %c65_i32 = arith.constant 65 : i32
    %40 = tpu.dynamic_rotate %16 by %c65_i32 dim 1 : vector<8x512xf32>, i32 -> vector<8x512xf32>
    %41 = arith.andi %4, %12 : vector<1x512xi1>
    %cst_14 = arith.constant 0.000000e+00 : f32
    %42 = vector.shape_cast %41 : vector<1x512xi1> to vector<1x512xi1>
    %43 = vector.broadcast %42 : vector<1x512xi1> to vector<8x512xi1>
    %44 = vector.broadcast %cst_14 : f32 to vector<8x512xf32>
    %45 = arith.select %43, %40, %44 : vector<8x512xi1>, vector<8x512xf32>
    %46 = tpu.concatenate %39, %45 in 0 : vector<8x512xf32>, vector<8x512xf32> -> vector<16x512xf32>
    %47 = arith.truncf %46 : vector<16x512xf32> to vector<16x512xbf16>
    %c16 = arith.constant 16 : index
    %c0_15 = arith.constant 0 : index
    %48 = vector.load %arg10[%c16, %c0_15] : memref<224x512xbf16, #tpu.memory_space<vmem>>, vector<16x512xbf16>
    tpu.vector_store %arg10[%c16, %c0_15], %47 {strides = array<i32>} : memref<224x512xbf16, #tpu.memory_space<vmem>>, vector<16x512xbf16>,
    %c64_i32 = arith.constant 64 : i32
    %49 = tpu.dynamic_rotate %16 by %c64_i32 dim 1 : vector<8x512xf32>, i32 -> vector<8x512xf32>
    %cst_16 = arith.constant 0.000000e+00 : f32
    %50 = vector.shape_cast %4 : vector<1x512xi1> to vector<1x512xi1>
    %51 = vector.broadcast %50 : vector<1x512xi1> to vector<8x512xi1>
    %52 = vector.broadcast %cst_16 : f32 to vector<8x512xf32>
    %53 = arith.select %51, %49, %52 : vector<8x512xi1>, vector<8x512xf32>
    %c63_i32 = arith.constant 63 : i32
    %54 = tpu.dynamic_rotate %16 by %c63_i32 dim 1 : vector<8x512xf32>, i32 -> vector<8x512xf32>
    %55 = arith.andi %4, %14 : vector<1x512xi1>
    %cst_17 = arith.constant 0.000000e+00 : f32
    %56 = vector.shape_cast %55 : vector<1x512xi1> to vector<1x512xi1>
    %57 = vector.broadcast %56 : vector<1x512xi1> to vector<8x512xi1>
    %58 = vector.broadcast %cst_17 : f32 to vector<8x512xf32>
    %59 = arith.select %57, %54, %58 : vector<8x512xi1>, vector<8x512xf32>
    %60 = tpu.concatenate %53, %59 in 0 : vector<8x512xf32>, vector<8x512xf32> -> vector<16x512xf32>
    %61 = arith.truncf %60 : vector<16x512xf32> to vector<16x512xbf16>
    %c32 = arith.constant 32 : index
    %c0_18 = arith.constant 0 : index
    %62 = vector.load %arg10[%c32, %c0_18] : memref<224x512xbf16, #tpu.memory_space<vmem>>, vector<16x512xbf16>
    tpu.vector_store %arg10[%c32, %c0_18], %61 {strides = array<i32>} : memref<224x512xbf16, #tpu.memory_space<vmem>>, vector<16x512xbf16>,
    %c57_i32 = arith.constant 57 : i32
    %63 = tpu.dynamic_rotate %16 by %c57_i32 dim 1 : vector<8x512xf32>, i32 -> vector<8x512xf32>
    %64 = arith.andi %4, %10 : vector<1x512xi1>
    %65 = arith.andi %64, %12 : vector<1x512xi1>
    %cst_19 = arith.constant 0.000000e+00 : f32
    %66 = vector.shape_cast %65 : vector<1x512xi1> to vector<1x512xi1>
    %67 = vector.broadcast %66 : vector<1x512xi1> to vector<8x512xi1>
    %68 = vector.broadcast %cst_19 : f32 to vector<8x512xf32>
    %69 = arith.select %67, %63, %68 : vector<8x512xi1>, vector<8x512xf32>
    %c56_i32 = arith.constant 56 : i32
    %70 = tpu.dynamic_rotate %16 by %c56_i32 dim 1 : vector<8x512xf32>, i32 -> vector<8x512xf32>
    %71 = arith.andi %4, %10 : vector<1x512xi1>
    %cst_20 = arith.constant 0.000000e+00 : f32
    %72 = vector.shape_cast %71 : vector<1x512xi1> to vector<1x512xi1>
    %73 = vector.broadcast %72 : vector<1x512xi1> to vector<8x512xi1>
    %74 = vector.broadcast %cst_20 : f32 to vector<8x512xf32>
    %75 = arith.select %73, %70, %74 : vector<8x512xi1>, vector<8x512xf32>
    %76 = tpu.concatenate %69, %75 in 0 : vector<8x512xf32>, vector<8x512xf32> -> vector<16x512xf32>
    %77 = arith.truncf %76 : vector<16x512xf32> to vector<16x512xbf16>
    %c48 = arith.constant 48 : index
    %c0_21 = arith.constant 0 : index
    %78 = vector.load %arg10[%c48, %c0_21] : memref<224x512xbf16, #tpu.memory_space<vmem>>, vector<16x512xbf16>
    tpu.vector_store %arg10[%c48, %c0_21], %77 {strides = array<i32>} : memref<224x512xbf16, #tpu.memory_space<vmem>>, vector<16x512xbf16>,
    %c55_i32 = arith.constant 55 : i32
    %79 = tpu.dynamic_rotate %16 by %c55_i32 dim 1 : vector<8x512xf32>, i32 -> vector<8x512xf32>
    %80 = arith.andi %4, %10 : vector<1x512xi1>
    %81 = arith.andi %80, %14 : vector<1x512xi1>
    %cst_22 = arith.constant 0.000000e+00 : f32
    %82 = vector.shape_cast %81 : vector<1x512xi1> to vector<1x512xi1>
    %83 = vector.broadcast %82 : vector<1x512xi1> to vector<8x512xi1>
    %84 = vector.broadcast %cst_22 : f32 to vector<8x512xf32>
    %85 = arith.select %83, %79, %84 : vector<8x512xi1>, vector<8x512xf32>
    %c9_i32 = arith.constant 9 : i32
    %86 = tpu.dynamic_rotate %16 by %c9_i32 dim 1 : vector<8x512xf32>, i32 -> vector<8x512xf32>
    %87 = arith.andi %8, %12 : vector<1x512xi1>
    %cst_23 = arith.constant 0.000000e+00 : f32
    %88 = vector.shape_cast %87 : vector<1x512xi1> to vector<1x512xi1>
    %89 = vector.broadcast %88 : vector<1x512xi1> to vector<8x512xi1>
    %90 = vector.broadcast %cst_23 : f32 to vector<8x512xf32>
    %91 = arith.select %89, %86, %90 : vector<8x512xi1>, vector<8x512xf32>
    %92 = tpu.concatenate %85, %91 in 0 : vector<8x512xf32>, vector<8x512xf32> -> vector<16x512xf32>
    %93 = arith.truncf %92 : vector<16x512xf32> to vector<16x512xbf16>
    %c64 = arith.constant 64 : index
    %c0_24 = arith.constant 0 : index
    %94 = vector.load %arg10[%c64, %c0_24] : memref<224x512xbf16, #tpu.memory_space<vmem>>, vector<16x512xbf16>
    tpu.vector_store %arg10[%c64, %c0_24], %93 {strides = array<i32>} : memref<224x512xbf16, #tpu.memory_space<vmem>>, vector<16x512xbf16>,
    %c8_i32 = arith.constant 8 : i32
    %95 = tpu.dynamic_rotate %16 by %c8_i32 dim 1 : vector<8x512xf32>, i32 -> vector<8x512xf32>
    %cst_25 = arith.constant 0.000000e+00 : f32
    %96 = vector.shape_cast %8 : vector<1x512xi1> to vector<1x512xi1>
    %97 = vector.broadcast %96 : vector<1x512xi1> to vector<8x512xi1>
    %98 = vector.broadcast %cst_25 : f32 to vector<8x512xf32>
    %99 = arith.select %97, %95, %98 : vector<8x512xi1>, vector<8x512xf32>
    %c7_i32_26 = arith.constant 7 : i32
    %100 = tpu.dynamic_rotate %16 by %c7_i32_26 dim 1 : vector<8x512xf32>, i32 -> vector<8x512xf32>
    %101 = arith.andi %8, %14 : vector<1x512xi1>
    %cst_27 = arith.constant 0.000000e+00 : f32
    %102 = vector.shape_cast %101 : vector<1x512xi1> to vector<1x512xi1>
    %103 = vector.broadcast %102 : vector<1x512xi1> to vector<8x512xi1>
    %104 = vector.broadcast %cst_27 : f32 to vector<8x512xf32>
    %105 = arith.select %103, %100, %104 : vector<8x512xi1>, vector<8x512xf32>
    %106 = tpu.concatenate %99, %105 in 0 : vector<8x512xf32>, vector<8x512xf32> -> vector<16x512xf32>
    %107 = arith.truncf %106 : vector<16x512xf32> to vector<16x512xbf16>
    %c80 = arith.constant 80 : index
    %c0_28 = arith.constant 0 : index
    %108 = vector.load %arg10[%c80, %c0_28] : memref<224x512xbf16, #tpu.memory_space<vmem>>, vector<16x512xbf16>
    tpu.vector_store %arg10[%c80, %c0_28], %107 {strides = array<i32>} : memref<224x512xbf16, #tpu.memory_space<vmem>>, vector<16x512xbf16>,
    %c1_i32_29 = arith.constant 1 : i32
    %109 = tpu.dynamic_rotate %16 by %c1_i32_29 dim 1 : vector<8x512xf32>, i32 -> vector<8x512xf32>
    %cst_30 = arith.constant 0.000000e+00 : f32
    %110 = vector.shape_cast %12 : vector<1x512xi1> to vector<1x512xi1>
    %111 = vector.broadcast %110 : vector<1x512xi1> to vector<8x512xi1>
    %112 = vector.broadcast %cst_30 : f32 to vector<8x512xf32>
    %113 = arith.select %111, %109, %112 : vector<8x512xi1>, vector<8x512xf32>
    %114 = tpu.concatenate %113, %16 in 0 : vector<8x512xf32>, vector<8x512xf32> -> vector<16x512xf32>
    %115 = arith.truncf %114 : vector<16x512xf32> to vector<16x512xbf16>
    %c96 = arith.constant 96 : index
    %c0_31 = arith.constant 0 : index
    %116 = vector.load %arg10[%c96, %c0_31] : memref<224x512xbf16, #tpu.memory_space<vmem>>, vector<16x512xbf16>
    tpu.vector_store %arg10[%c96, %c0_31], %115 {strides = array<i32>} : memref<224x512xbf16, #tpu.memory_space<vmem>>, vector<16x512xbf16>,
    %c511_i32 = arith.constant 511 : i32
    %117 = tpu.dynamic_rotate %16 by %c511_i32 dim 1 : vector<8x512xf32>, i32 -> vector<8x512xf32>
    %cst_32 = arith.constant 0.000000e+00 : f32
    %118 = vector.shape_cast %14 : vector<1x512xi1> to vector<1x512xi1>
    %119 = vector.broadcast %118 : vector<1x512xi1> to vector<8x512xi1>
    %120 = vector.broadcast %cst_32 : f32 to vector<8x512xf32>
    %121 = arith.select %119, %117, %120 : vector<8x512xi1>, vector<8x512xf32>
    %c505_i32 = arith.constant 505 : i32
    %122 = tpu.dynamic_rotate %16 by %c505_i32 dim 1 : vector<8x512xf32>, i32 -> vector<8x512xf32>
    %123 = arith.andi %10, %12 : vector<1x512xi1>
    %cst_33 = arith.constant 0.000000e+00 : f32
    %124 = vector.shape_cast %123 : vector<1x512xi1> to vector<1x512xi1>
    %125 = vector.broadcast %124 : vector<1x512xi1> to vector<8x512xi1>
    %126 = vector.broadcast %cst_33 : f32 to vector<8x512xf32>
    %127 = arith.select %125, %122, %126 : vector<8x512xi1>, vector<8x512xf32>
    %128 = tpu.concatenate %121, %127 in 0 : vector<8x512xf32>, vector<8x512xf32> -> vector<16x512xf32>
    %129 = arith.truncf %128 : vector<16x512xf32> to vector<16x512xbf16>
    %c112 = arith.constant 112 : index
    %c0_34 = arith.constant 0 : index
    %130 = vector.load %arg10[%c112, %c0_34] : memref<224x512xbf16, #tpu.memory_space<vmem>>, vector<16x512xbf16>
    tpu.vector_store %arg10[%c112, %c0_34], %129 {strides = array<i32>} : memref<224x512xbf16, #tpu.memory_space<vmem>>, vector<16x512xbf16>,
    %c504_i32 = arith.constant 504 : i32
    %131 = tpu.dynamic_rotate %16 by %c504_i32 dim 1 : vector<8x512xf32>, i32 -> vector<8x512xf32>
    %cst_35 = arith.constant 0.000000e+00 : f32
    %132 = vector.shape_cast %10 : vector<1x512xi1> to vector<1x512xi1>
    %133 = vector.broadcast %132 : vector<1x512xi1> to vector<8x512xi1>
    %134 = vector.broadcast %cst_35 : f32 to vector<8x512xf32>
    %135 = arith.select %133, %131, %134 : vector<8x512xi1>, vector<8x512xf32>
    %c503_i32 = arith.constant 503 : i32
    %136 = tpu.dynamic_rotate %16 by %c503_i32 dim 1 : vector<8x512xf32>, i32 -> vector<8x512xf32>
    %137 = arith.andi %10, %14 : vector<1x512xi1>
    %cst_36 = arith.constant 0.000000e+00 : f32
    %138 = vector.shape_cast %137 : vector<1x512xi1> to vector<1x512xi1>
    %139 = vector.broadcast %138 : vector<1x512xi1> to vector<8x512xi1>
    %140 = vector.broadcast %cst_36 : f32 to vector<8x512xf32>
    %141 = arith.select %139, %136, %140 : vector<8x512xi1>, vector<8x512xf32>
    %142 = tpu.concatenate %135, %141 in 0 : vector<8x512xf32>, vector<8x512xf32> -> vector<16x512xf32>
    %143 = arith.truncf %142 : vector<16x512xf32> to vector<16x512xbf16>
    %c128 = arith.constant 128 : index
    %c0_37 = arith.constant 0 : index
    %144 = vector.load %arg10[%c128, %c0_37] : memref<224x512xbf16, #tpu.memory_space<vmem>>, vector<16x512xbf16>
    tpu.vector_store %arg10[%c128, %c0_37], %143 {strides = array<i32>} : memref<224x512xbf16, #tpu.memory_space<vmem>>, vector<16x512xbf16>,
    %c457_i32 = arith.constant 457 : i32
    %145 = tpu.dynamic_rotate %16 by %c457_i32 dim 1 : vector<8x512xf32>, i32 -> vector<8x512xf32>
    %146 = arith.andi %6, %8 : vector<1x512xi1>
    %147 = arith.andi %146, %12 : vector<1x512xi1>
    %cst_38 = arith.constant 0.000000e+00 : f32
    %148 = vector.shape_cast %147 : vector<1x512xi1> to vector<1x512xi1>
    %149 = vector.broadcast %148 : vector<1x512xi1> to vector<8x512xi1>
    %150 = vector.broadcast %cst_38 : f32 to vector<8x512xf32>
    %151 = arith.select %149, %145, %150 : vector<8x512xi1>, vector<8x512xf32>
    %c456_i32 = arith.constant 456 : i32
    %152 = tpu.dynamic_rotate %16 by %c456_i32 dim 1 : vector<8x512xf32>, i32 -> vector<8x512xf32>
    %153 = arith.andi %6, %8 : vector<1x512xi1>
    %cst_39 = arith.constant 0.000000e+00 : f32
    %154 = vector.shape_cast %153 : vector<1x512xi1> to vector<1x512xi1>
    %155 = vector.broadcast %154 : vector<1x512xi1> to vector<8x512xi1>
    %156 = vector.broadcast %cst_39 : f32 to vector<8x512xf32>
    %157 = arith.select %155, %152, %156 : vector<8x512xi1>, vector<8x512xf32>
    %158 = tpu.concatenate %151, %157 in 0 : vector<8x512xf32>, vector<8x512xf32> -> vector<16x512xf32>
    %159 = arith.truncf %158 : vector<16x512xf32> to vector<16x512xbf16>
    %c144 = arith.constant 144 : index
    %c0_40 = arith.constant 0 : index
    %160 = vector.load %arg10[%c144, %c0_40] : memref<224x512xbf16, #tpu.memory_space<vmem>>, vector<16x512xbf16>
    tpu.vector_store %arg10[%c144, %c0_40], %159 {strides = array<i32>} : memref<224x512xbf16, #tpu.memory_space<vmem>>, vector<16x512xbf16>,
    %c455_i32 = arith.constant 455 : i32
    %161 = tpu.dynamic_rotate %16 by %c455_i32 dim 1 : vector<8x512xf32>, i32 -> vector<8x512xf32>
    %162 = arith.andi %6, %8 : vector<1x512xi1>
    %163 = arith.andi %162, %14 : vector<1x512xi1>
    %cst_41 = arith.constant 0.000000e+00 : f32
    %164 = vector.shape_cast %163 : vector<1x512xi1> to vector<1x512xi1>
    %165 = vector.broadcast %164 : vector<1x512xi1> to vector<8x512xi1>
    %166 = vector.broadcast %cst_41 : f32 to vector<8x512xf32>
    %167 = arith.select %165, %161, %166 : vector<8x512xi1>, vector<8x512xf32>
    %c449_i32 = arith.constant 449 : i32
    %168 = tpu.dynamic_rotate %16 by %c449_i32 dim 1 : vector<8x512xf32>, i32 -> vector<8x512xf32>
    %169 = arith.andi %6, %12 : vector<1x512xi1>
    %cst_42 = arith.constant 0.000000e+00 : f32
    %170 = vector.shape_cast %169 : vector<1x512xi1> to vector<1x512xi1>
    %171 = vector.broadcast %170 : vector<1x512xi1> to vector<8x512xi1>
    %172 = vector.broadcast %cst_42 : f32 to vector<8x512xf32>
    %173 = arith.select %171, %168, %172 : vector<8x512xi1>, vector<8x512xf32>
    %174 = tpu.concatenate %167, %173 in 0 : vector<8x512xf32>, vector<8x512xf32> -> vector<16x512xf32>
    %175 = arith.truncf %174 : vector<16x512xf32> to vector<16x512xbf16>
    %c160 = arith.constant 160 : index
    %c0_43 = arith.constant 0 : index
    %176 = vector.load %arg10[%c160, %c0_43] : memref<224x512xbf16, #tpu.memory_space<vmem>>, vector<16x512xbf16>
    tpu.vector_store %arg10[%c160, %c0_43], %175 {strides = array<i32>} : memref<224x512xbf16, #tpu.memory_space<vmem>>, vector<16x512xbf16>,
    %c448_i32 = arith.constant 448 : i32
    %177 = tpu.dynamic_rotate %16 by %c448_i32 dim 1 : vector<8x512xf32>, i32 -> vector<8x512xf32>
    %cst_44 = arith.constant 0.000000e+00 : f32
    %178 = vector.shape_cast %6 : vector<1x512xi1> to vector<1x512xi1>
    %179 = vector.broadcast %178 : vector<1x512xi1> to vector<8x512xi1>
    %180 = vector.broadcast %cst_44 : f32 to vector<8x512xf32>
    %181 = arith.select %179, %177, %180 : vector<8x512xi1>, vector<8x512xf32>
    %c447_i32 = arith.constant 447 : i32
    %182 = tpu.dynamic_rotate %16 by %c447_i32 dim 1 : vector<8x512xf32>, i32 -> vector<8x512xf32>
    %183 = arith.andi %6, %14 : vector<1x512xi1>
    %cst_45 = arith.constant 0.000000e+00 : f32
    %184 = vector.shape_cast %183 : vector<1x512xi1> to vector<1x512xi1>
    %185 = vector.broadcast %184 : vector<1x512xi1> to vector<8x512xi1>
    %186 = vector.broadcast %cst_45 : f32 to vector<8x512xf32>
    %187 = arith.select %185, %182, %186 : vector<8x512xi1>, vector<8x512xf32>
    %188 = tpu.concatenate %181, %187 in 0 : vector<8x512xf32>, vector<8x512xf32> -> vector<16x512xf32>
    %189 = arith.truncf %188 : vector<16x512xf32> to vector<16x512xbf16>
    %c176 = arith.constant 176 : index
    %c0_46 = arith.constant 0 : index
    %190 = vector.load %arg10[%c176, %c0_46] : memref<224x512xbf16, #tpu.memory_space<vmem>>, vector<16x512xbf16>
    tpu.vector_store %arg10[%c176, %c0_46], %189 {strides = array<i32>} : memref<224x512xbf16, #tpu.memory_space<vmem>>, vector<16x512xbf16>,
    %c441_i32 = arith.constant 441 : i32
    %191 = tpu.dynamic_rotate %16 by %c441_i32 dim 1 : vector<8x512xf32>, i32 -> vector<8x512xf32>
    %192 = arith.andi %6, %10 : vector<1x512xi1>
    %193 = arith.andi %192, %12 : vector<1x512xi1>
    %cst_47 = arith.constant 0.000000e+00 : f32
    %194 = vector.shape_cast %193 : vector<1x512xi1> to vector<1x512xi1>
    %195 = vector.broadcast %194 : vector<1x512xi1> to vector<8x512xi1>
    %196 = vector.broadcast %cst_47 : f32 to vector<8x512xf32>
    %197 = arith.select %195, %191, %196 : vector<8x512xi1>, vector<8x512xf32>
    %c440_i32 = arith.constant 440 : i32
    %198 = tpu.dynamic_rotate %16 by %c440_i32 dim 1 : vector<8x512xf32>, i32 -> vector<8x512xf32>
    %199 = arith.andi %6, %10 : vector<1x512xi1>
    %cst_48 = arith.constant 0.000000e+00 : f32
    %200 = vector.shape_cast %199 : vector<1x512xi1> to vector<1x512xi1>
    %201 = vector.broadcast %200 : vector<1x512xi1> to vector<8x512xi1>
    %202 = vector.broadcast %cst_48 : f32 to vector<8x512xf32>
    %203 = arith.select %201, %198, %202 : vector<8x512xi1>, vector<8x512xf32>
    %204 = tpu.concatenate %197, %203 in 0 : vector<8x512xf32>, vector<8x512xf32> -> vector<16x512xf32>
    %205 = arith.truncf %204 : vector<16x512xf32> to vector<16x512xbf16>
    %c192 = arith.constant 192 : index
    %c0_49 = arith.constant 0 : index
    %206 = vector.load %arg10[%c192, %c0_49] : memref<224x512xbf16, #tpu.memory_space<vmem>>, vector<16x512xbf16>
    tpu.vector_store %arg10[%c192, %c0_49], %205 {strides = array<i32>} : memref<224x512xbf16, #tpu.memory_space<vmem>>, vector<16x512xbf16>,
    %c439_i32 = arith.constant 439 : i32
    %207 = tpu.dynamic_rotate %16 by %c439_i32 dim 1 : vector<8x512xf32>, i32 -> vector<8x512xf32>
    %208 = arith.andi %6, %10 : vector<1x512xi1>
    %209 = arith.andi %208, %14 : vector<1x512xi1>
    %cst_50 = arith.constant 0.000000e+00 : f32
    %210 = vector.shape_cast %209 : vector<1x512xi1> to vector<1x512xi1>
    %211 = vector.broadcast %210 : vector<1x512xi1> to vector<8x512xi1>
    %212 = vector.broadcast %cst_50 : f32 to vector<8x512xf32>
    %213 = arith.select %211, %207, %212 : vector<8x512xi1>, vector<8x512xf32>
    %cst_51 = arith.constant 0.000000e+00 : f32
    %214 = vector.broadcast %cst_51 : f32 to vector<8x512xf32>
    %215 = tpu.concatenate %213, %214 in 0 : vector<8x512xf32>, vector<8x512xf32> -> vector<16x512xf32>
    %216 = arith.truncf %215 : vector<16x512xf32> to vector<16x512xbf16>
    %c208 = arith.constant 208 : index
    %c0_52 = arith.constant 0 : index
    %217 = vector.load %arg10[%c208, %c0_52] : memref<224x512xbf16, #tpu.memory_space<vmem>>, vector<16x512xbf16>
    tpu.vector_store %arg10[%c208, %c0_52], %216 {strides = array<i32>} : memref<224x512xbf16, #tpu.memory_space<vmem>>, vector<16x512xbf16>,
    %c0_53 = arith.constant 0 : index
    %c0_54 = arith.constant 0 : index
    %218 = vector.load %arg10[%c0_53, %c0_54] : memref<224x512xbf16, #tpu.memory_space<vmem>>, vector<224x512xbf16>
    %c0_55 = arith.constant 0 : index
    %c0_56 = arith.constant 0 : index
    %219 = vector.load %arg3[%c0_55, %c0_56] : memref<8x224xbf16, #tpu.memory_space<vmem>>, vector<8x224xbf16>
    %cst_57 = arith.constant dense<0.000000e+00> : vector<8x512xf32>
    %220 = tpu.matmul %219, %218, %cst_57 {dimension_numbers = #tpu.dot_dimension_numbers<[1], [0], [0], [1], [0, 0, 1, 1], [], []>} : vector<8x224xbf16>, vector<224x512xbf16>, vector<8x512xf32> -> vector<8x512xf32>
    %c0_58 = arith.constant 0 : index
    %c0_59 = arith.constant 0 : index
    %221 = vector.load %arg7[%c0_58, %c0_59] : memref<8x4xf32, #tpu.memory_space<vmem>>, vector<8x1xf32>
    %222 = vector.broadcast %221 : vector<8x1xf32> to vector<8x512xf32>
    %223 = arith.addf %220, %222 : vector<8x512xf32>
    %c0_60 = arith.constant 0 : index
    %224 = memref.load %arg8[%c0_60] : memref<3xf32, #tpu.memory_space<smem>>
    %cst_61 = arith.constant 0.000000e+00 : f32
    %225 = vector.broadcast %cst_61 : f32 to vector<8x512xf32>
    %226 = arith.cmpf oge, %223, %225 : vector<8x512xf32>
    %227 = vector.broadcast %224 : f32 to vector<8x512xf32>
    %228 = arith.mulf %227, %223 : vector<8x512xf32>
    %229 = arith.select %226, %223, %228 : vector<8x512xi1>, vector<8x512xf32>
    %c73_i32_62 = arith.constant 73 : i32
    %230 = tpu.dynamic_rotate %229 by %c73_i32_62 dim 1 : vector<8x512xf32>, i32 -> vector<8x512xf32>
    %231 = arith.andi %4, %8 : vector<1x512xi1>
    %232 = arith.andi %231, %12 : vector<1x512xi1>
    %cst_63 = arith.constant 0.000000e+00 : f32
    %233 = vector.shape_cast %232 : vector<1x512xi1> to vector<1x512xi1>
    %234 = vector.broadcast %233 : vector<1x512xi1> to vector<8x512xi1>
    %235 = vector.broadcast %cst_63 : f32 to vector<8x512xf32>
    %236 = arith.select %234, %230, %235 : vector<8x512xi1>, vector<8x512xf32>
    %c72_i32_64 = arith.constant 72 : i32
    %237 = tpu.dynamic_rotate %229 by %c72_i32_64 dim 1 : vector<8x512xf32>, i32 -> vector<8x512xf32>
    %238 = arith.andi %4, %8 : vector<1x512xi1>
    %cst_65 = arith.constant 0.000000e+00 : f32
    %239 = vector.shape_cast %238 : vector<1x512xi1> to vector<1x512xi1>
    %240 = vector.broadcast %239 : vector<1x512xi1> to vector<8x512xi1>
    %241 = vector.broadcast %cst_65 : f32 to vector<8x512xf32>
    %242 = arith.select %240, %237, %241 : vector<8x512xi1>, vector<8x512xf32>
    %243 = tpu.concatenate %236, %242 in 0 : vector<8x512xf32>, vector<8x512xf32> -> vector<16x512xf32>
    %244 = arith.truncf %243 : vector<16x512xf32> to vector<16x512xbf16>
    %c0_66 = arith.constant 0 : index
    %c0_67 = arith.constant 0 : index
    %245 = vector.load %arg10[%c0_66, %c0_67] : memref<224x512xbf16, #tpu.memory_space<vmem>>, vector<16x512xbf16>
    tpu.vector_store %arg10[%c0_66, %c0_67], %244 {strides = array<i32>} : memref<224x512xbf16, #tpu.memory_space<vmem>>, vector<16x512xbf16>,
    %c71_i32_68 = arith.constant 71 : i32
    %246 = tpu.dynamic_rotate %229 by %c71_i32_68 dim 1 : vector<8x512xf32>, i32 -> vector<8x512xf32>
    %247 = arith.andi %4, %8 : vector<1x512xi1>
    %248 = arith.andi %247, %14 : vector<1x512xi1>
    %cst_69 = arith.constant 0.000000e+00 : f32
    %249 = vector.shape_cast %248 : vector<1x512xi1> to vector<1x512xi1>
    %250 = vector.broadcast %249 : vector<1x512xi1> to vector<8x512xi1>
    %251 = vector.broadcast %cst_69 : f32 to vector<8x512xf32>
    %252 = arith.select %250, %246, %251 : vector<8x512xi1>, vector<8x512xf32>
    %c65_i32_70 = arith.constant 65 : i32
    %253 = tpu.dynamic_rotate %229 by %c65_i32_70 dim 1 : vector<8x512xf32>, i32 -> vector<8x512xf32>
    %254 = arith.andi %4, %12 : vector<1x512xi1>
    %cst_71 = arith.constant 0.000000e+00 : f32
    %255 = vector.shape_cast %254 : vector<1x512xi1> to vector<1x512xi1>
    %256 = vector.broadcast %255 : vector<1x512xi1> to vector<8x512xi1>
    %257 = vector.broadcast %cst_71 : f32 to vector<8x512xf32>
    %258 = arith.select %256, %253, %257 : vector<8x512xi1>, vector<8x512xf32>
    %259 = tpu.concatenate %252, %258 in 0 : vector<8x512xf32>, vector<8x512xf32> -> vector<16x512xf32>
    %260 = arith.truncf %259 : vector<16x512xf32> to vector<16x512xbf16>
    %c16_72 = arith.constant 16 : index
    %c0_73 = arith.constant 0 : index
    %261 = vector.load %arg10[%c16_72, %c0_73] : memref<224x512xbf16, #tpu.memory_space<vmem>>, vector<16x512xbf16>
    tpu.vector_store %arg10[%c16_72, %c0_73], %260 {strides = array<i32>} : memref<224x512xbf16, #tpu.memory_space<vmem>>, vector<16x512xbf16>,
    %c64_i32_74 = arith.constant 64 : i32
    %262 = tpu.dynamic_rotate %229 by %c64_i32_74 dim 1 : vector<8x512xf32>, i32 -> vector<8x512xf32>
    %cst_75 = arith.constant 0.000000e+00 : f32
    %263 = vector.shape_cast %4 : vector<1x512xi1> to vector<1x512xi1>
    %264 = vector.broadcast %263 : vector<1x512xi1> to vector<8x512xi1>
    %265 = vector.broadcast %cst_75 : f32 to vector<8x512xf32>
    %266 = arith.select %264, %262, %265 : vector<8x512xi1>, vector<8x512xf32>
    %c63_i32_76 = arith.constant 63 : i32
    %267 = tpu.dynamic_rotate %229 by %c63_i32_76 dim 1 : vector<8x512xf32>, i32 -> vector<8x512xf32>
    %268 = arith.andi %4, %14 : vector<1x512xi1>
    %cst_77 = arith.constant 0.000000e+00 : f32
    %269 = vector.shape_cast %268 : vector<1x512xi1> to vector<1x512xi1>
    %270 = vector.broadcast %269 : vector<1x512xi1> to vector<8x512xi1>
    %271 = vector.broadcast %cst_77 : f32 to vector<8x512xf32>
    %272 = arith.select %270, %267, %271 : vector<8x512xi1>, vector<8x512xf32>
    %273 = tpu.concatenate %266, %272 in 0 : vector<8x512xf32>, vector<8x512xf32> -> vector<16x512xf32>
    %274 = arith.truncf %273 : vector<16x512xf32> to vector<16x512xbf16>
    %c32_78 = arith.constant 32 : index
    %c0_79 = arith.constant 0 : index
    %275 = vector.load %arg10[%c32_78, %c0_79] : memref<224x512xbf16, #tpu.memory_space<vmem>>, vector<16x512xbf16>
    tpu.vector_store %arg10[%c32_78, %c0_79], %274 {strides = array<i32>} : memref<224x512xbf16, #tpu.memory_space<vmem>>, vector<16x512xbf16>,
    %c57_i32_80 = arith.constant 57 : i32
    %276 = tpu.dynamic_rotate %229 by %c57_i32_80 dim 1 : vector<8x512xf32>, i32 -> vector<8x512xf32>
    %277 = arith.andi %4, %10 : vector<1x512xi1>
    %278 = arith.andi %277, %12 : vector<1x512xi1>
    %cst_81 = arith.constant 0.000000e+00 : f32
    %279 = vector.shape_cast %278 : vector<1x512xi1> to vector<1x512xi1>
    %280 = vector.broadcast %279 : vector<1x512xi1> to vector<8x512xi1>
    %281 = vector.broadcast %cst_81 : f32 to vector<8x512xf32>
    %282 = arith.select %280, %276, %281 : vector<8x512xi1>, vector<8x512xf32>
    %c56_i32_82 = arith.constant 56 : i32
    %283 = tpu.dynamic_rotate %229 by %c56_i32_82 dim 1 : vector<8x512xf32>, i32 -> vector<8x512xf32>
    %284 = arith.andi %4, %10 : vector<1x512xi1>
    %cst_83 = arith.constant 0.000000e+00 : f32
    %285 = vector.shape_cast %284 : vector<1x512xi1> to vector<1x512xi1>
    %286 = vector.broadcast %285 : vector<1x512xi1> to vector<8x512xi1>
    %287 = vector.broadcast %cst_83 : f32 to vector<8x512xf32>
    %288 = arith.select %286, %283, %287 : vector<8x512xi1>, vector<8x512xf32>
    %289 = tpu.concatenate %282, %288 in 0 : vector<8x512xf32>, vector<8x512xf32> -> vector<16x512xf32>
    %290 = arith.truncf %289 : vector<16x512xf32> to vector<16x512xbf16>
    %c48_84 = arith.constant 48 : index
    %c0_85 = arith.constant 0 : index
    %291 = vector.load %arg10[%c48_84, %c0_85] : memref<224x512xbf16, #tpu.memory_space<vmem>>, vector<16x512xbf16>
    tpu.vector_store %arg10[%c48_84, %c0_85], %290 {strides = array<i32>} : memref<224x512xbf16, #tpu.memory_space<vmem>>, vector<16x512xbf16>,
    %c55_i32_86 = arith.constant 55 : i32
    %292 = tpu.dynamic_rotate %229 by %c55_i32_86 dim 1 : vector<8x512xf32>, i32 -> vector<8x512xf32>
    %293 = arith.andi %4, %10 : vector<1x512xi1>
    %294 = arith.andi %293, %14 : vector<1x512xi1>
    %cst_87 = arith.constant 0.000000e+00 : f32
    %295 = vector.shape_cast %294 : vector<1x512xi1> to vector<1x512xi1>
    %296 = vector.broadcast %295 : vector<1x512xi1> to vector<8x512xi1>
    %297 = vector.broadcast %cst_87 : f32 to vector<8x512xf32>
    %298 = arith.select %296, %292, %297 : vector<8x512xi1>, vector<8x512xf32>
    %c9_i32_88 = arith.constant 9 : i32
    %299 = tpu.dynamic_rotate %229 by %c9_i32_88 dim 1 : vector<8x512xf32>, i32 -> vector<8x512xf32>
    %300 = arith.andi %8, %12 : vector<1x512xi1>
    %cst_89 = arith.constant 0.000000e+00 : f32
    %301 = vector.shape_cast %300 : vector<1x512xi1> to vector<1x512xi1>
    %302 = vector.broadcast %301 : vector<1x512xi1> to vector<8x512xi1>
    %303 = vector.broadcast %cst_89 : f32 to vector<8x512xf32>
    %304 = arith.select %302, %299, %303 : vector<8x512xi1>, vector<8x512xf32>
    %305 = tpu.concatenate %298, %304 in 0 : vector<8x512xf32>, vector<8x512xf32> -> vector<16x512xf32>
    %306 = arith.truncf %305 : vector<16x512xf32> to vector<16x512xbf16>
    %c64_90 = arith.constant 64 : index
    %c0_91 = arith.constant 0 : index
    %307 = vector.load %arg10[%c64_90, %c0_91] : memref<224x512xbf16, #tpu.memory_space<vmem>>, vector<16x512xbf16>
    tpu.vector_store %arg10[%c64_90, %c0_91], %306 {strides = array<i32>} : memref<224x512xbf16, #tpu.memory_space<vmem>>, vector<16x512xbf16>,
    %c8_i32_92 = arith.constant 8 : i32
    %308 = tpu.dynamic_rotate %229 by %c8_i32_92 dim 1 : vector<8x512xf32>, i32 -> vector<8x512xf32>
    %cst_93 = arith.constant 0.000000e+00 : f32
    %309 = vector.shape_cast %8 : vector<1x512xi1> to vector<1x512xi1>
    %310 = vector.broadcast %309 : vector<1x512xi1> to vector<8x512xi1>
    %311 = vector.broadcast %cst_93 : f32 to vector<8x512xf32>
    %312 = arith.select %310, %308, %311 : vector<8x512xi1>, vector<8x512xf32>
    %c7_i32_94 = arith.constant 7 : i32
    %313 = tpu.dynamic_rotate %229 by %c7_i32_94 dim 1 : vector<8x512xf32>, i32 -> vector<8x512xf32>
    %314 = arith.andi %8, %14 : vector<1x512xi1>
    %cst_95 = arith.constant 0.000000e+00 : f32
    %315 = vector.shape_cast %314 : vector<1x512xi1> to vector<1x512xi1>
    %316 = vector.broadcast %315 : vector<1x512xi1> to vector<8x512xi1>
    %317 = vector.broadcast %cst_95 : f32 to vector<8x512xf32>
    %318 = arith.select %316, %313, %317 : vector<8x512xi1>, vector<8x512xf32>
    %319 = tpu.concatenate %312, %318 in 0 : vector<8x512xf32>, vector<8x512xf32> -> vector<16x512xf32>
    %320 = arith.truncf %319 : vector<16x512xf32> to vector<16x512xbf16>
    %c80_96 = arith.constant 80 : index
    %c0_97 = arith.constant 0 : index
    %321 = vector.load %arg10[%c80_96, %c0_97] : memref<224x512xbf16, #tpu.memory_space<vmem>>, vector<16x512xbf16>
    tpu.vector_store %arg10[%c80_96, %c0_97], %320 {strides = array<i32>} : memref<224x512xbf16, #tpu.memory_space<vmem>>, vector<16x512xbf16>,
    %c1_i32_98 = arith.constant 1 : i32
    %322 = tpu.dynamic_rotate %229 by %c1_i32_98 dim 1 : vector<8x512xf32>, i32 -> vector<8x512xf32>
    %cst_99 = arith.constant 0.000000e+00 : f32
    %323 = vector.shape_cast %12 : vector<1x512xi1> to vector<1x512xi1>
    %324 = vector.broadcast %323 : vector<1x512xi1> to vector<8x512xi1>
    %325 = vector.broadcast %cst_99 : f32 to vector<8x512xf32>
    %326 = arith.select %324, %322, %325 : vector<8x512xi1>, vector<8x512xf32>
    %327 = tpu.concatenate %326, %229 in 0 : vector<8x512xf32>, vector<8x512xf32> -> vector<16x512xf32>
    %328 = arith.truncf %327 : vector<16x512xf32> to vector<16x512xbf16>
    %c96_100 = arith.constant 96 : index
    %c0_101 = arith.constant 0 : index
    %329 = vector.load %arg10[%c96_100, %c0_101] : memref<224x512xbf16, #tpu.memory_space<vmem>>, vector<16x512xbf16>
    tpu.vector_store %arg10[%c96_100, %c0_101], %328 {strides = array<i32>} : memref<224x512xbf16, #tpu.memory_space<vmem>>, vector<16x512xbf16>,
    %c511_i32_102 = arith.constant 511 : i32
    %330 = tpu.dynamic_rotate %229 by %c511_i32_102 dim 1 : vector<8x512xf32>, i32 -> vector<8x512xf32>
    %cst_103 = arith.constant 0.000000e+00 : f32
    %331 = vector.shape_cast %14 : vector<1x512xi1> to vector<1x512xi1>
    %332 = vector.broadcast %331 : vector<1x512xi1> to vector<8x512xi1>
    %333 = vector.broadcast %cst_103 : f32 to vector<8x512xf32>
    %334 = arith.select %332, %330, %333 : vector<8x512xi1>, vector<8x512xf32>
    %c505_i32_104 = arith.constant 505 : i32
    %335 = tpu.dynamic_rotate %229 by %c505_i32_104 dim 1 : vector<8x512xf32>, i32 -> vector<8x512xf32>
    %336 = arith.andi %10, %12 : vector<1x512xi1>
    %cst_105 = arith.constant 0.000000e+00 : f32
    %337 = vector.shape_cast %336 : vector<1x512xi1> to vector<1x512xi1>
    %338 = vector.broadcast %337 : vector<1x512xi1> to vector<8x512xi1>
    %339 = vector.broadcast %cst_105 : f32 to vector<8x512xf32>
    %340 = arith.select %338, %335, %339 : vector<8x512xi1>, vector<8x512xf32>
    %341 = tpu.concatenate %334, %340 in 0 : vector<8x512xf32>, vector<8x512xf32> -> vector<16x512xf32>
    %342 = arith.truncf %341 : vector<16x512xf32> to vector<16x512xbf16>
    %c112_106 = arith.constant 112 : index
    %c0_107 = arith.constant 0 : index
    %343 = vector.load %arg10[%c112_106, %c0_107] : memref<224x512xbf16, #tpu.memory_space<vmem>>, vector<16x512xbf16>
    tpu.vector_store %arg10[%c112_106, %c0_107], %342 {strides = array<i32>} : memref<224x512xbf16, #tpu.memory_space<vmem>>, vector<16x512xbf16>,
    %c504_i32_108 = arith.constant 504 : i32
    %344 = tpu.dynamic_rotate %229 by %c504_i32_108 dim 1 : vector<8x512xf32>, i32 -> vector<8x512xf32>
    %cst_109 = arith.constant 0.000000e+00 : f32
    %345 = vector.shape_cast %10 : vector<1x512xi1> to vector<1x512xi1>
    %346 = vector.broadcast %345 : vector<1x512xi1> to vector<8x512xi1>
    %347 = vector.broadcast %cst_109 : f32 to vector<8x512xf32>
    %348 = arith.select %346, %344, %347 : vector<8x512xi1>, vector<8x512xf32>
    %c503_i32_110 = arith.constant 503 : i32
    %349 = tpu.dynamic_rotate %229 by %c503_i32_110 dim 1 : vector<8x512xf32>, i32 -> vector<8x512xf32>
    %350 = arith.andi %10, %14 : vector<1x512xi1>
    %cst_111 = arith.constant 0.000000e+00 : f32
    %351 = vector.shape_cast %350 : vector<1x512xi1> to vector<1x512xi1>
    %352 = vector.broadcast %351 : vector<1x512xi1> to vector<8x512xi1>
    %353 = vector.broadcast %cst_111 : f32 to vector<8x512xf32>
    %354 = arith.select %352, %349, %353 : vector<8x512xi1>, vector<8x512xf32>
    %355 = tpu.concatenate %348, %354 in 0 : vector<8x512xf32>, vector<8x512xf32> -> vector<16x512xf32>
    %356 = arith.truncf %355 : vector<16x512xf32> to vector<16x512xbf16>
    %c128_112 = arith.constant 128 : index
    %c0_113 = arith.constant 0 : index
    %357 = vector.load %arg10[%c128_112, %c0_113] : memref<224x512xbf16, #tpu.memory_space<vmem>>, vector<16x512xbf16>
    tpu.vector_store %arg10[%c128_112, %c0_113], %356 {strides = array<i32>} : memref<224x512xbf16, #tpu.memory_space<vmem>>, vector<16x512xbf16>,
    %c457_i32_114 = arith.constant 457 : i32
    %358 = tpu.dynamic_rotate %229 by %c457_i32_114 dim 1 : vector<8x512xf32>, i32 -> vector<8x512xf32>
    %359 = arith.andi %6, %8 : vector<1x512xi1>
    %360 = arith.andi %359, %12 : vector<1x512xi1>
    %cst_115 = arith.constant 0.000000e+00 : f32
    %361 = vector.shape_cast %360 : vector<1x512xi1> to vector<1x512xi1>
    %362 = vector.broadcast %361 : vector<1x512xi1> to vector<8x512xi1>
    %363 = vector.broadcast %cst_115 : f32 to vector<8x512xf32>
    %364 = arith.select %362, %358, %363 : vector<8x512xi1>, vector<8x512xf32>
    %c456_i32_116 = arith.constant 456 : i32
    %365 = tpu.dynamic_rotate %229 by %c456_i32_116 dim 1 : vector<8x512xf32>, i32 -> vector<8x512xf32>
    %366 = arith.andi %6, %8 : vector<1x512xi1>
    %cst_117 = arith.constant 0.000000e+00 : f32
    %367 = vector.shape_cast %366 : vector<1x512xi1> to vector<1x512xi1>
    %368 = vector.broadcast %367 : vector<1x512xi1> to vector<8x512xi1>
    %369 = vector.broadcast %cst_117 : f32 to vector<8x512xf32>
    %370 = arith.select %368, %365, %369 : vector<8x512xi1>, vector<8x512xf32>
    %371 = tpu.concatenate %364, %370 in 0 : vector<8x512xf32>, vector<8x512xf32> -> vector<16x512xf32>
    %372 = arith.truncf %371 : vector<16x512xf32> to vector<16x512xbf16>
    %c144_118 = arith.constant 144 : index
    %c0_119 = arith.constant 0 : index
    %373 = vector.load %arg10[%c144_118, %c0_119] : memref<224x512xbf16, #tpu.memory_space<vmem>>, vector<16x512xbf16>
    tpu.vector_store %arg10[%c144_118, %c0_119], %372 {strides = array<i32>} : memref<224x512xbf16, #tpu.memory_space<vmem>>, vector<16x512xbf16>,
    %c455_i32_120 = arith.constant 455 : i32
    %374 = tpu.dynamic_rotate %229 by %c455_i32_120 dim 1 : vector<8x512xf32>, i32 -> vector<8x512xf32>
    %375 = arith.andi %6, %8 : vector<1x512xi1>
    %376 = arith.andi %375, %14 : vector<1x512xi1>
    %cst_121 = arith.constant 0.000000e+00 : f32
    %377 = vector.shape_cast %376 : vector<1x512xi1> to vector<1x512xi1>
    %378 = vector.broadcast %377 : vector<1x512xi1> to vector<8x512xi1>
    %379 = vector.broadcast %cst_121 : f32 to vector<8x512xf32>
    %380 = arith.select %378, %374, %379 : vector<8x512xi1>, vector<8x512xf32>
    %c449_i32_122 = arith.constant 449 : i32
    %381 = tpu.dynamic_rotate %229 by %c449_i32_122 dim 1 : vector<8x512xf32>, i32 -> vector<8x512xf32>
    %382 = arith.andi %6, %12 : vector<1x512xi1>
    %cst_123 = arith.constant 0.000000e+00 : f32
    %383 = vector.shape_cast %382 : vector<1x512xi1> to vector<1x512xi1>
    %384 = vector.broadcast %383 : vector<1x512xi1> to vector<8x512xi1>
    %385 = vector.broadcast %cst_123 : f32 to vector<8x512xf32>
    %386 = arith.select %384, %381, %385 : vector<8x512xi1>, vector<8x512xf32>
    %387 = tpu.concatenate %380, %386 in 0 : vector<8x512xf32>, vector<8x512xf32> -> vector<16x512xf32>
    %388 = arith.truncf %387 : vector<16x512xf32> to vector<16x512xbf16>
    %c160_124 = arith.constant 160 : index
    %c0_125 = arith.constant 0 : index
    %389 = vector.load %arg10[%c160_124, %c0_125] : memref<224x512xbf16, #tpu.memory_space<vmem>>, vector<16x512xbf16>
    tpu.vector_store %arg10[%c160_124, %c0_125], %388 {strides = array<i32>} : memref<224x512xbf16, #tpu.memory_space<vmem>>, vector<16x512xbf16>,
    %c448_i32_126 = arith.constant 448 : i32
    %390 = tpu.dynamic_rotate %229 by %c448_i32_126 dim 1 : vector<8x512xf32>, i32 -> vector<8x512xf32>
    %cst_127 = arith.constant 0.000000e+00 : f32
    %391 = vector.shape_cast %6 : vector<1x512xi1> to vector<1x512xi1>
    %392 = vector.broadcast %391 : vector<1x512xi1> to vector<8x512xi1>
    %393 = vector.broadcast %cst_127 : f32 to vector<8x512xf32>
    %394 = arith.select %392, %390, %393 : vector<8x512xi1>, vector<8x512xf32>
    %c447_i32_128 = arith.constant 447 : i32
    %395 = tpu.dynamic_rotate %229 by %c447_i32_128 dim 1 : vector<8x512xf32>, i32 -> vector<8x512xf32>
    %396 = arith.andi %6, %14 : vector<1x512xi1>
    %cst_129 = arith.constant 0.000000e+00 : f32
    %397 = vector.shape_cast %396 : vector<1x512xi1> to vector<1x512xi1>
    %398 = vector.broadcast %397 : vector<1x512xi1> to vector<8x512xi1>
    %399 = vector.broadcast %cst_129 : f32 to vector<8x512xf32>
    %400 = arith.select %398, %395, %399 : vector<8x512xi1>, vector<8x512xf32>
    %401 = tpu.concatenate %394, %400 in 0 : vector<8x512xf32>, vector<8x512xf32> -> vector<16x512xf32>
    %402 = arith.truncf %401 : vector<16x512xf32> to vector<16x512xbf16>
    %c176_130 = arith.constant 176 : index
    %c0_131 = arith.constant 0 : index
    %403 = vector.load %arg10[%c176_130, %c0_131] : memref<224x512xbf16, #tpu.memory_space<vmem>>, vector<16x512xbf16>
    tpu.vector_store %arg10[%c176_130, %c0_131], %402 {strides = array<i32>} : memref<224x512xbf16, #tpu.memory_space<vmem>>, vector<16x512xbf16>,
    %c441_i32_132 = arith.constant 441 : i32
    %404 = tpu.dynamic_rotate %229 by %c441_i32_132 dim 1 : vector<8x512xf32>, i32 -> vector<8x512xf32>
    %405 = arith.andi %6, %10 : vector<1x512xi1>
    %406 = arith.andi %405, %12 : vector<1x512xi1>
    %cst_133 = arith.constant 0.000000e+00 : f32
    %407 = vector.shape_cast %406 : vector<1x512xi1> to vector<1x512xi1>
    %408 = vector.broadcast %407 : vector<1x512xi1> to vector<8x512xi1>
    %409 = vector.broadcast %cst_133 : f32 to vector<8x512xf32>
    %410 = arith.select %408, %404, %409 : vector<8x512xi1>, vector<8x512xf32>
    %c440_i32_134 = arith.constant 440 : i32
    %411 = tpu.dynamic_rotate %229 by %c440_i32_134 dim 1 : vector<8x512xf32>, i32 -> vector<8x512xf32>
    %412 = arith.andi %6, %10 : vector<1x512xi1>
    %cst_135 = arith.constant 0.000000e+00 : f32
    %413 = vector.shape_cast %412 : vector<1x512xi1> to vector<1x512xi1>
    %414 = vector.broadcast %413 : vector<1x512xi1> to vector<8x512xi1>
    %415 = vector.broadcast %cst_135 : f32 to vector<8x512xf32>
    %416 = arith.select %414, %411, %415 : vector<8x512xi1>, vector<8x512xf32>
    %417 = tpu.concatenate %410, %416 in 0 : vector<8x512xf32>, vector<8x512xf32> -> vector<16x512xf32>
    %418 = arith.truncf %417 : vector<16x512xf32> to vector<16x512xbf16>
    %c192_136 = arith.constant 192 : index
    %c0_137 = arith.constant 0 : index
    %419 = vector.load %arg10[%c192_136, %c0_137] : memref<224x512xbf16, #tpu.memory_space<vmem>>, vector<16x512xbf16>
    tpu.vector_store %arg10[%c192_136, %c0_137], %418 {strides = array<i32>} : memref<224x512xbf16, #tpu.memory_space<vmem>>, vector<16x512xbf16>,
    %c439_i32_138 = arith.constant 439 : i32
    %420 = tpu.dynamic_rotate %229 by %c439_i32_138 dim 1 : vector<8x512xf32>, i32 -> vector<8x512xf32>
    %421 = arith.andi %6, %10 : vector<1x512xi1>
    %422 = arith.andi %421, %14 : vector<1x512xi1>
    %cst_139 = arith.constant 0.000000e+00 : f32
    %423 = vector.shape_cast %422 : vector<1x512xi1> to vector<1x512xi1>
    %424 = vector.broadcast %423 : vector<1x512xi1> to vector<8x512xi1>
    %425 = vector.broadcast %cst_139 : f32 to vector<8x512xf32>
    %426 = arith.select %424, %420, %425 : vector<8x512xi1>, vector<8x512xf32>
    %cst_140 = arith.constant 0.000000e+00 : f32
    %427 = vector.broadcast %cst_140 : f32 to vector<8x512xf32>
    %428 = tpu.concatenate %426, %427 in 0 : vector<8x512xf32>, vector<8x512xf32> -> vector<16x512xf32>
    %429 = arith.truncf %428 : vector<16x512xf32> to vector<16x512xbf16>
    %c208_141 = arith.constant 208 : index
    %c0_142 = arith.constant 0 : index
    %430 = vector.load %arg10[%c208_141, %c0_142] : memref<224x512xbf16, #tpu.memory_space<vmem>>, vector<16x512xbf16>
    tpu.vector_store %arg10[%c208_141, %c0_142], %429 {strides = array<i32>} : memref<224x512xbf16, #tpu.memory_space<vmem>>, vector<16x512xbf16>,
    %c0_143 = arith.constant 0 : index
    %c0_144 = arith.constant 0 : index
    %431 = vector.load %arg10[%c0_143, %c0_144] : memref<224x512xbf16, #tpu.memory_space<vmem>>, vector<224x512xbf16>
    %c0_145 = arith.constant 0 : index
    %c0_146 = arith.constant 0 : index
    %432 = vector.load %arg4[%c0_145, %c0_146] : memref<8x224xbf16, #tpu.memory_space<vmem>>, vector<8x224xbf16>
    %cst_147 = arith.constant dense<0.000000e+00> : vector<8x512xf32>
    %433 = tpu.matmul %432, %431, %cst_147 {dimension_numbers = #tpu.dot_dimension_numbers<[1], [0], [0], [1], [0, 0, 1, 1], [], []>} : vector<8x224xbf16>, vector<224x512xbf16>, vector<8x512xf32> -> vector<8x512xf32>
    %c0_148 = arith.constant 0 : index
    %c1_149 = arith.constant 1 : index
    %434 = vector.load %arg7[%c0_148, %c1_149] : memref<8x4xf32, #tpu.memory_space<vmem>>, vector<8x1xf32>
    %435 = vector.broadcast %434 : vector<8x1xf32> to vector<8x512xf32>
    %436 = arith.addf %433, %435 : vector<8x512xf32>
    %c1_150 = arith.constant 1 : index
    %437 = memref.load %arg8[%c1_150] : memref<3xf32, #tpu.memory_space<smem>>
    %cst_151 = arith.constant 0.000000e+00 : f32
    %438 = vector.broadcast %cst_151 : f32 to vector<8x512xf32>
    %439 = arith.cmpf oge, %436, %438 : vector<8x512xf32>
    %440 = vector.broadcast %437 : f32 to vector<8x512xf32>
    %441 = arith.mulf %440, %436 : vector<8x512xf32>
    %442 = arith.select %439, %436, %441 : vector<8x512xi1>, vector<8x512xf32>
    %c73_i32_152 = arith.constant 73 : i32
    %443 = tpu.dynamic_rotate %442 by %c73_i32_152 dim 1 : vector<8x512xf32>, i32 -> vector<8x512xf32>
    %444 = arith.andi %4, %8 : vector<1x512xi1>
    %445 = arith.andi %444, %12 : vector<1x512xi1>
    %cst_153 = arith.constant 0.000000e+00 : f32
    %446 = vector.shape_cast %445 : vector<1x512xi1> to vector<1x512xi1>
    %447 = vector.broadcast %446 : vector<1x512xi1> to vector<8x512xi1>
    %448 = vector.broadcast %cst_153 : f32 to vector<8x512xf32>
    %449 = arith.select %447, %443, %448 : vector<8x512xi1>, vector<8x512xf32>
    %c72_i32_154 = arith.constant 72 : i32
    %450 = tpu.dynamic_rotate %442 by %c72_i32_154 dim 1 : vector<8x512xf32>, i32 -> vector<8x512xf32>
    %451 = arith.andi %4, %8 : vector<1x512xi1>
    %cst_155 = arith.constant 0.000000e+00 : f32
    %452 = vector.shape_cast %451 : vector<1x512xi1> to vector<1x512xi1>
    %453 = vector.broadcast %452 : vector<1x512xi1> to vector<8x512xi1>
    %454 = vector.broadcast %cst_155 : f32 to vector<8x512xf32>
    %455 = arith.select %453, %450, %454 : vector<8x512xi1>, vector<8x512xf32>
    %456 = tpu.concatenate %449, %455 in 0 : vector<8x512xf32>, vector<8x512xf32> -> vector<16x512xf32>
    %457 = arith.truncf %456 : vector<16x512xf32> to vector<16x512xbf16>
    %c0_156 = arith.constant 0 : index
    %c0_157 = arith.constant 0 : index
    %458 = vector.load %arg10[%c0_156, %c0_157] : memref<224x512xbf16, #tpu.memory_space<vmem>>, vector<16x512xbf16>
    tpu.vector_store %arg10[%c0_156, %c0_157], %457 {strides = array<i32>} : memref<224x512xbf16, #tpu.memory_space<vmem>>, vector<16x512xbf16>,
    %c71_i32_158 = arith.constant 71 : i32
    %459 = tpu.dynamic_rotate %442 by %c71_i32_158 dim 1 : vector<8x512xf32>, i32 -> vector<8x512xf32>
    %460 = arith.andi %4, %8 : vector<1x512xi1>
    %461 = arith.andi %460, %14 : vector<1x512xi1>
    %cst_159 = arith.constant 0.000000e+00 : f32
    %462 = vector.shape_cast %461 : vector<1x512xi1> to vector<1x512xi1>
    %463 = vector.broadcast %462 : vector<1x512xi1> to vector<8x512xi1>
    %464 = vector.broadcast %cst_159 : f32 to vector<8x512xf32>
    %465 = arith.select %463, %459, %464 : vector<8x512xi1>, vector<8x512xf32>
    %c65_i32_160 = arith.constant 65 : i32
    %466 = tpu.dynamic_rotate %442 by %c65_i32_160 dim 1 : vector<8x512xf32>, i32 -> vector<8x512xf32>
    %467 = arith.andi %4, %12 : vector<1x512xi1>
    %cst_161 = arith.constant 0.000000e+00 : f32
    %468 = vector.shape_cast %467 : vector<1x512xi1> to vector<1x512xi1>
    %469 = vector.broadcast %468 : vector<1x512xi1> to vector<8x512xi1>
    %470 = vector.broadcast %cst_161 : f32 to vector<8x512xf32>
    %471 = arith.select %469, %466, %470 : vector<8x512xi1>, vector<8x512xf32>
    %472 = tpu.concatenate %465, %471 in 0 : vector<8x512xf32>, vector<8x512xf32> -> vector<16x512xf32>
    %473 = arith.truncf %472 : vector<16x512xf32> to vector<16x512xbf16>
    %c16_162 = arith.constant 16 : index
    %c0_163 = arith.constant 0 : index
    %474 = vector.load %arg10[%c16_162, %c0_163] : memref<224x512xbf16, #tpu.memory_space<vmem>>, vector<16x512xbf16>
    tpu.vector_store %arg10[%c16_162, %c0_163], %473 {strides = array<i32>} : memref<224x512xbf16, #tpu.memory_space<vmem>>, vector<16x512xbf16>,
    %c64_i32_164 = arith.constant 64 : i32
    %475 = tpu.dynamic_rotate %442 by %c64_i32_164 dim 1 : vector<8x512xf32>, i32 -> vector<8x512xf32>
    %cst_165 = arith.constant 0.000000e+00 : f32
    %476 = vector.shape_cast %4 : vector<1x512xi1> to vector<1x512xi1>
    %477 = vector.broadcast %476 : vector<1x512xi1> to vector<8x512xi1>
    %478 = vector.broadcast %cst_165 : f32 to vector<8x512xf32>
    %479 = arith.select %477, %475, %478 : vector<8x512xi1>, vector<8x512xf32>
    %c63_i32_166 = arith.constant 63 : i32
    %480 = tpu.dynamic_rotate %442 by %c63_i32_166 dim 1 : vector<8x512xf32>, i32 -> vector<8x512xf32>
    %481 = arith.andi %4, %14 : vector<1x512xi1>
    %cst_167 = arith.constant 0.000000e+00 : f32
    %482 = vector.shape_cast %481 : vector<1x512xi1> to vector<1x512xi1>
    %483 = vector.broadcast %482 : vector<1x512xi1> to vector<8x512xi1>
    %484 = vector.broadcast %cst_167 : f32 to vector<8x512xf32>
    %485 = arith.select %483, %480, %484 : vector<8x512xi1>, vector<8x512xf32>
    %486 = tpu.concatenate %479, %485 in 0 : vector<8x512xf32>, vector<8x512xf32> -> vector<16x512xf32>
    %487 = arith.truncf %486 : vector<16x512xf32> to vector<16x512xbf16>
    %c32_168 = arith.constant 32 : index
    %c0_169 = arith.constant 0 : index
    %488 = vector.load %arg10[%c32_168, %c0_169] : memref<224x512xbf16, #tpu.memory_space<vmem>>, vector<16x512xbf16>
    tpu.vector_store %arg10[%c32_168, %c0_169], %487 {strides = array<i32>} : memref<224x512xbf16, #tpu.memory_space<vmem>>, vector<16x512xbf16>,
    %c57_i32_170 = arith.constant 57 : i32
    %489 = tpu.dynamic_rotate %442 by %c57_i32_170 dim 1 : vector<8x512xf32>, i32 -> vector<8x512xf32>
    %490 = arith.andi %4, %10 : vector<1x512xi1>
    %491 = arith.andi %490, %12 : vector<1x512xi1>
    %cst_171 = arith.constant 0.000000e+00 : f32
    %492 = vector.shape_cast %491 : vector<1x512xi1> to vector<1x512xi1>
    %493 = vector.broadcast %492 : vector<1x512xi1> to vector<8x512xi1>
    %494 = vector.broadcast %cst_171 : f32 to vector<8x512xf32>
    %495 = arith.select %493, %489, %494 : vector<8x512xi1>, vector<8x512xf32>
    %c56_i32_172 = arith.constant 56 : i32
    %496 = tpu.dynamic_rotate %442 by %c56_i32_172 dim 1 : vector<8x512xf32>, i32 -> vector<8x512xf32>
    %497 = arith.andi %4, %10 : vector<1x512xi1>
    %cst_173 = arith.constant 0.000000e+00 : f32
    %498 = vector.shape_cast %497 : vector<1x512xi1> to vector<1x512xi1>
    %499 = vector.broadcast %498 : vector<1x512xi1> to vector<8x512xi1>
    %500 = vector.broadcast %cst_173 : f32 to vector<8x512xf32>
    %501 = arith.select %499, %496, %500 : vector<8x512xi1>, vector<8x512xf32>
    %502 = tpu.concatenate %495, %501 in 0 : vector<8x512xf32>, vector<8x512xf32> -> vector<16x512xf32>
    %503 = arith.truncf %502 : vector<16x512xf32> to vector<16x512xbf16>
    %c48_174 = arith.constant 48 : index
    %c0_175 = arith.constant 0 : index
    %504 = vector.load %arg10[%c48_174, %c0_175] : memref<224x512xbf16, #tpu.memory_space<vmem>>, vector<16x512xbf16>
    tpu.vector_store %arg10[%c48_174, %c0_175], %503 {strides = array<i32>} : memref<224x512xbf16, #tpu.memory_space<vmem>>, vector<16x512xbf16>,
    %c55_i32_176 = arith.constant 55 : i32
    %505 = tpu.dynamic_rotate %442 by %c55_i32_176 dim 1 : vector<8x512xf32>, i32 -> vector<8x512xf32>
    %506 = arith.andi %4, %10 : vector<1x512xi1>
    %507 = arith.andi %506, %14 : vector<1x512xi1>
    %cst_177 = arith.constant 0.000000e+00 : f32
    %508 = vector.shape_cast %507 : vector<1x512xi1> to vector<1x512xi1>
    %509 = vector.broadcast %508 : vector<1x512xi1> to vector<8x512xi1>
    %510 = vector.broadcast %cst_177 : f32 to vector<8x512xf32>
    %511 = arith.select %509, %505, %510 : vector<8x512xi1>, vector<8x512xf32>
    %c9_i32_178 = arith.constant 9 : i32
    %512 = tpu.dynamic_rotate %442 by %c9_i32_178 dim 1 : vector<8x512xf32>, i32 -> vector<8x512xf32>
    %513 = arith.andi %8, %12 : vector<1x512xi1>
    %cst_179 = arith.constant 0.000000e+00 : f32
    %514 = vector.shape_cast %513 : vector<1x512xi1> to vector<1x512xi1>
    %515 = vector.broadcast %514 : vector<1x512xi1> to vector<8x512xi1>
    %516 = vector.broadcast %cst_179 : f32 to vector<8x512xf32>
    %517 = arith.select %515, %512, %516 : vector<8x512xi1>, vector<8x512xf32>
    %518 = tpu.concatenate %511, %517 in 0 : vector<8x512xf32>, vector<8x512xf32> -> vector<16x512xf32>
    %519 = arith.truncf %518 : vector<16x512xf32> to vector<16x512xbf16>
    %c64_180 = arith.constant 64 : index
    %c0_181 = arith.constant 0 : index
    %520 = vector.load %arg10[%c64_180, %c0_181] : memref<224x512xbf16, #tpu.memory_space<vmem>>, vector<16x512xbf16>
    tpu.vector_store %arg10[%c64_180, %c0_181], %519 {strides = array<i32>} : memref<224x512xbf16, #tpu.memory_space<vmem>>, vector<16x512xbf16>,
    %c8_i32_182 = arith.constant 8 : i32
    %521 = tpu.dynamic_rotate %442 by %c8_i32_182 dim 1 : vector<8x512xf32>, i32 -> vector<8x512xf32>
    %cst_183 = arith.constant 0.000000e+00 : f32
    %522 = vector.shape_cast %8 : vector<1x512xi1> to vector<1x512xi1>
    %523 = vector.broadcast %522 : vector<1x512xi1> to vector<8x512xi1>
    %524 = vector.broadcast %cst_183 : f32 to vector<8x512xf32>
    %525 = arith.select %523, %521, %524 : vector<8x512xi1>, vector<8x512xf32>
    %c7_i32_184 = arith.constant 7 : i32
    %526 = tpu.dynamic_rotate %442 by %c7_i32_184 dim 1 : vector<8x512xf32>, i32 -> vector<8x512xf32>
    %527 = arith.andi %8, %14 : vector<1x512xi1>
    %cst_185 = arith.constant 0.000000e+00 : f32
    %528 = vector.shape_cast %527 : vector<1x512xi1> to vector<1x512xi1>
    %529 = vector.broadcast %528 : vector<1x512xi1> to vector<8x512xi1>
    %530 = vector.broadcast %cst_185 : f32 to vector<8x512xf32>
    %531 = arith.select %529, %526, %530 : vector<8x512xi1>, vector<8x512xf32>
    %532 = tpu.concatenate %525, %531 in 0 : vector<8x512xf32>, vector<8x512xf32> -> vector<16x512xf32>
    %533 = arith.truncf %532 : vector<16x512xf32> to vector<16x512xbf16>
    %c80_186 = arith.constant 80 : index
    %c0_187 = arith.constant 0 : index
    %534 = vector.load %arg10[%c80_186, %c0_187] : memref<224x512xbf16, #tpu.memory_space<vmem>>, vector<16x512xbf16>
    tpu.vector_store %arg10[%c80_186, %c0_187], %533 {strides = array<i32>} : memref<224x512xbf16, #tpu.memory_space<vmem>>, vector<16x512xbf16>,
    %c1_i32_188 = arith.constant 1 : i32
    %535 = tpu.dynamic_rotate %442 by %c1_i32_188 dim 1 : vector<8x512xf32>, i32 -> vector<8x512xf32>
    %cst_189 = arith.constant 0.000000e+00 : f32
    %536 = vector.shape_cast %12 : vector<1x512xi1> to vector<1x512xi1>
    %537 = vector.broadcast %536 : vector<1x512xi1> to vector<8x512xi1>
    %538 = vector.broadcast %cst_189 : f32 to vector<8x512xf32>
    %539 = arith.select %537, %535, %538 : vector<8x512xi1>, vector<8x512xf32>
    %540 = tpu.concatenate %539, %442 in 0 : vector<8x512xf32>, vector<8x512xf32> -> vector<16x512xf32>
    %541 = arith.truncf %540 : vector<16x512xf32> to vector<16x512xbf16>
    %c96_190 = arith.constant 96 : index
    %c0_191 = arith.constant 0 : index
    %542 = vector.load %arg10[%c96_190, %c0_191] : memref<224x512xbf16, #tpu.memory_space<vmem>>, vector<16x512xbf16>
    tpu.vector_store %arg10[%c96_190, %c0_191], %541 {strides = array<i32>} : memref<224x512xbf16, #tpu.memory_space<vmem>>, vector<16x512xbf16>,
    %c511_i32_192 = arith.constant 511 : i32
    %543 = tpu.dynamic_rotate %442 by %c511_i32_192 dim 1 : vector<8x512xf32>, i32 -> vector<8x512xf32>
    %cst_193 = arith.constant 0.000000e+00 : f32
    %544 = vector.shape_cast %14 : vector<1x512xi1> to vector<1x512xi1>
    %545 = vector.broadcast %544 : vector<1x512xi1> to vector<8x512xi1>
    %546 = vector.broadcast %cst_193 : f32 to vector<8x512xf32>
    %547 = arith.select %545, %543, %546 : vector<8x512xi1>, vector<8x512xf32>
    %c505_i32_194 = arith.constant 505 : i32
    %548 = tpu.dynamic_rotate %442 by %c505_i32_194 dim 1 : vector<8x512xf32>, i32 -> vector<8x512xf32>
    %549 = arith.andi %10, %12 : vector<1x512xi1>
    %cst_195 = arith.constant 0.000000e+00 : f32
    %550 = vector.shape_cast %549 : vector<1x512xi1> to vector<1x512xi1>
    %551 = vector.broadcast %550 : vector<1x512xi1> to vector<8x512xi1>
    %552 = vector.broadcast %cst_195 : f32 to vector<8x512xf32>
    %553 = arith.select %551, %548, %552 : vector<8x512xi1>, vector<8x512xf32>
    %554 = tpu.concatenate %547, %553 in 0 : vector<8x512xf32>, vector<8x512xf32> -> vector<16x512xf32>
    %555 = arith.truncf %554 : vector<16x512xf32> to vector<16x512xbf16>
    %c112_196 = arith.constant 112 : index
    %c0_197 = arith.constant 0 : index
    %556 = vector.load %arg10[%c112_196, %c0_197] : memref<224x512xbf16, #tpu.memory_space<vmem>>, vector<16x512xbf16>
    tpu.vector_store %arg10[%c112_196, %c0_197], %555 {strides = array<i32>} : memref<224x512xbf16, #tpu.memory_space<vmem>>, vector<16x512xbf16>,
    %c504_i32_198 = arith.constant 504 : i32
    %557 = tpu.dynamic_rotate %442 by %c504_i32_198 dim 1 : vector<8x512xf32>, i32 -> vector<8x512xf32>
    %cst_199 = arith.constant 0.000000e+00 : f32
    %558 = vector.shape_cast %10 : vector<1x512xi1> to vector<1x512xi1>
    %559 = vector.broadcast %558 : vector<1x512xi1> to vector<8x512xi1>
    %560 = vector.broadcast %cst_199 : f32 to vector<8x512xf32>
    %561 = arith.select %559, %557, %560 : vector<8x512xi1>, vector<8x512xf32>
    %c503_i32_200 = arith.constant 503 : i32
    %562 = tpu.dynamic_rotate %442 by %c503_i32_200 dim 1 : vector<8x512xf32>, i32 -> vector<8x512xf32>
    %563 = arith.andi %10, %14 : vector<1x512xi1>
    %cst_201 = arith.constant 0.000000e+00 : f32
    %564 = vector.shape_cast %563 : vector<1x512xi1> to vector<1x512xi1>
    %565 = vector.broadcast %564 : vector<1x512xi1> to vector<8x512xi1>
    %566 = vector.broadcast %cst_201 : f32 to vector<8x512xf32>
    %567 = arith.select %565, %562, %566 : vector<8x512xi1>, vector<8x512xf32>
    %568 = tpu.concatenate %561, %567 in 0 : vector<8x512xf32>, vector<8x512xf32> -> vector<16x512xf32>
    %569 = arith.truncf %568 : vector<16x512xf32> to vector<16x512xbf16>
    %c128_202 = arith.constant 128 : index
    %c0_203 = arith.constant 0 : index
    %570 = vector.load %arg10[%c128_202, %c0_203] : memref<224x512xbf16, #tpu.memory_space<vmem>>, vector<16x512xbf16>
    tpu.vector_store %arg10[%c128_202, %c0_203], %569 {strides = array<i32>} : memref<224x512xbf16, #tpu.memory_space<vmem>>, vector<16x512xbf16>,
    %c457_i32_204 = arith.constant 457 : i32
    %571 = tpu.dynamic_rotate %442 by %c457_i32_204 dim 1 : vector<8x512xf32>, i32 -> vector<8x512xf32>
    %572 = arith.andi %6, %8 : vector<1x512xi1>
    %573 = arith.andi %572, %12 : vector<1x512xi1>
    %cst_205 = arith.constant 0.000000e+00 : f32
    %574 = vector.shape_cast %573 : vector<1x512xi1> to vector<1x512xi1>
    %575 = vector.broadcast %574 : vector<1x512xi1> to vector<8x512xi1>
    %576 = vector.broadcast %cst_205 : f32 to vector<8x512xf32>
    %577 = arith.select %575, %571, %576 : vector<8x512xi1>, vector<8x512xf32>
    %c456_i32_206 = arith.constant 456 : i32
    %578 = tpu.dynamic_rotate %442 by %c456_i32_206 dim 1 : vector<8x512xf32>, i32 -> vector<8x512xf32>
    %579 = arith.andi %6, %8 : vector<1x512xi1>
    %cst_207 = arith.constant 0.000000e+00 : f32
    %580 = vector.shape_cast %579 : vector<1x512xi1> to vector<1x512xi1>
    %581 = vector.broadcast %580 : vector<1x512xi1> to vector<8x512xi1>
    %582 = vector.broadcast %cst_207 : f32 to vector<8x512xf32>
    %583 = arith.select %581, %578, %582 : vector<8x512xi1>, vector<8x512xf32>
    %584 = tpu.concatenate %577, %583 in 0 : vector<8x512xf32>, vector<8x512xf32> -> vector<16x512xf32>
    %585 = arith.truncf %584 : vector<16x512xf32> to vector<16x512xbf16>
    %c144_208 = arith.constant 144 : index
    %c0_209 = arith.constant 0 : index
    %586 = vector.load %arg10[%c144_208, %c0_209] : memref<224x512xbf16, #tpu.memory_space<vmem>>, vector<16x512xbf16>
    tpu.vector_store %arg10[%c144_208, %c0_209], %585 {strides = array<i32>} : memref<224x512xbf16, #tpu.memory_space<vmem>>, vector<16x512xbf16>,
    %c455_i32_210 = arith.constant 455 : i32
    %587 = tpu.dynamic_rotate %442 by %c455_i32_210 dim 1 : vector<8x512xf32>, i32 -> vector<8x512xf32>
    %588 = arith.andi %6, %8 : vector<1x512xi1>
    %589 = arith.andi %588, %14 : vector<1x512xi1>
    %cst_211 = arith.constant 0.000000e+00 : f32
    %590 = vector.shape_cast %589 : vector<1x512xi1> to vector<1x512xi1>
    %591 = vector.broadcast %590 : vector<1x512xi1> to vector<8x512xi1>
    %592 = vector.broadcast %cst_211 : f32 to vector<8x512xf32>
    %593 = arith.select %591, %587, %592 : vector<8x512xi1>, vector<8x512xf32>
    %c449_i32_212 = arith.constant 449 : i32
    %594 = tpu.dynamic_rotate %442 by %c449_i32_212 dim 1 : vector<8x512xf32>, i32 -> vector<8x512xf32>
    %595 = arith.andi %6, %12 : vector<1x512xi1>
    %cst_213 = arith.constant 0.000000e+00 : f32
    %596 = vector.shape_cast %595 : vector<1x512xi1> to vector<1x512xi1>
    %597 = vector.broadcast %596 : vector<1x512xi1> to vector<8x512xi1>
    %598 = vector.broadcast %cst_213 : f32 to vector<8x512xf32>
    %599 = arith.select %597, %594, %598 : vector<8x512xi1>, vector<8x512xf32>
    %600 = tpu.concatenate %593, %599 in 0 : vector<8x512xf32>, vector<8x512xf32> -> vector<16x512xf32>
    %601 = arith.truncf %600 : vector<16x512xf32> to vector<16x512xbf16>
    %c160_214 = arith.constant 160 : index
    %c0_215 = arith.constant 0 : index
    %602 = vector.load %arg10[%c160_214, %c0_215] : memref<224x512xbf16, #tpu.memory_space<vmem>>, vector<16x512xbf16>
    tpu.vector_store %arg10[%c160_214, %c0_215], %601 {strides = array<i32>} : memref<224x512xbf16, #tpu.memory_space<vmem>>, vector<16x512xbf16>,
    %c448_i32_216 = arith.constant 448 : i32
    %603 = tpu.dynamic_rotate %442 by %c448_i32_216 dim 1 : vector<8x512xf32>, i32 -> vector<8x512xf32>
    %cst_217 = arith.constant 0.000000e+00 : f32
    %604 = vector.shape_cast %6 : vector<1x512xi1> to vector<1x512xi1>
    %605 = vector.broadcast %604 : vector<1x512xi1> to vector<8x512xi1>
    %606 = vector.broadcast %cst_217 : f32 to vector<8x512xf32>
    %607 = arith.select %605, %603, %606 : vector<8x512xi1>, vector<8x512xf32>
    %c447_i32_218 = arith.constant 447 : i32
    %608 = tpu.dynamic_rotate %442 by %c447_i32_218 dim 1 : vector<8x512xf32>, i32 -> vector<8x512xf32>
    %609 = arith.andi %6, %14 : vector<1x512xi1>
    %cst_219 = arith.constant 0.000000e+00 : f32
    %610 = vector.shape_cast %609 : vector<1x512xi1> to vector<1x512xi1>
    %611 = vector.broadcast %610 : vector<1x512xi1> to vector<8x512xi1>
    %612 = vector.broadcast %cst_219 : f32 to vector<8x512xf32>
    %613 = arith.select %611, %608, %612 : vector<8x512xi1>, vector<8x512xf32>
    %614 = tpu.concatenate %607, %613 in 0 : vector<8x512xf32>, vector<8x512xf32> -> vector<16x512xf32>
    %615 = arith.truncf %614 : vector<16x512xf32> to vector<16x512xbf16>
    %c176_220 = arith.constant 176 : index
    %c0_221 = arith.constant 0 : index
    %616 = vector.load %arg10[%c176_220, %c0_221] : memref<224x512xbf16, #tpu.memory_space<vmem>>, vector<16x512xbf16>
    tpu.vector_store %arg10[%c176_220, %c0_221], %615 {strides = array<i32>} : memref<224x512xbf16, #tpu.memory_space<vmem>>, vector<16x512xbf16>,
    %c441_i32_222 = arith.constant 441 : i32
    %617 = tpu.dynamic_rotate %442 by %c441_i32_222 dim 1 : vector<8x512xf32>, i32 -> vector<8x512xf32>
    %618 = arith.andi %6, %10 : vector<1x512xi1>
    %619 = arith.andi %618, %12 : vector<1x512xi1>
    %cst_223 = arith.constant 0.000000e+00 : f32
    %620 = vector.shape_cast %619 : vector<1x512xi1> to vector<1x512xi1>
    %621 = vector.broadcast %620 : vector<1x512xi1> to vector<8x512xi1>
    %622 = vector.broadcast %cst_223 : f32 to vector<8x512xf32>
    %623 = arith.select %621, %617, %622 : vector<8x512xi1>, vector<8x512xf32>
    %c440_i32_224 = arith.constant 440 : i32
    %624 = tpu.dynamic_rotate %442 by %c440_i32_224 dim 1 : vector<8x512xf32>, i32 -> vector<8x512xf32>
    %625 = arith.andi %6, %10 : vector<1x512xi1>
    %cst_225 = arith.constant 0.000000e+00 : f32
    %626 = vector.shape_cast %625 : vector<1x512xi1> to vector<1x512xi1>
    %627 = vector.broadcast %626 : vector<1x512xi1> to vector<8x512xi1>
    %628 = vector.broadcast %cst_225 : f32 to vector<8x512xf32>
    %629 = arith.select %627, %624, %628 : vector<8x512xi1>, vector<8x512xf32>
    %630 = tpu.concatenate %623, %629 in 0 : vector<8x512xf32>, vector<8x512xf32> -> vector<16x512xf32>
    %631 = arith.truncf %630 : vector<16x512xf32> to vector<16x512xbf16>
    %c192_226 = arith.constant 192 : index
    %c0_227 = arith.constant 0 : index
    %632 = vector.load %arg10[%c192_226, %c0_227] : memref<224x512xbf16, #tpu.memory_space<vmem>>, vector<16x512xbf16>
    tpu.vector_store %arg10[%c192_226, %c0_227], %631 {strides = array<i32>} : memref<224x512xbf16, #tpu.memory_space<vmem>>, vector<16x512xbf16>,
    %c439_i32_228 = arith.constant 439 : i32
    %633 = tpu.dynamic_rotate %442 by %c439_i32_228 dim 1 : vector<8x512xf32>, i32 -> vector<8x512xf32>
    %634 = arith.andi %6, %10 : vector<1x512xi1>
    %635 = arith.andi %634, %14 : vector<1x512xi1>
    %cst_229 = arith.constant 0.000000e+00 : f32
    %636 = vector.shape_cast %635 : vector<1x512xi1> to vector<1x512xi1>
    %637 = vector.broadcast %636 : vector<1x512xi1> to vector<8x512xi1>
    %638 = vector.broadcast %cst_229 : f32 to vector<8x512xf32>
    %639 = arith.select %637, %633, %638 : vector<8x512xi1>, vector<8x512xf32>
    %cst_230 = arith.constant 0.000000e+00 : f32
    %640 = vector.broadcast %cst_230 : f32 to vector<8x512xf32>
    %641 = tpu.concatenate %639, %640 in 0 : vector<8x512xf32>, vector<8x512xf32> -> vector<16x512xf32>
    %642 = arith.truncf %641 : vector<16x512xf32> to vector<16x512xbf16>
    %c208_231 = arith.constant 208 : index
    %c0_232 = arith.constant 0 : index
    %643 = vector.load %arg10[%c208_231, %c0_232] : memref<224x512xbf16, #tpu.memory_space<vmem>>, vector<16x512xbf16>
    tpu.vector_store %arg10[%c208_231, %c0_232], %642 {strides = array<i32>} : memref<224x512xbf16, #tpu.memory_space<vmem>>, vector<16x512xbf16>,
    %c0_233 = arith.constant 0 : index
    %c0_234 = arith.constant 0 : index
    %644 = vector.load %arg10[%c0_233, %c0_234] : memref<224x512xbf16, #tpu.memory_space<vmem>>, vector<224x512xbf16>
    %c0_235 = arith.constant 0 : index
    %c0_236 = arith.constant 0 : index
    %645 = vector.load %arg5[%c0_235, %c0_236] : memref<8x224xbf16, #tpu.memory_space<vmem>>, vector<8x224xbf16>
    %cst_237 = arith.constant dense<0.000000e+00> : vector<8x512xf32>
    %646 = tpu.matmul %645, %644, %cst_237 {dimension_numbers = #tpu.dot_dimension_numbers<[1], [0], [0], [1], [0, 0, 1, 1], [], []>} : vector<8x224xbf16>, vector<224x512xbf16>, vector<8x512xf32> -> vector<8x512xf32>
    %c0_238 = arith.constant 0 : index
    %c2_239 = arith.constant 2 : index
    %647 = vector.load %arg7[%c0_238, %c2_239] : memref<8x4xf32, #tpu.memory_space<vmem>>, vector<8x1xf32>
    %648 = vector.broadcast %647 : vector<8x1xf32> to vector<8x512xf32>
    %649 = arith.addf %646, %648 : vector<8x512xf32>
    %c2_240 = arith.constant 2 : index
    %650 = memref.load %arg8[%c2_240] : memref<3xf32, #tpu.memory_space<smem>>
    %cst_241 = arith.constant 0.000000e+00 : f32
    %651 = vector.broadcast %cst_241 : f32 to vector<8x512xf32>
    %652 = arith.cmpf oge, %649, %651 : vector<8x512xf32>
    %653 = vector.broadcast %650 : f32 to vector<8x512xf32>
    %654 = arith.mulf %653, %649 : vector<8x512xf32>
    %655 = arith.select %652, %649, %654 : vector<8x512xi1>, vector<8x512xf32>
    %c73_i32_242 = arith.constant 73 : i32
    %656 = tpu.dynamic_rotate %655 by %c73_i32_242 dim 1 : vector<8x512xf32>, i32 -> vector<8x512xf32>
    %657 = arith.andi %4, %8 : vector<1x512xi1>
    %658 = arith.andi %657, %12 : vector<1x512xi1>
    %cst_243 = arith.constant 0.000000e+00 : f32
    %659 = vector.shape_cast %658 : vector<1x512xi1> to vector<1x512xi1>
    %660 = vector.broadcast %659 : vector<1x512xi1> to vector<8x512xi1>
    %661 = vector.broadcast %cst_243 : f32 to vector<8x512xf32>
    %662 = arith.select %660, %656, %661 : vector<8x512xi1>, vector<8x512xf32>
    %c72_i32_244 = arith.constant 72 : i32
    %663 = tpu.dynamic_rotate %655 by %c72_i32_244 dim 1 : vector<8x512xf32>, i32 -> vector<8x512xf32>
    %664 = arith.andi %4, %8 : vector<1x512xi1>
    %cst_245 = arith.constant 0.000000e+00 : f32
    %665 = vector.shape_cast %664 : vector<1x512xi1> to vector<1x512xi1>
    %666 = vector.broadcast %665 : vector<1x512xi1> to vector<8x512xi1>
    %667 = vector.broadcast %cst_245 : f32 to vector<8x512xf32>
    %668 = arith.select %666, %663, %667 : vector<8x512xi1>, vector<8x512xf32>
    %669 = tpu.concatenate %662, %668 in 0 : vector<8x512xf32>, vector<8x512xf32> -> vector<16x512xf32>
    %670 = arith.truncf %669 : vector<16x512xf32> to vector<16x512xbf16>
    %c0_246 = arith.constant 0 : index
    %c0_247 = arith.constant 0 : index
    %671 = vector.load %arg10[%c0_246, %c0_247] : memref<224x512xbf16, #tpu.memory_space<vmem>>, vector<16x512xbf16>
    tpu.vector_store %arg10[%c0_246, %c0_247], %670 {strides = array<i32>} : memref<224x512xbf16, #tpu.memory_space<vmem>>, vector<16x512xbf16>,
    %c71_i32_248 = arith.constant 71 : i32
    %672 = tpu.dynamic_rotate %655 by %c71_i32_248 dim 1 : vector<8x512xf32>, i32 -> vector<8x512xf32>
    %673 = arith.andi %4, %8 : vector<1x512xi1>
    %674 = arith.andi %673, %14 : vector<1x512xi1>
    %cst_249 = arith.constant 0.000000e+00 : f32
    %675 = vector.shape_cast %674 : vector<1x512xi1> to vector<1x512xi1>
    %676 = vector.broadcast %675 : vector<1x512xi1> to vector<8x512xi1>
    %677 = vector.broadcast %cst_249 : f32 to vector<8x512xf32>
    %678 = arith.select %676, %672, %677 : vector<8x512xi1>, vector<8x512xf32>
    %c65_i32_250 = arith.constant 65 : i32
    %679 = tpu.dynamic_rotate %655 by %c65_i32_250 dim 1 : vector<8x512xf32>, i32 -> vector<8x512xf32>
    %680 = arith.andi %4, %12 : vector<1x512xi1>
    %cst_251 = arith.constant 0.000000e+00 : f32
    %681 = vector.shape_cast %680 : vector<1x512xi1> to vector<1x512xi1>
    %682 = vector.broadcast %681 : vector<1x512xi1> to vector<8x512xi1>
    %683 = vector.broadcast %cst_251 : f32 to vector<8x512xf32>
    %684 = arith.select %682, %679, %683 : vector<8x512xi1>, vector<8x512xf32>
    %685 = tpu.concatenate %678, %684 in 0 : vector<8x512xf32>, vector<8x512xf32> -> vector<16x512xf32>
    %686 = arith.truncf %685 : vector<16x512xf32> to vector<16x512xbf16>
    %c16_252 = arith.constant 16 : index
    %c0_253 = arith.constant 0 : index
    %687 = vector.load %arg10[%c16_252, %c0_253] : memref<224x512xbf16, #tpu.memory_space<vmem>>, vector<16x512xbf16>
    tpu.vector_store %arg10[%c16_252, %c0_253], %686 {strides = array<i32>} : memref<224x512xbf16, #tpu.memory_space<vmem>>, vector<16x512xbf16>,
    %c64_i32_254 = arith.constant 64 : i32
    %688 = tpu.dynamic_rotate %655 by %c64_i32_254 dim 1 : vector<8x512xf32>, i32 -> vector<8x512xf32>
    %cst_255 = arith.constant 0.000000e+00 : f32
    %689 = vector.shape_cast %4 : vector<1x512xi1> to vector<1x512xi1>
    %690 = vector.broadcast %689 : vector<1x512xi1> to vector<8x512xi1>
    %691 = vector.broadcast %cst_255 : f32 to vector<8x512xf32>
    %692 = arith.select %690, %688, %691 : vector<8x512xi1>, vector<8x512xf32>
    %c63_i32_256 = arith.constant 63 : i32
    %693 = tpu.dynamic_rotate %655 by %c63_i32_256 dim 1 : vector<8x512xf32>, i32 -> vector<8x512xf32>
    %694 = arith.andi %4, %14 : vector<1x512xi1>
    %cst_257 = arith.constant 0.000000e+00 : f32
    %695 = vector.shape_cast %694 : vector<1x512xi1> to vector<1x512xi1>
    %696 = vector.broadcast %695 : vector<1x512xi1> to vector<8x512xi1>
    %697 = vector.broadcast %cst_257 : f32 to vector<8x512xf32>
    %698 = arith.select %696, %693, %697 : vector<8x512xi1>, vector<8x512xf32>
    %699 = tpu.concatenate %692, %698 in 0 : vector<8x512xf32>, vector<8x512xf32> -> vector<16x512xf32>
    %700 = arith.truncf %699 : vector<16x512xf32> to vector<16x512xbf16>
    %c32_258 = arith.constant 32 : index
    %c0_259 = arith.constant 0 : index
    %701 = vector.load %arg10[%c32_258, %c0_259] : memref<224x512xbf16, #tpu.memory_space<vmem>>, vector<16x512xbf16>
    tpu.vector_store %arg10[%c32_258, %c0_259], %700 {strides = array<i32>} : memref<224x512xbf16, #tpu.memory_space<vmem>>, vector<16x512xbf16>,
    %c57_i32_260 = arith.constant 57 : i32
    %702 = tpu.dynamic_rotate %655 by %c57_i32_260 dim 1 : vector<8x512xf32>, i32 -> vector<8x512xf32>
    %703 = arith.andi %4, %10 : vector<1x512xi1>
    %704 = arith.andi %703, %12 : vector<1x512xi1>
    %cst_261 = arith.constant 0.000000e+00 : f32
    %705 = vector.shape_cast %704 : vector<1x512xi1> to vector<1x512xi1>
    %706 = vector.broadcast %705 : vector<1x512xi1> to vector<8x512xi1>
    %707 = vector.broadcast %cst_261 : f32 to vector<8x512xf32>
    %708 = arith.select %706, %702, %707 : vector<8x512xi1>, vector<8x512xf32>
    %c56_i32_262 = arith.constant 56 : i32
    %709 = tpu.dynamic_rotate %655 by %c56_i32_262 dim 1 : vector<8x512xf32>, i32 -> vector<8x512xf32>
    %710 = arith.andi %4, %10 : vector<1x512xi1>
    %cst_263 = arith.constant 0.000000e+00 : f32
    %711 = vector.shape_cast %710 : vector<1x512xi1> to vector<1x512xi1>
    %712 = vector.broadcast %711 : vector<1x512xi1> to vector<8x512xi1>
    %713 = vector.broadcast %cst_263 : f32 to vector<8x512xf32>
    %714 = arith.select %712, %709, %713 : vector<8x512xi1>, vector<8x512xf32>
    %715 = tpu.concatenate %708, %714 in 0 : vector<8x512xf32>, vector<8x512xf32> -> vector<16x512xf32>
    %716 = arith.truncf %715 : vector<16x512xf32> to vector<16x512xbf16>
    %c48_264 = arith.constant 48 : index
    %c0_265 = arith.constant 0 : index
    %717 = vector.load %arg10[%c48_264, %c0_265] : memref<224x512xbf16, #tpu.memory_space<vmem>>, vector<16x512xbf16>
    tpu.vector_store %arg10[%c48_264, %c0_265], %716 {strides = array<i32>} : memref<224x512xbf16, #tpu.memory_space<vmem>>, vector<16x512xbf16>,
    %c55_i32_266 = arith.constant 55 : i32
    %718 = tpu.dynamic_rotate %655 by %c55_i32_266 dim 1 : vector<8x512xf32>, i32 -> vector<8x512xf32>
    %719 = arith.andi %4, %10 : vector<1x512xi1>
    %720 = arith.andi %719, %14 : vector<1x512xi1>
    %cst_267 = arith.constant 0.000000e+00 : f32
    %721 = vector.shape_cast %720 : vector<1x512xi1> to vector<1x512xi1>
    %722 = vector.broadcast %721 : vector<1x512xi1> to vector<8x512xi1>
    %723 = vector.broadcast %cst_267 : f32 to vector<8x512xf32>
    %724 = arith.select %722, %718, %723 : vector<8x512xi1>, vector<8x512xf32>
    %c9_i32_268 = arith.constant 9 : i32
    %725 = tpu.dynamic_rotate %655 by %c9_i32_268 dim 1 : vector<8x512xf32>, i32 -> vector<8x512xf32>
    %726 = arith.andi %8, %12 : vector<1x512xi1>
    %cst_269 = arith.constant 0.000000e+00 : f32
    %727 = vector.shape_cast %726 : vector<1x512xi1> to vector<1x512xi1>
    %728 = vector.broadcast %727 : vector<1x512xi1> to vector<8x512xi1>
    %729 = vector.broadcast %cst_269 : f32 to vector<8x512xf32>
    %730 = arith.select %728, %725, %729 : vector<8x512xi1>, vector<8x512xf32>
    %731 = tpu.concatenate %724, %730 in 0 : vector<8x512xf32>, vector<8x512xf32> -> vector<16x512xf32>
    %732 = arith.truncf %731 : vector<16x512xf32> to vector<16x512xbf16>
    %c64_270 = arith.constant 64 : index
    %c0_271 = arith.constant 0 : index
    %733 = vector.load %arg10[%c64_270, %c0_271] : memref<224x512xbf16, #tpu.memory_space<vmem>>, vector<16x512xbf16>
    tpu.vector_store %arg10[%c64_270, %c0_271], %732 {strides = array<i32>} : memref<224x512xbf16, #tpu.memory_space<vmem>>, vector<16x512xbf16>,
    %c8_i32_272 = arith.constant 8 : i32
    %734 = tpu.dynamic_rotate %655 by %c8_i32_272 dim 1 : vector<8x512xf32>, i32 -> vector<8x512xf32>
    %cst_273 = arith.constant 0.000000e+00 : f32
    %735 = vector.shape_cast %8 : vector<1x512xi1> to vector<1x512xi1>
    %736 = vector.broadcast %735 : vector<1x512xi1> to vector<8x512xi1>
    %737 = vector.broadcast %cst_273 : f32 to vector<8x512xf32>
    %738 = arith.select %736, %734, %737 : vector<8x512xi1>, vector<8x512xf32>
    %c7_i32_274 = arith.constant 7 : i32
    %739 = tpu.dynamic_rotate %655 by %c7_i32_274 dim 1 : vector<8x512xf32>, i32 -> vector<8x512xf32>
    %740 = arith.andi %8, %14 : vector<1x512xi1>
    %cst_275 = arith.constant 0.000000e+00 : f32
    %741 = vector.shape_cast %740 : vector<1x512xi1> to vector<1x512xi1>
    %742 = vector.broadcast %741 : vector<1x512xi1> to vector<8x512xi1>
    %743 = vector.broadcast %cst_275 : f32 to vector<8x512xf32>
    %744 = arith.select %742, %739, %743 : vector<8x512xi1>, vector<8x512xf32>
    %745 = tpu.concatenate %738, %744 in 0 : vector<8x512xf32>, vector<8x512xf32> -> vector<16x512xf32>
    %746 = arith.truncf %745 : vector<16x512xf32> to vector<16x512xbf16>
    %c80_276 = arith.constant 80 : index
    %c0_277 = arith.constant 0 : index
    %747 = vector.load %arg10[%c80_276, %c0_277] : memref<224x512xbf16, #tpu.memory_space<vmem>>, vector<16x512xbf16>
    tpu.vector_store %arg10[%c80_276, %c0_277], %746 {strides = array<i32>} : memref<224x512xbf16, #tpu.memory_space<vmem>>, vector<16x512xbf16>,
    %c1_i32_278 = arith.constant 1 : i32
    %748 = tpu.dynamic_rotate %655 by %c1_i32_278 dim 1 : vector<8x512xf32>, i32 -> vector<8x512xf32>
    %cst_279 = arith.constant 0.000000e+00 : f32
    %749 = vector.shape_cast %12 : vector<1x512xi1> to vector<1x512xi1>
    %750 = vector.broadcast %749 : vector<1x512xi1> to vector<8x512xi1>
    %751 = vector.broadcast %cst_279 : f32 to vector<8x512xf32>
    %752 = arith.select %750, %748, %751 : vector<8x512xi1>, vector<8x512xf32>
    %753 = tpu.concatenate %752, %655 in 0 : vector<8x512xf32>, vector<8x512xf32> -> vector<16x512xf32>
    %754 = arith.truncf %753 : vector<16x512xf32> to vector<16x512xbf16>
    %c96_280 = arith.constant 96 : index
    %c0_281 = arith.constant 0 : index
    %755 = vector.load %arg10[%c96_280, %c0_281] : memref<224x512xbf16, #tpu.memory_space<vmem>>, vector<16x512xbf16>
    tpu.vector_store %arg10[%c96_280, %c0_281], %754 {strides = array<i32>} : memref<224x512xbf16, #tpu.memory_space<vmem>>, vector<16x512xbf16>,
    %c511_i32_282 = arith.constant 511 : i32
    %756 = tpu.dynamic_rotate %655 by %c511_i32_282 dim 1 : vector<8x512xf32>, i32 -> vector<8x512xf32>
    %cst_283 = arith.constant 0.000000e+00 : f32
    %757 = vector.shape_cast %14 : vector<1x512xi1> to vector<1x512xi1>
    %758 = vector.broadcast %757 : vector<1x512xi1> to vector<8x512xi1>
    %759 = vector.broadcast %cst_283 : f32 to vector<8x512xf32>
    %760 = arith.select %758, %756, %759 : vector<8x512xi1>, vector<8x512xf32>
    %c505_i32_284 = arith.constant 505 : i32
    %761 = tpu.dynamic_rotate %655 by %c505_i32_284 dim 1 : vector<8x512xf32>, i32 -> vector<8x512xf32>
    %762 = arith.andi %10, %12 : vector<1x512xi1>
    %cst_285 = arith.constant 0.000000e+00 : f32
    %763 = vector.shape_cast %762 : vector<1x512xi1> to vector<1x512xi1>
    %764 = vector.broadcast %763 : vector<1x512xi1> to vector<8x512xi1>
    %765 = vector.broadcast %cst_285 : f32 to vector<8x512xf32>
    %766 = arith.select %764, %761, %765 : vector<8x512xi1>, vector<8x512xf32>
    %767 = tpu.concatenate %760, %766 in 0 : vector<8x512xf32>, vector<8x512xf32> -> vector<16x512xf32>
    %768 = arith.truncf %767 : vector<16x512xf32> to vector<16x512xbf16>
    %c112_286 = arith.constant 112 : index
    %c0_287 = arith.constant 0 : index
    %769 = vector.load %arg10[%c112_286, %c0_287] : memref<224x512xbf16, #tpu.memory_space<vmem>>, vector<16x512xbf16>
    tpu.vector_store %arg10[%c112_286, %c0_287], %768 {strides = array<i32>} : memref<224x512xbf16, #tpu.memory_space<vmem>>, vector<16x512xbf16>,
    %c504_i32_288 = arith.constant 504 : i32
    %770 = tpu.dynamic_rotate %655 by %c504_i32_288 dim 1 : vector<8x512xf32>, i32 -> vector<8x512xf32>
    %cst_289 = arith.constant 0.000000e+00 : f32
    %771 = vector.shape_cast %10 : vector<1x512xi1> to vector<1x512xi1>
    %772 = vector.broadcast %771 : vector<1x512xi1> to vector<8x512xi1>
    %773 = vector.broadcast %cst_289 : f32 to vector<8x512xf32>
    %774 = arith.select %772, %770, %773 : vector<8x512xi1>, vector<8x512xf32>
    %c503_i32_290 = arith.constant 503 : i32
    %775 = tpu.dynamic_rotate %655 by %c503_i32_290 dim 1 : vector<8x512xf32>, i32 -> vector<8x512xf32>
    %776 = arith.andi %10, %14 : vector<1x512xi1>
    %cst_291 = arith.constant 0.000000e+00 : f32
    %777 = vector.shape_cast %776 : vector<1x512xi1> to vector<1x512xi1>
    %778 = vector.broadcast %777 : vector<1x512xi1> to vector<8x512xi1>
    %779 = vector.broadcast %cst_291 : f32 to vector<8x512xf32>
    %780 = arith.select %778, %775, %779 : vector<8x512xi1>, vector<8x512xf32>
    %781 = tpu.concatenate %774, %780 in 0 : vector<8x512xf32>, vector<8x512xf32> -> vector<16x512xf32>
    %782 = arith.truncf %781 : vector<16x512xf32> to vector<16x512xbf16>
    %c128_292 = arith.constant 128 : index
    %c0_293 = arith.constant 0 : index
    %783 = vector.load %arg10[%c128_292, %c0_293] : memref<224x512xbf16, #tpu.memory_space<vmem>>, vector<16x512xbf16>
    tpu.vector_store %arg10[%c128_292, %c0_293], %782 {strides = array<i32>} : memref<224x512xbf16, #tpu.memory_space<vmem>>, vector<16x512xbf16>,
    %c457_i32_294 = arith.constant 457 : i32
    %784 = tpu.dynamic_rotate %655 by %c457_i32_294 dim 1 : vector<8x512xf32>, i32 -> vector<8x512xf32>
    %785 = arith.andi %6, %8 : vector<1x512xi1>
    %786 = arith.andi %785, %12 : vector<1x512xi1>
    %cst_295 = arith.constant 0.000000e+00 : f32
    %787 = vector.shape_cast %786 : vector<1x512xi1> to vector<1x512xi1>
    %788 = vector.broadcast %787 : vector<1x512xi1> to vector<8x512xi1>
    %789 = vector.broadcast %cst_295 : f32 to vector<8x512xf32>
    %790 = arith.select %788, %784, %789 : vector<8x512xi1>, vector<8x512xf32>
    %c456_i32_296 = arith.constant 456 : i32
    %791 = tpu.dynamic_rotate %655 by %c456_i32_296 dim 1 : vector<8x512xf32>, i32 -> vector<8x512xf32>
    %792 = arith.andi %6, %8 : vector<1x512xi1>
    %cst_297 = arith.constant 0.000000e+00 : f32
    %793 = vector.shape_cast %792 : vector<1x512xi1> to vector<1x512xi1>
    %794 = vector.broadcast %793 : vector<1x512xi1> to vector<8x512xi1>
    %795 = vector.broadcast %cst_297 : f32 to vector<8x512xf32>
    %796 = arith.select %794, %791, %795 : vector<8x512xi1>, vector<8x512xf32>
    %797 = tpu.concatenate %790, %796 in 0 : vector<8x512xf32>, vector<8x512xf32> -> vector<16x512xf32>
    %798 = arith.truncf %797 : vector<16x512xf32> to vector<16x512xbf16>
    %c144_298 = arith.constant 144 : index
    %c0_299 = arith.constant 0 : index
    %799 = vector.load %arg10[%c144_298, %c0_299] : memref<224x512xbf16, #tpu.memory_space<vmem>>, vector<16x512xbf16>
    tpu.vector_store %arg10[%c144_298, %c0_299], %798 {strides = array<i32>} : memref<224x512xbf16, #tpu.memory_space<vmem>>, vector<16x512xbf16>,
    %c455_i32_300 = arith.constant 455 : i32
    %800 = tpu.dynamic_rotate %655 by %c455_i32_300 dim 1 : vector<8x512xf32>, i32 -> vector<8x512xf32>
    %801 = arith.andi %6, %8 : vector<1x512xi1>
    %802 = arith.andi %801, %14 : vector<1x512xi1>
    %cst_301 = arith.constant 0.000000e+00 : f32
    %803 = vector.shape_cast %802 : vector<1x512xi1> to vector<1x512xi1>
    %804 = vector.broadcast %803 : vector<1x512xi1> to vector<8x512xi1>
    %805 = vector.broadcast %cst_301 : f32 to vector<8x512xf32>
    %806 = arith.select %804, %800, %805 : vector<8x512xi1>, vector<8x512xf32>
    %c449_i32_302 = arith.constant 449 : i32
    %807 = tpu.dynamic_rotate %655 by %c449_i32_302 dim 1 : vector<8x512xf32>, i32 -> vector<8x512xf32>
    %808 = arith.andi %6, %12 : vector<1x512xi1>
    %cst_303 = arith.constant 0.000000e+00 : f32
    %809 = vector.shape_cast %808 : vector<1x512xi1> to vector<1x512xi1>
    %810 = vector.broadcast %809 : vector<1x512xi1> to vector<8x512xi1>
    %811 = vector.broadcast %cst_303 : f32 to vector<8x512xf32>
    %812 = arith.select %810, %807, %811 : vector<8x512xi1>, vector<8x512xf32>
    %813 = tpu.concatenate %806, %812 in 0 : vector<8x512xf32>, vector<8x512xf32> -> vector<16x512xf32>
    %814 = arith.truncf %813 : vector<16x512xf32> to vector<16x512xbf16>
    %c160_304 = arith.constant 160 : index
    %c0_305 = arith.constant 0 : index
    %815 = vector.load %arg10[%c160_304, %c0_305] : memref<224x512xbf16, #tpu.memory_space<vmem>>, vector<16x512xbf16>
    tpu.vector_store %arg10[%c160_304, %c0_305], %814 {strides = array<i32>} : memref<224x512xbf16, #tpu.memory_space<vmem>>, vector<16x512xbf16>,
    %c448_i32_306 = arith.constant 448 : i32
    %816 = tpu.dynamic_rotate %655 by %c448_i32_306 dim 1 : vector<8x512xf32>, i32 -> vector<8x512xf32>
    %cst_307 = arith.constant 0.000000e+00 : f32
    %817 = vector.shape_cast %6 : vector<1x512xi1> to vector<1x512xi1>
    %818 = vector.broadcast %817 : vector<1x512xi1> to vector<8x512xi1>
    %819 = vector.broadcast %cst_307 : f32 to vector<8x512xf32>
    %820 = arith.select %818, %816, %819 : vector<8x512xi1>, vector<8x512xf32>
    %c447_i32_308 = arith.constant 447 : i32
    %821 = tpu.dynamic_rotate %655 by %c447_i32_308 dim 1 : vector<8x512xf32>, i32 -> vector<8x512xf32>
    %822 = arith.andi %6, %14 : vector<1x512xi1>
    %cst_309 = arith.constant 0.000000e+00 : f32
    %823 = vector.shape_cast %822 : vector<1x512xi1> to vector<1x512xi1>
    %824 = vector.broadcast %823 : vector<1x512xi1> to vector<8x512xi1>
    %825 = vector.broadcast %cst_309 : f32 to vector<8x512xf32>
    %826 = arith.select %824, %821, %825 : vector<8x512xi1>, vector<8x512xf32>
    %827 = tpu.concatenate %820, %826 in 0 : vector<8x512xf32>, vector<8x512xf32> -> vector<16x512xf32>
    %828 = arith.truncf %827 : vector<16x512xf32> to vector<16x512xbf16>
    %c176_310 = arith.constant 176 : index
    %c0_311 = arith.constant 0 : index
    %829 = vector.load %arg10[%c176_310, %c0_311] : memref<224x512xbf16, #tpu.memory_space<vmem>>, vector<16x512xbf16>
    tpu.vector_store %arg10[%c176_310, %c0_311], %828 {strides = array<i32>} : memref<224x512xbf16, #tpu.memory_space<vmem>>, vector<16x512xbf16>,
    %c441_i32_312 = arith.constant 441 : i32
    %830 = tpu.dynamic_rotate %655 by %c441_i32_312 dim 1 : vector<8x512xf32>, i32 -> vector<8x512xf32>
    %831 = arith.andi %6, %10 : vector<1x512xi1>
    %832 = arith.andi %831, %12 : vector<1x512xi1>
    %cst_313 = arith.constant 0.000000e+00 : f32
    %833 = vector.shape_cast %832 : vector<1x512xi1> to vector<1x512xi1>
    %834 = vector.broadcast %833 : vector<1x512xi1> to vector<8x512xi1>
    %835 = vector.broadcast %cst_313 : f32 to vector<8x512xf32>
    %836 = arith.select %834, %830, %835 : vector<8x512xi1>, vector<8x512xf32>
    %c440_i32_314 = arith.constant 440 : i32
    %837 = tpu.dynamic_rotate %655 by %c440_i32_314 dim 1 : vector<8x512xf32>, i32 -> vector<8x512xf32>
    %838 = arith.andi %6, %10 : vector<1x512xi1>
    %cst_315 = arith.constant 0.000000e+00 : f32
    %839 = vector.shape_cast %838 : vector<1x512xi1> to vector<1x512xi1>
    %840 = vector.broadcast %839 : vector<1x512xi1> to vector<8x512xi1>
    %841 = vector.broadcast %cst_315 : f32 to vector<8x512xf32>
    %842 = arith.select %840, %837, %841 : vector<8x512xi1>, vector<8x512xf32>
    %843 = tpu.concatenate %836, %842 in 0 : vector<8x512xf32>, vector<8x512xf32> -> vector<16x512xf32>
    %844 = arith.truncf %843 : vector<16x512xf32> to vector<16x512xbf16>
    %c192_316 = arith.constant 192 : index
    %c0_317 = arith.constant 0 : index
    %845 = vector.load %arg10[%c192_316, %c0_317] : memref<224x512xbf16, #tpu.memory_space<vmem>>, vector<16x512xbf16>
    tpu.vector_store %arg10[%c192_316, %c0_317], %844 {strides = array<i32>} : memref<224x512xbf16, #tpu.memory_space<vmem>>, vector<16x512xbf16>,
    %c439_i32_318 = arith.constant 439 : i32
    %846 = tpu.dynamic_rotate %655 by %c439_i32_318 dim 1 : vector<8x512xf32>, i32 -> vector<8x512xf32>
    %847 = arith.andi %6, %10 : vector<1x512xi1>
    %848 = arith.andi %847, %14 : vector<1x512xi1>
    %cst_319 = arith.constant 0.000000e+00 : f32
    %849 = vector.shape_cast %848 : vector<1x512xi1> to vector<1x512xi1>
    %850 = vector.broadcast %849 : vector<1x512xi1> to vector<8x512xi1>
    %851 = vector.broadcast %cst_319 : f32 to vector<8x512xf32>
    %852 = arith.select %850, %846, %851 : vector<8x512xi1>, vector<8x512xf32>
    %cst_320 = arith.constant 0.000000e+00 : f32
    %853 = vector.broadcast %cst_320 : f32 to vector<8x512xf32>
    %854 = tpu.concatenate %852, %853 in 0 : vector<8x512xf32>, vector<8x512xf32> -> vector<16x512xf32>
    %855 = arith.truncf %854 : vector<16x512xf32> to vector<16x512xbf16>
    %c208_321 = arith.constant 208 : index
    %c0_322 = arith.constant 0 : index
    %856 = vector.load %arg10[%c208_321, %c0_322] : memref<224x512xbf16, #tpu.memory_space<vmem>>, vector<16x512xbf16>
    tpu.vector_store %arg10[%c208_321, %c0_322], %855 {strides = array<i32>} : memref<224x512xbf16, #tpu.memory_space<vmem>>, vector<16x512xbf16>,
    %c0_323 = arith.constant 0 : index
    %c0_324 = arith.constant 0 : index
    %857 = vector.load %arg10[%c0_323, %c0_324] : memref<224x512xbf16, #tpu.memory_space<vmem>>, vector<224x512xbf16>
    %c0_325 = arith.constant 0 : index
    %c0_326 = arith.constant 0 : index
    %858 = vector.load %arg6[%c0_325, %c0_326] : memref<8x224xbf16, #tpu.memory_space<vmem>>, vector<8x224xbf16>
    %cst_327 = arith.constant dense<0.000000e+00> : vector<8x512xf32>
    %859 = tpu.matmul %858, %857, %cst_327 {dimension_numbers = #tpu.dot_dimension_numbers<[1], [0], [0], [1], [0, 0, 1, 1], [], []>} : vector<8x224xbf16>, vector<224x512xbf16>, vector<8x512xf32> -> vector<8x512xf32>
    %c0_328 = arith.constant 0 : index
    %c3 = arith.constant 3 : index
    %860 = vector.load %arg7[%c0_328, %c3] : memref<8x4xf32, #tpu.memory_space<vmem>>, vector<8x1xf32>
    %861 = vector.broadcast %860 : vector<8x1xf32> to vector<8x512xf32>
    %862 = arith.addf %859, %861 : vector<8x512xf32>
    %863 = vector.extract_strided_slice %862 {offsets = [0, 0], sizes = [1, 512], strides = [1, 1]} : vector<8x512xf32> to vector<1x512xf32>
    %c0_329 = arith.constant 0 : index
    %c0_330 = arith.constant 0 : index
    %c0_331 = arith.constant 0 : index
    %864 = vector.load %arg9[%c0_329, %c0_330, %c0_331] : memref<1x1x512xf32, #tpu.memory_space<vmem>>, vector<1x1x512xf32>
    %865 = vector.shape_cast %864 : vector<1x1x512xf32> to vector<1x512xf32>
    %866 = vector.shape_cast %863 : vector<1x512xf32> to vector<1x1x512xf32>
    tpu.vector_store %arg9[%c0_329, %c0_330, %c0_331], %866 {strides = array<i32>} : memref<1x1x512xf32, #tpu.memory_space<vmem>>, vector<1x1x512xf32>,
    return
  }
  func.func @transform_0(%arg0: i32) -> (i32, i32, i32) {
    %c0_i32 = arith.constant 0 : i32
    %c0_i32_0 = arith.constant 0 : i32
    %c0_i32_1 = arith.constant 0 : i32
    return %arg0, %c0_i32, %c0_i32_0 : i32, i32, i32
  }
  func.func @transform_1(%arg0: i32) -> (i32, i32) {
    %c0_i32 = arith.constant 0 : i32
    %c0_i32_0 = arith.constant 0 : i32
    %c0_i32_1 = arith.constant 0 : i32
    return %c0_i32, %c0_i32_0 : i32, i32
  }
  func.func @transform_2(%arg0: i32) -> (i32, i32) {
    %c0_i32 = arith.constant 0 : i32
    %c0_i32_0 = arith.constant 0 : i32
    %c0_i32_1 = arith.constant 0 : i32
    return %c0_i32, %c0_i32_0 : i32, i32
  }
  func.func @transform_3(%arg0: i32) -> (i32, i32) {
    %c0_i32 = arith.constant 0 : i32
    %c0_i32_0 = arith.constant 0 : i32
    %c0_i32_1 = arith.constant 0 : i32
    return %c0_i32, %c0_i32_0 : i32, i32
  }
  func.func @transform_4(%arg0: i32) -> (i32, i32) {
    %c0_i32 = arith.constant 0 : i32
    %c0_i32_0 = arith.constant 0 : i32
    %c0_i32_1 = arith.constant 0 : i32
    return %c0_i32, %c0_i32_0 : i32, i32
  }
  func.func @transform_5(%arg0: i32) -> (i32, i32) {
    %c0_i32 = arith.constant 0 : i32
    %c0_i32_0 = arith.constant 0 : i32
    %c0_i32_1 = arith.constant 0 : i32
    return %c0_i32, %c0_i32_0 : i32, i32
  }
  func.func @transform_6(%arg0: i32) -> (i32, i32) {
    %c0_i32 = arith.constant 0 : i32
    %c0_i32_0 = arith.constant 0 : i32
    %c0_i32_1 = arith.constant 0 : i32
    return %c0_i32, %c0_i32_0 : i32, i32
  }
  func.func @transform_7(%arg0: i32) -> i32 {
    %c0_i32 = arith.constant 0 : i32
    %c0_i32_0 = arith.constant 0 : i32
    return %c0_i32 : i32
  }
  func.func @transform_8(%arg0: i32) -> (i32, i32, i32) {
    %c0_i32 = arith.constant 0 : i32
    %c0_i32_0 = arith.constant 0 : i32
    %c0_i32_1 = arith.constant 0 : i32
    return %arg0, %c0_i32, %c0_i32_0 : i32, i32, i32
  }
}

</mosaic_0001>

<bundles_post_ra>
// kernel: sigmanet_forward.1
= control target key start
LH: loop header
LB: loop body
LE: loop exit
PB: predicated region body
PF: predicated region fallthrough
CT: control target
= control target key end

     0   :  { %13 = vsyncpa [#allocation4], 0  ;;  %s7968_s27 = smov 0   ;;  %s10900_s0 = inlined_call_operand.vmem [shape: f32[2,8,512], index: 0, kind: input, shape index: {}]   ;;  %s10901_s1 = inlined_call_operand.vmem [shape: s32[3,512], index: 1, kind: input, shape index: {}]   ;;  %s10902_s2 = inlined_call_operand.vmem [shape: bf16[8,224], index: 2, kind: input, shape index: {}]   ;;  %s10903_s3 = inlined_call_operand.vmem [shape: bf16[8,224], index: 3, kind: input, shape index: {}]   ;;  %s10904_s4 = inlined_call_operand.vmem [shape: bf16[8,224], index: 4, kind: input, shape index: {}]   ;;  %s10905_s5 = inlined_call_operand.vmem [shape: bf16[8,224], index: 5, kind: input, shape index: {}]   ;;  %s10906_s6 = inlined_call_operand.vmem [shape: f32[8,4], index: 6, kind: input, shape index: {}]   ;;  %s10907_s7 = inlined_call_operand.vmem [shape: f32[3], index: 7, kind: input, shape index: {}]   ;;  %s10908_s8 = inlined_call_operand.vmem [shape: f32[2,1,512], index: 8, kind: output, shape index: {}]  }
   0x1 LB: > { %s5597_s28 = sadd.s32 4294967295, %s7896_s27   ;;  %p5599_p0 = scmp.ge.s32.totalorder %s7896_s27, 1  ;;  %s7896_s27 = sphi %s7968_s27, %s19_s27  }
   0x2   : > { %p223_p1 = scmp.lt.s32.totalorder %s7896_s27, 3  ;;  %s254_s9 = sshll.u32 %s10907_s7, 4  ;;  %s255_s9 = int_to_ptr.vmem [resolvable:$true] %s254_s9 }
   0x3   : > { %p7142_p3 = scmp.eq.s32.totalorder %s5597_s28, 0  ;;  %s7871_s11 = scalar_lea.vmem %s255_s9, 16 }
   0x4   : > { %p7979_p2 = pnand %p5599_p0, %p223_p1  ;;  %p7872_p6 = scmp.ne.s32.totalorder %s255_s9, %s7871_s11 }
   0x5   : > { %p7879_p10 = scmp.lt.s32.totalorder %s255_s9, %s255_s9  ;;  %p7880_p11 = scmp.lt.s32.totalorder %s7871_s11, %s7871_s11 }
   0x6   : > { %p7138_p4 = pneg %p7979_p2 }
   0x7   : > { %p7881_p12 = por %p7880_p11, %p7879_p10 }
   0x8   : > { %p7139_p5 = pnand %p7142_p3, %p7138_p4 }
   0xa   : > { %p7873_p7 = pneg %p7139_p5 }
   0xc   : > { %p7874_p8 = pnand %p7873_p7, %p7872_p6 }
   0xe   : > { %p7875_p9 = pneg %p7874_p8 }
  0x10   : > { %p7882_p13 = pnand %p7881_p12, %p7875_p9 }
  0x12   : > { %7885 = shalt.err (!%p7882_p13)
}
  0x13   : > { %s7898_s12 = smov [#allocation3]   ;;  %275 = sbr.rel (%p7979_p2) target bundleno = 1746 (0x6d2), region = 52 }
  0x14   : > { %7141 = dma.vmem_to_smem (!%p7139_p5), %s255_s9, 16, %s7898_s12, [#allocation4]  }
  0x18   : > { %7891 = dma.done.wait (%p7142_p3), [#allocation4], 16  }
  0x19   : > { %7893 = vsyncadd (%p7142_p3), [#allocation4], 4294967280 }
  0x1a   : > { %281 = sfence }
  0x1b   : > { %p309_p0 = scmp.lt.s32.totalorder %s5597_s28, 1  ;;  %v10953_v0 = vmov 0   ;;  %s7900_s17 = smov 121   ;;  %v1676_v7 = vld [vmem:[%s10906_s6] sm:$0xff]  ;;  %vm10919_vm0 = vcmask 785408   ;;  %v10952_v12 = vlaneseq  ;;  %v11140_v61 = vmov 0 }
  0x1c   : > { %7347 = vset.pattern.permute.xlu0 %v10953_v0  ;;  %s7901_s18 = smov 127   ;;  %s7902_s19 = smov 1   ;;  %v1675_v8 = vld [vmem:[%s10902_s2] sm:$0xff]  ;;  %v11151_v34 = vmov 0  ;;  %v11153_v35 = vmov 0  ;;  %v11158_v38 = vmov 0 }
  0x1d   : > { %s12084_s28 = smov (!%p309_p0, %s5597_s28), 1  ;;  %s7903_s20 = smov 8   ;;  %v5666_v9 = vcombine.high %v1675_v8, %v1675_v8  ;;  %v8054_v10 = vld [vmem:[%s10901_s1 + $0x1] ss:$4 sm:$0xf]  ;;  %v8064_v13 = vshrl.u32 %v10952_v12, 7 }
  0x1e   : > { %s6077_s13 = sshll.u32 %s12084_s28, 5  ;;  %s7904_s21 = smov 7   ;;  %v8059_v11 = vld [vmem:[%s10901_s1 + $0x2] ss:$4 sm:$0xf]  ;;  %vm10920_vm1 = vcmp.lt.s32.totalorder %v8054_v10, 7 }
  0x1f   : > { %s313_s16 = scalar_lea.vmem %s10900_s0, %s6077_s13  ;;  %s7905_s22 = smov 55   ;;  %5723 = vmatprep.mubr.msk.bf16.mxu0 %vm10919_vm0, %v5666_v9  ;;  %5724 = vmatprep.mubr.msk.bf16.mxu1 %vm10919_vm0, %v5666_v9  ;;  %vm10924_vm2 = vcmp.ge.s32.totalorder %v8059_v11, 1  ;;  %11113 = vst [vmem:[#allocation6_spill] sm:$0xff] %v8064_v13  ;;  %vm10922_vm3 = vcmp.lt.s32.totalorder %v8059_v11, 7  ;;  %v8072_v14 = vsub.s32 1, %v8064_v13  ;;  %v8075_v15 = vsub.s32 3, %v8064_v13 }
  0x20   : > { %v7997_v1 = vld [vmem:[%s313_s16] sm:$0xff]  ;;  %v7999_v2 = vld [vmem:[%s313_s16 + $0x8] sm:$0xff]  ;;  %v8001_v3 = vld [vmem:[%s313_s16 + $0x10] sm:$0xff]  ;;  %s7906_s23 = smov 9   ;;  %s7907_s24 = smov 57   ;;  %v1049_v16 = vsel %vm10922_vm3, 1, %v10953_v0 }
  0x21   : > { %v7187_v4 = vpack.i.bf16 %v7999_v2, %v7997_v1  ;;  %v8005_v5 = vld [vmem:[%s313_s16 + $0x18] sm:$0xff]  ;;  %s7908_s25 = smov 56   ;;  %s7909_s26 = smov 64   ;;  %vm1087_vm4 = vmand %vm10920_vm1, %vm10924_vm2  ;;  %v8084_v18 = vld [vmem:[%s10901_s1] ss:$4 sm:$0xf]  ;;  %v1057_v22 = vrot.slane %v1049_v16, %v8072_v14  ;;  %v1065_v25 = vrot.slane %v1049_v16, %v8075_v15 }
  0x22   : > { %v7192_v6 = vpack.i.bf16 %v8005_v5, %v8001_v3  ;;  %s11094_s29 = smov 63   ;;  %s11084_s30 = smov 71   ;;  %v1088_v17 = vsel %vm1087_vm4, 1, %v10953_v0  ;;  %v8087_v19 = vand.u32 127, %v10952_v12  ;;  %v8090_v20 = vsub.s32 0, %v8064_v13 }
  0x23   : > { %7188 = vrot.lane.b32.xlu1 %v7187_v4, %s7900_s17  ;;  %7178 = vrot.lane.b32.xlu0 %v7187_v4, %s7901_s18  ;;  %s10917_s9 = smov 65   ;;  %s10909_s10 = smov 73   ;;  %v8093_v21 = vsub.s32 2, %v8064_v13  ;;  %vm10921_vm5 = vcmp.ge.s32.totalorder %v8084_v18, 1  ;;  %vm10923_vm6 = vcmp.ge.s32.totalorder %v8054_v10, 1  ;;  %v1096_v23 = vrot.slane %v1088_v17, %v8072_v14 }
  0x24   : > { %s10913_s11 = smov 72   ;;  %s10911_s12 = smov 120   ;;  %v983_v24 = vsel %vm10924_vm2, 1, %v10953_v0  ;;  %v1104_v26 = vrot.slane %v1088_v17, %v8075_v15  ;;  %vm8108_vm7 = vmand %vm10921_vm5, %vm10920_vm1  ;;  %vm10925_vm8 = vcmp.lt.s32.totalorder %v8087_v19, 127  ;;  %v1053_v28 = vrot.slane %v1049_v16, %v8090_v20 }
  0x25   : > { %s10915_s13 = smov 119   ;;  %v1092_v29 = vrot.slane %v1088_v17, %v8090_v20  ;;  %v1061_v30 = vrot.slane %v1049_v16, %v8093_v21  ;;  %vm916_vm9 = vmand %vm10923_vm6, %vm10922_vm3  ;;  %v1100_v31 = vrot.slane %v1088_v17, %v8093_v21  ;;  %v991_v32 = vrot.slane %v983_v24, %v8072_v14  ;;  %s11634_s14 = smov 65  }
  0x26   : > { %v999_v33 = vrot.slane %v983_v24, %v8075_v15  ;;  %vm8124_vm11 = vcmp.eq.s32.totalorder %v1057_v22, 1  ;;  %vm8128_vm12 = vcmp.eq.s32.totalorder %v1096_v23, 1  ;;  %v987_v36 = vrot.slane %v983_v24, %v8090_v20  ;;  %vm8142_vm13 = vmand %vm8108_vm7, %vm10922_vm3  ;;  %s11635_s15 = smov 73   ;;  %s11636_s16 = smov 72  }
  0x27   : > { %7193 = vrot.lane.b32.xlu1 %v7192_v6, %s7900_s17  ;;  %7183 = vrot.lane.b32.xlu0 %v7192_v6, %s7901_s18  ;;  %v8136_v37 = vsel %vm10923_vm6, 1, %v10953_v0  ;;  %vm8146_vm14 = vcmp.eq.s32.totalorder %v1065_v25, 1  ;;  %vm8150_vm15 = vcmp.eq.s32.totalorder %v1104_v26, 1  ;;  %v995_v41 = vrot.slane %v983_v24, %v8093_v21  ;;  %vm811_vm4 = vmand %vm10923_vm6, %vm10924_vm2 }
  0x28   : > { %v8156_v42 = vsel %vm916_vm9, 1, %v10953_v0  ;;  %vm8162_vm0 = vcmp.eq.s32.totalorder %v1053_v28, 1  ;;  %vm8166_vm1 = vcmp.eq.s32.totalorder %v1092_v29, 1  ;;  %vm8170_vm5 = vcmp.eq.s32.totalorder %v1061_v30, 1 }
  0x29   : > { %vm8174_vm3 = vcmp.eq.s32.totalorder %v1100_v31, 1  ;;  %vm8178_vm9 = vcmp.eq.s32.totalorder %v991_v32, 1  ;;  %vm8182_vm6 = vcmp.eq.s32.totalorder %v999_v33, 1  ;;  %v886_v49 = vrot.slane %v8136_v37, %v8072_v14 }
  0x2a   : > { %vm8189_vm10 = vcmp.eq.s32.totalorder %v987_v36, 1  ;;  %v925_v53 = vrot.slane %v8156_v42, %v8072_v14  ;;  %v894_v54 = vrot.slane %v8136_v37, %v8075_v15  ;;  %v8200_v55 = vsel %vm8142_vm13, 1, %v10953_v0 }
  0x2b   : > { %7203 = vrot.lane.b32.xlu1 %v7192_v6, %s7902_s19  ;;  %7198 = vrot.lane.b32.xlu0 %v7187_v4, %s7902_s19  ;;  %v8203_v56 = vsel %vm811_vm4, 1, %v10953_v0  ;;  %vm8205_vm2 = vcmp.eq.s32.totalorder %v995_v41, 1  ;;  %v933_v62 = vrot.slane %v8156_v42, %v8075_v15  ;;  %v882_v63 = vrot.slane %v8136_v37, %v8090_v20  ;;  %vm8227_vm4 = vmpackc.low %vm8128_vm12, %vm8124_vm11 }
  0x2c   : > { %v11141_v61 = vsel %vm8205_vm2, 4294967295, %v11140_v61  ;;  %vm11142_vm13 = vcmp.lt.s32.totalorder %v8087_v19, 121  ;;  %v921_v8 = vrot.slane %v8156_v42, %v8090_v20  ;;  %v929_v9 = vrot.slane %v8156_v42, %v8093_v21  ;;  %vm8243_vm11 = vmpackc.low %vm8150_vm15, %vm8146_vm14 }
  0x2d   : > { %v11143_v22 = vmov 0  ;;  %v781_v23 = vrot.slane %v8200_v55, %v8072_v14  ;;  %v820_v24 = vrot.slane %v8203_v56, %v8072_v14  ;;  %v789_v25 = vrot.slane %v8200_v55, %v8075_v15 }
  0x2e   : > { %v11144_v22 = vsel %vm8227_vm4, 4294967295, %v11143_v22  ;;  %v777_v26 = vrot.slane %v8200_v55, %v8090_v20  ;;  %v11146_v32 = vmov 0  ;;  %vm8247_vm12 = vcmp.eq.s32.totalorder %v886_v49, 1 }
  0x2f   : > { %7213 = vrot.lane.b32.xlu1 %v7192_v6, %s7903_s20  ;;  %7208 = vrot.lane.b32.xlu0 %v7187_v4, %s7903_s20  ;;  %11145 = vst [vmem:[#allocation7_spill] sm:$0xff] %v11144_v22  ;;  %v11147_v32 = vsel %vm8243_vm11, 4294967295, %v11146_v32  ;;  %v11149_v33 = vmov 0  ;;  %vm8263_vm14 = vcmp.eq.s32.totalorder %v894_v54, 1  ;;  %vm8267_vm15 = vcmp.eq.s32.totalorder %v933_v62, 1 }
  0x30   : > { %11148 = vst [vmem:[#allocation8_spill] sm:$0xff] %v11147_v32  ;;  %v11150_v33 = vsel %vm8247_vm12, 4294967295, %v11149_v33  ;;  %v11159_v38 = vsel %vm8267_vm15, 4294967295, %v11158_v38  ;;  %v828_v39 = vrot.slane %v8203_v56, %v8075_v15  ;;  %v816_v40 = vrot.slane %v8203_v56, %v8090_v20 }
  0x31   : > { %v785_v41 = vrot.slane %v8200_v55, %v8093_v21  ;;  %vm11164_vm12 = vcmp.ge.s32.totalorder %v8059_v11, 1  ;;  %v11175_v46 = vmov 0  ;;  %v11190_v27 = vmov 0 }
  0x32   : > { %vm8290_vm2 = vmand %vm8108_vm7, %vm11164_vm12  ;;  %vm11185_vm12 = vcmp.lt.s32.totalorder %v8087_v19, 1  ;;  %v11194_v52 = vmov 0  ;;  %v11316_v13 = vmov 0  ;;  %v11434_v22 = vmov 0 }
  0x33   : > { %7223 = vrot.lane.b32.xlu1 %v7192_v6, %s7904_s21  ;;  %7218 = vrot.lane.b32.xlu0 %v7187_v4, %s7904_s21 }
  0x37   : > { %7233 = vrot.lane.b32.xlu1 %v7192_v6, %s7905_s22  ;;  %7228 = vrot.lane.b32.xlu0 %v7187_v4, %s7905_s22 }
  0x3b   : > { %7243 = vrot.lane.b32.xlu1 %v7192_v6, %s7906_s23  ;;  %7238 = vrot.lane.b32.xlu0 %v7187_v4, %s7906_s23 }
  0x3f   : > { %7253 = vrot.lane.b32.xlu1 %v7192_v6, %s7907_s24  ;;  %7248 = vrot.lane.b32.xlu0 %v7187_v4, %s7907_s24 }
  0x43   : > { %7263 = vrot.lane.b32.xlu1 %v7192_v6, %s7908_s25  ;;  %7258 = vrot.lane.b32.xlu0 %v7187_v4, %s7908_s25 }
  0x47   : > { %7273 = vrot.lane.b32.xlu1 %v7192_v6, %s7909_s26  ;;  %7268 = vrot.lane.b32.xlu0 %v7187_v4, %s7909_s26 }
  0x4b   : > { %7283 = vrot.lane.b32.xlu1 %v7192_v6, %s11094_s29  ;;  %7278 = vrot.lane.b32.xlu0 %v7187_v4, %s11094_s29 }
  0x4f   : > { %7293 = vrot.lane.b32.xlu1 %v7192_v6, %s11084_s30  ;;  %7288 = vrot.lane.b32.xlu0 %v7187_v4, %s11084_s30 }
  0x53   : > { %7303 = vrot.lane.b32.xlu1 %v7192_v6, %s10917_s9  ;;  %7298 = vrot.lane.b32.xlu0 %v7187_v4, %s10917_s9  ;;  %s11637_s9 = smov 120  }
  0x57   : > { %7313 = vrot.lane.b32.xlu1 %v7192_v6, %s10909_s10  ;;  %7308 = vrot.lane.b32.xlu0 %v7187_v4, %s10909_s10  ;;  %s11638_s10 = smov 119  }
  0x5b   : > { %7323 = vrot.lane.b32.xlu1 %v7192_v6, %s10913_s11  ;;  %7318 = vrot.lane.b32.xlu0 %v7187_v4, %s10913_s11  ;;  %s11785_s11 = smov 71  }
  0x5f   : > { %7333 = vrot.lane.b32.xlu1 %v7192_v6, %s10911_s12  ;;  %7328 = vrot.lane.b32.xlu0 %v7187_v4, %s10911_s12 }
  0x63   : > { %7343 = vrot.lane.b32.xlu1 %v7192_v6, %s10915_s13  ;;  %7338 = vrot.lane.b32.xlu0 %v7187_v4, %s10915_s13  ;;  %v890_v4 = vrot.slane %v8136_v37, %v8093_v21  ;;  %v11156_v37 = vmov 0  ;;  %s2054_s13 = sld [smem:[#allocation3]] }
  0x64   : > { %v11157_v37 = vsel %vm8263_vm14, 4294967295, %v11156_v37 }
  0x67   : > { %1679 = vperm.xlu0 %7347, %v1676_v7  }
  0x95   : > { %v7189_v50 = vpop.permute.xlu1 %7188  ;;  %v7179_v51 = vpop.permute.xlu0 %7178 }
  0x96   : > { %v7191_v57 = vunpack.i.h.bf16 %v7189_v50  ;;  %v7190_v58 = vunpack.i.l.bf16 %v7189_v50  ;;  %v7181_v59 = vunpack.i.h.bf16 %v7179_v51  ;;  %v7180_v60 = vunpack.i.l.bf16 %v7179_v51 }
  0x98   : > { %v1047_v6 = vsel %vm10925_vm8, %v7180_v60, %v7181_v59  ;;  %v1085_v7 = vsel %vm11142_vm13, %v7190_v58, %v7191_v57  ;;  %vm8251_vm13 = vcmp.eq.s32.totalorder %v925_v53, 1  ;;  %vm8259_vm8 = vmpackc.low %vm8166_vm1, %vm8162_vm0  ;;  %vm11160_vm0 = vcmp.lt.s32.totalorder %v8087_v19, 127 }
  0x99   : > { %v7194_v16 = vpop.permute.xlu1 %7193  ;;  %v7184_v17 = vpop.permute.xlu0 %7183  ;;  %v11152_v34 = vsel %vm8251_vm13, 4294967295, %v11151_v34  ;;  %v11154_v35 = vsel %vm8259_vm8, 4294967295, %v11153_v35  ;;  %v6358_v36 = vpack.c.bf16 %v1085_v7, %v1047_v6  ;;  %vm11161_vm1 = vcmp.lt.s32.totalorder %v8087_v19, 121  ;;  %vm11162_vm14 = vmmov %vm11160_vm0 }
  0x9a   : > { %v7196_v28 = vunpack.i.h.bf16 %v7194_v16  ;;  %v7195_v29 = vunpack.i.l.bf16 %v7194_v16  ;;  %v7186_v30 = vunpack.i.h.bf16 %v7184_v17  ;;  %v7185_v31 = vunpack.i.l.bf16 %v7184_v17  ;;  %11155 = vst [vmem:[#allocation9_spill] sm:$0xff] %v11154_v35  ;;  %vm11163_vm15 = vmmov %vm11161_vm1 }
  0x9b   : > { %vm8311_vm13 = vcmp.eq.s32.totalorder %v921_v8, 1  ;;  %v11280_v8 = vmov 0 }
  0x9c   : > { %v1046_v42 = vsel %vm11160_vm0, %v7181_v59, %v7185_v31  ;;  %v1084_v43 = vsel %vm11161_vm1, %v7191_v57, %v7195_v29  ;;  %v1048_v44 = vsel %vm11162_vm14, %v7186_v30, %v7180_v60  ;;  %v1086_v49 = vsel %vm11163_vm15, %v7196_v28, %v7190_v58  ;;  %vm11167_vm14 = vmmov %vm11161_vm1 }
  0x9d   : > { %v7204_v51 = vpop.permute.xlu1 %7203  ;;  %v7199_v53 = vpop.permute.xlu0 %7198  ;;  %v6355_v54 = vpack.c.bf16 %v1084_v43, %v1046_v42  ;;  %v6433_v57 = vpack.c.bf16 %v1086_v49, %v1048_v44  ;;  %v1045_v59 = vsel %vm11160_vm0, %v7185_v31, %v7186_v30  ;;  %v1083_v58 = vsel %vm11167_vm14, %v7195_v29, %v7196_v28  ;;  %vm8302_vm15 = vmpackc.low %vm8174_vm3, %vm8170_vm5 }
  0x9e   : > { %v11168_v60 = vmov 0  ;;  %vm8307_vm1 = vcmp.eq.s32.totalorder %v882_v63, 1  ;;  %v7206_v7 = vunpack.i.h.bf16 %v7204_v51  ;;  %v7205_v16 = vunpack.i.l.bf16 %v7204_v51 }
  0x9f   : > { %v11169_v60 = vsel %vm8302_vm15, 4294967295, %v11168_v60  ;;  %v7201_v17 = vunpack.i.h.bf16 %v7199_v53  ;;  %v7200_v45 = vunpack.i.l.bf16 %v7199_v53  ;;  %vm10926_vm0 = vmmov 1   ;;  %6356 = vmatprep.subr.msk.bf16.mxu0 %vm8227_vm4, %v6355_v54  ;;  %6434 = vmatprep.subr.msk.bf16.mxu1 %vm8243_vm11, %v6433_v57 }
  0xa0   : > { %11170 = vst [vmem:[#allocation10_spill] sm:$0xff] %v11169_v60  ;;  %vm8318_vm3 = vmpackc.low %vm10926_vm0, %vm8178_vm9  ;;  %vm8322_vm5 = vcmp.eq.s32.totalorder %v890_v4, 1  ;;  %vm8326_vm14 = vcmp.eq.s32.totalorder %v929_v9, 1  ;;  %v6436_v47 = vpack.c.bf16 %v1083_v58, %v1045_v59  ;;  %v11182_v28 = vmov 0  ;;  %6359 = vmatpush1.bf16.msk.msra.mxu0 %vm8259_vm8, %v6358_v36 }
  0xa1   : > { %v11176_v46 = vsel %vm8318_vm3, 4294967295, %v11175_v46  ;;  %vm8337_vm9 = vmpackc.low %vm10926_vm0, %vm8182_vm6  ;;  %v824_v4 = vrot.slane %v8203_v56, %v8093_v21  ;;  %v8346_v9 = vsel %vm8290_vm2, 1, %v10953_v0  ;;  %v8351_v29 = vsel %vm8108_vm7, 1, %v10953_v0  ;;  %v7214_v42 = vpop.permute.xlu1 %7213  ;;  %v7209_v43 = vpop.permute.xlu0 %7208 }
  0xa2   : > { %11177 = vst [vmem:[#allocation11_spill] sm:$0xff] %v11176_v46  ;;  %v11183_v28 = vsel %vm8337_vm9, 4294967295, %v11182_v28  ;;  %v979_v48 = vsel %vm11185_vm12, %v7205_v16, %v7206_v7  ;;  %vm11186_vm6 = vmmov %vm11185_vm12  ;;  %vm11189_vm2 = vmmov 1   ;;  %6437 = vmatpush1.bf16.msk.msra.mxu1 %vm8302_vm15, %v6436_v47  ;;  %vm11206_vm15 = vcmp.ge.s32.totalorder %v8084_v18, 1 }
  0xa3   : > { %11184 = vst [vmem:[#allocation12_spill] sm:$0xff] %v11183_v28  ;;  %v980_v30 = vsel %vm11186_vm6, %v7201_v17, %v7205_v16  ;;  %vm11187_vm0 = vmmov %vm11186_vm6  ;;  %v6439_v49 = vpack.c.bf16 %v8005_v5, %v979_v48  ;;  %vm8394_vm6 = vcmp.eq.s32.totalorder %v789_v25, 1  ;;  %v11203_v5 = vmov 0 }
  0xa4   : > { %v981_v31 = vsel %vm11187_vm0, %v7200_v45, %v7201_v17  ;;  %vm11188_vm11 = vmmov %vm11187_vm0  ;;  %v6442_v36 = vpack.c.bf16 %v8001_v3, %v980_v30  ;;  %vm8390_vm0 = vcmp.eq.s32.totalorder %v820_v24, 1  ;;  %v676_v3 = vrot.slane %v8346_v9, %v8072_v14 }
  0xa5   : > { %v982_v56 = vsel %vm11188_vm11, %v7206_v7, %v7200_v45  ;;  %vm8366_vm7 = vmpackc.low %vm11189_vm2, %vm8189_vm10  ;;  %v6361_v44 = vpack.c.bf16 %v7999_v2, %v981_v31  ;;  %vm11193_vm11 = vnez %v11141_v61  ;;  %vm8386_vm10 = vcmp.eq.s32.totalorder %v781_v23, 1  ;;  %6440 = vmatprep.subr.msk.bf16.mxu1 %vm8337_vm9, %v6439_v49  ;;  %v7224_v7 = vpop.permute.xlu1 %7223  ;;  %v7219_v16 = vpop.permute.xlu0 %7218 }
  0xa6   : > { %v11191_v27 = vsel %vm8366_vm7, 4294967295, %v11190_v27  ;;  %v6364_v50 = vpack.c.bf16 %v7997_v1, %v982_v56  ;;  %vm8378_vm12 = vmpackc.low %vm11189_vm2, %vm11193_vm11  ;;  %v11201_v1 = vmov 0  ;;  %vm8398_vm2 = vcmp.eq.s32.totalorder %v828_v39, 1 }
  0xa7   : > { %11192 = vst [vmem:[#allocation13_spill] sm:$0xff] %v11191_v27  ;;  %v11195_v52 = vsel %vm8378_vm12, 4294967295, %v11194_v52  ;;  %v11202_v1 = vsel %vm8394_vm6, 4294967295, %v11201_v1  ;;  %v11204_v5 = vsel %vm8398_vm2, 4294967295, %v11203_v5  ;;  %vm11205_vm11 = vcmp.lt.s32.totalorder %v8059_v11, 7  ;;  %6362 = vmatprep.subr.msk.bf16.mxu0 %vm8318_vm3, %v6361_v44  ;;  %6443 = vmatpush1.bf16.msk.msra.mxu1 %vm8378_vm12, %v6442_v36 }
  0xa8   : > { %11196 = vst [vmem:[#allocation14_spill] sm:$0xff] %v11195_v52  ;;  %vm8408_vm8 = vmand %vm11206_vm15, %vm11205_vm11  ;;  %v7216_v23 = vunpack.i.h.bf16 %v7214_v42  ;;  %v7215_v24 = vunpack.i.l.bf16 %v7214_v42  ;;  %v7211_v25 = vunpack.i.h.bf16 %v7209_v43  ;;  %v7210_v53 = vunpack.i.l.bf16 %v7209_v43  ;;  %6365 = vmatpush1.bf16.msk.msra.mxu0 %vm8366_vm7, %v6364_v50 }
  0xa9   : > { %vm8419_vm4 = vcmp.eq.s32.totalorder %v777_v26, 1  ;;  %v11209_v39 = vmov 0  ;;  %vm8423_vm15 = vcmp.eq.s32.totalorder %v816_v40, 1  ;;  %v11211_v54 = vmov 0 }
  0xaa   : > { %v11210_v39 = vsel %vm8419_vm4, 4294967295, %v11209_v39  ;;  %v11212_v54 = vsel %vm8423_vm15, 4294967295, %v11211_v54  ;;  %v714_v57 = vrot.slane %v8351_v29, %v8072_v14  ;;  %v684_v26 = vrot.slane %v8346_v9, %v8075_v15 }
  0xab   : > { %v722_v59 = vrot.slane %v8351_v29, %v8075_v15  ;;  %v672_v40 = vrot.slane %v8346_v9, %v8090_v20  ;;  %vm11213_vm9 = vcmp.ge.s32.totalorder %v8054_v10, 1  ;;  %vm11214_vm7 = vcmp.ge.s32.totalorder %v8084_v18, 1 }
  0xac   : > { %vm8443_vm15 = vmand %vm11214_vm7, %vm11213_vm9  ;;  %vm11217_vm3 = vnez %v11150_v33  ;;  %vm11218_vm11 = vnez %v11152_v34  ;;  %v11219_v17 = vmov 0  ;;  %vm8461_vm9 = vcmp.eq.s32.totalorder %v785_v41, 1 }
  0xad   : > { %vm8453_vm4 = vmpackc.low %vm11218_vm11, %vm11217_vm3  ;;  %v11222_v45 = vmov 0  ;;  %vm8465_vm7 = vcmp.eq.s32.totalorder %v824_v4, 1  ;;  %v11224_v47 = vmov 0  ;;  %v710_v33 = vrot.slane %v8351_v29, %v8090_v20 }
  0xae   : > { %v11220_v17 = vsel %vm8453_vm4, 4294967295, %v11219_v17  ;;  %v11223_v45 = vsel %vm8461_vm9, 4294967295, %v11222_v45  ;;  %v11225_v47 = vsel %vm8465_vm7, 4294967295, %v11224_v47  ;;  %v680_v34 = vrot.slane %v8346_v9, %v8093_v21 }
  0xaf   : > { %11221 = vst [vmem:[#allocation15_spill] sm:$0xff] %v11220_v17  ;;  %vm11226_vm3 = vcmp.ge.s32.totalorder %v8084_v18, 1  ;;  %v8481_v55 = vsel %vm8408_vm8, 1, %v10953_v0  ;;  %v7226_v41 = vunpack.i.h.bf16 %v7224_v7  ;;  %v7225_v4 = vunpack.i.l.bf16 %v7224_v7 }
  0xb0   : > { %v8476_v48 = vsel %vm11226_vm3, 1, %v10953_v0  ;;  %v7221_v30 = vunpack.i.h.bf16 %v7219_v16  ;;  %v7220_v31 = vunpack.i.l.bf16 %v7219_v16  ;;  %vm11227_vm11 = vnez %v11157_v37 }
  0xb1   : > { %vm11228_vm2 = vnez %v11159_v38  ;;  %v11229_v9 = vmov 0  ;;  %vm11232_vm3 = vcmp.lt.s32.totalorder %v8087_v19, 8  ;;  %vm11236_vm6 = vcmp.lt.s32.totalorder %v8059_v11, 7 }
  0xb2   : > { %vm8487_vm12 = vmpackc.low %vm11228_vm2, %vm11227_vm11  ;;  %v874_v56 = vsel %vm11232_vm3, %v7215_v24, %v7216_v23  ;;  %vm11239_vm11 = vcmp.lt.s32.totalorder %v8087_v19, 7  ;;  %v11243_v61 = vmov 0  ;;  %v11246_v16 = vmov 0 }
  0xb3   : > { %v11230_v9 = vsel %vm8487_vm12, 4294967295, %v11229_v9  ;;  %vm11233_vm7 = vmmov %vm11232_vm3  ;;  %v912_v38 = vsel %vm11239_vm11, %v7225_v4, %v7226_v41  ;;  %v718_v6 = vrot.slane %v8351_v29, %v8093_v21  ;;  %v608_v37 = vrot.slane %v8481_v55, %v8072_v14 }
  0xb4   : > { %11231 = vst [vmem:[#allocation16_spill] sm:$0xff] %v11230_v9  ;;  %v875_v42 = vsel %vm11233_vm7, %v7211_v25, %v7215_v24  ;;  %vm11234_vm8 = vmmov %vm11232_vm3  ;;  %v7229_v24 = vpop.permute.xlu0 %7228  ;;  %v616_v51 = vrot.slane %v8481_v55, %v8075_v15  ;;  %v565_v2 = vrot.slane %v8476_v48, %v8090_v20  ;;  %v11372_v28 = vmov 0 }
  0xb5   : > { %v876_v43 = vsel %vm11234_vm8, %v7210_v53, %v7211_v25  ;;  %vm11235_vm9 = vmmov %vm11232_vm3  ;;  %v11529_v9 = vmov 0 }
  0xb6   : > { %v877_v44 = vsel %vm11235_vm9, %v7216_v23, %v7210_v53  ;;  %vm8503_vm2 = vmand %vm8443_vm15, %vm11236_vm6  ;;  %v7234_v23 = vpop.permute.xlu1 %7233  ;;  %v6445_v53 = vpack.c.bf16 %v912_v38, %v874_v56  ;;  %v7230_v56 = vunpack.i.l.bf16 %v7229_v24 }
  0xb7   : > { %vm11240_vm3 = vmmov %vm11239_vm11  ;;  %v8540_v63 = vsel %vm8503_vm2, 1, %v10953_v0  ;;  %v7236_v29 = vunpack.i.h.bf16 %v7234_v23  ;;  %vm8558_vm2 = vcmp.eq.s32.totalorder %v714_v57, 1  ;;  %v11262_v57 = vmov 0 }
  0xb8   : > { %v913_v49 = vsel %vm11240_vm3, %v7221_v30, %v7225_v4  ;;  %vm11241_vm7 = vmmov %vm11240_vm3  ;;  %6446 = vmatprep.subr.msk.bf16.mxu1 %vm8487_vm12, %v6445_v53  ;;  %vm8600_vm11 = vcmp.eq.s32.totalorder %v672_v40, 1  ;;  %vm8604_vm12 = vcmp.eq.s32.totalorder %v710_v33, 1 }
  0xb9   : > { %v914_v50 = vsel %vm11241_vm7, %v7220_v31, %v7221_v30  ;;  %vm11242_vm8 = vmmov %vm11240_vm3  ;;  %v6448_v62 = vpack.c.bf16 %v913_v49, %v875_v42  ;;  %v7235_v30 = vunpack.i.l.bf16 %v7234_v23  ;;  %vm8573_vm7 = vcmp.eq.s32.totalorder %v684_v26, 1 }
  0xba   : > { %v915_v36 = vsel %vm11242_vm8, %v7226_v41, %v7220_v31  ;;  %vm8519_vm6 = vmpackc.low %vm8311_vm13, %vm8307_vm1  ;;  %v6367_v25 = vpack.c.bf16 %v914_v50, %v876_v43  ;;  %v569_v41 = vrot.slane %v8476_v48, %v8072_v14  ;;  %vm11249_vm13 = vcmp.ge.s32.totalorder %v8059_v11, 1  ;;  %v7244_v26 = vpop.permute.xlu1 %7243 }
  0xbb   : > { %v11244_v61 = vsel %vm8519_vm6, 4294967295, %v11243_v61  ;;  %v6370_v7 = vpack.c.bf16 %v915_v36, %v877_v44  ;;  %vm8527_vm9 = vmpackc.low %vm8326_vm14, %vm8322_vm5  ;;  %vm11250_vm1 = vcmp.ge.s32.totalorder %v8084_v18, 1  ;;  %v7231_v31 = vunpack.i.h.bf16 %v7229_v24 }
  0xbc   : > { %11245 = vst [vmem:[#allocation17_spill] sm:$0xff] %v11244_v61  ;;  %v11247_v16 = vsel %vm8527_vm9, 4294967295, %v11246_v16  ;;  %vm8546_vm5 = vmand %vm11250_vm1, %vm11249_vm13  ;;  %6368 = vmatprep.subr.msk.bf16.mxu0 %vm8453_vm4, %v6367_v25  ;;  %vm8554_vm14 = vcmp.eq.s32.totalorder %v676_v3, 1  ;;  %v11257_v44 = vmov 0  ;;  %vm8577_vm8 = vcmp.eq.s32.totalorder %v722_v59, 1  ;;  %6449 = vmatpush1.bf16.msk.msra.mxu1 %vm8527_vm9, %v6448_v62  ;;  %v7239_v59 = vpop.permute.xlu0 %7238 }
  0xbd   : > { %11248 = vst [vmem:[#allocation18_spill] sm:$0xff] %v11247_v16  ;;  %6371 = vmatpush1.bf16.msk.msra.mxu0 %vm8519_vm6, %v6370_v7  ;;  %vm8569_vm3 = vmpackc.low %vm8390_vm0, %vm8386_vm10  ;;  %v11263_v57 = vsel %vm8577_vm8, 4294967295, %v11262_v57  ;;  %vm11264_vm10 = vnez %v11202_v1  ;;  %vm11265_vm0 = vnez %v11204_v5  ;;  %v11266_v49 = vmov 0 }
  0xbe   : > { %v11258_v44 = vsel %vm8569_vm3, 4294967295, %v11257_v44  ;;  %vm8595_vm13 = vmpackc.low %vm11265_vm0, %vm11264_vm10  ;;  %v11269_v50 = vmov 0  ;;  %v11271_v36 = vmov 0  ;;  %v604_v23 = vrot.slane %v8481_v55, %v8090_v20  ;;  %v7254_v12 = vpop.permute.xlu1 %7253 }
  0xbf   : > { %11259 = vst [vmem:[#allocation19_spill] sm:$0xff] %v11258_v44  ;;  %v11267_v49 = vsel %vm8595_vm13, 4294967295, %v11266_v49  ;;  %v11270_v50 = vsel %vm8600_vm11, 4294967295, %v11269_v50  ;;  %v11272_v36 = vsel %vm8604_vm12, 4294967295, %v11271_v36  ;;  %v8617_v40 = vsel %vm8546_vm5, 1, %v10953_v0 }
  0xc0   : > { %11268 = vst [vmem:[#allocation20_spill] sm:$0xff] %v11267_v49  ;;  %v7246_v24 = vunpack.i.h.bf16 %v7244_v26  ;;  %v7245_v25 = vunpack.i.l.bf16 %v7244_v26  ;;  %v7241_v33 = vunpack.i.h.bf16 %v7239_v59  ;;  %v7240_v53 = vunpack.i.l.bf16 %v7239_v59  ;;  %v7249_v5 = vpop.permute.xlu0 %7248 }
  0xc1   : > { %vm11273_vm10 = vnez %v11210_v39  ;;  %vm11274_vm0 = vnez %v11212_v54  ;;  %v11275_v7 = vmov 0  ;;  %vm8627_vm9 = vcmp.eq.s32.totalorder %v680_v34, 1 }
  0xc2   : > { %vm8623_vm1 = vmpackc.low %vm11274_vm0, %vm11273_vm10  ;;  %v11278_v62 = vmov 0  ;;  %vm8631_vm6 = vcmp.eq.s32.totalorder %v718_v6, 1  ;;  %vm11282_vm5 = vcmp.lt.s32.totalorder %v8087_v19, 55  ;;  %vm11294_vm11 = vnez %v11223_v45 }
  0xc3   : > { %v11276_v7 = vsel %vm8623_vm1, 4294967295, %v11275_v7  ;;  %v11279_v62 = vsel %vm8627_vm9, 4294967295, %v11278_v62  ;;  %v11281_v8 = vsel %vm8631_vm6, 4294967295, %v11280_v8  ;;  %v8637_v26 = vsel %vm11282_vm5, %v7235_v30, %v7236_v29  ;;  %vm11283_vm4 = vmmov %vm11282_vm5 }
  0xc4   : > { %11277 = vst [vmem:[#allocation21_spill] sm:$0xff] %v11276_v7  ;;  %v8641_v39 = vsel %vm11283_vm4, %v7231_v31, %v7235_v30  ;;  %vm11284_vm10 = vmmov %vm11283_vm4  ;;  %vm11286_vm9 = vcmp.lt.s32.totalorder %v8054_v10, 7  ;;  %vm11287_vm6 = vcmp.lt.s32.totalorder %v8084_v18, 7  ;;  %vm11290_vm5 = vcmp.lt.s32.totalorder %v8087_v19, 9 }
  0xc5   : > { %v8645_v54 = vsel %vm11284_vm10, %v7230_v56, %v7231_v31  ;;  %vm11285_vm0 = vmmov %vm11283_vm4  ;;  %v807_v30 = vsel %vm11290_vm5, %v7245_v25, %v7246_v24  ;;  %vm11295_vm8 = vnez %v11225_v47  ;;  %v503_v47 = vrot.slane %v8617_v40, %v8072_v14 }
  0xc6   : > { %v8649_v34 = vsel %vm11285_vm0, %v7236_v29, %v7230_v56  ;;  %vm8655_vm12 = vmand %vm11287_vm6, %vm11286_vm9  ;;  %v11296_v56 = vmov 0  ;;  %vm11299_vm9 = vcmp.ge.s32.totalorder %v8059_v11, 1  ;;  %v7251_v4 = vunpack.i.h.bf16 %v7249_v5 }
  0xc7   : > { %vm11291_vm4 = vmmov %vm11290_vm5  ;;  %v11318_v49 = vmov 0   ;;  %v11319_v45 = vmov 0  ;;  %v11342_v3 = vmov 0  ;;  %v11374_v6 = vrot.slane %v8617_v40, %v8093_v21 }
  0xc8   : > { %v808_v59 = vsel %vm11291_vm4, %v7241_v33, %v7245_v25  ;;  %vm11292_vm10 = vmmov %vm11291_vm4  ;;  %v6451_v25 = vpack.c.bf16 %v807_v30, %v8637_v26  ;;  %v8696_v30 = vsel %vm8443_vm15, 1, %v10953_v0  ;;  %v11408_v0 = vmov 0 }
  0xc9   : > { %v809_v31 = vsel %vm11292_vm10, %v7240_v53, %v7241_v33  ;;  %vm11293_vm0 = vmmov %vm11291_vm4  ;;  %v6454_v33 = vpack.c.bf16 %v808_v59, %v8641_v39  ;;  %vm8717_vm4 = vcmp.eq.s32.totalorder %v608_v37, 1  ;;  %v460_v37 = vrot.slane %v8540_v63, %v8090_v20 }
  0xca   : > { %v810_v29 = vsel %vm11293_vm0, %v7246_v24, %v7240_v53  ;;  %vm8671_vm6 = vmpackc.low %vm11295_vm8, %vm11294_vm11  ;;  %v6373_v1 = vpack.c.bf16 %v809_v31, %v8645_v54  ;;  %vm11302_vm11 = vcmp.lt.s32.totalorder %v8059_v11, 7  ;;  %v7256_v31 = vunpack.i.h.bf16 %v7254_v12  ;;  %6452 = vmatprep.subr.msk.bf16.mxu1 %vm8595_vm13, %v6451_v25 }
  0xcb   : > { %v11297_v56 = vsel %vm8671_vm6, 4294967295, %v11296_v56  ;;  %v6376_v38 = vpack.c.bf16 %v810_v29, %v8649_v34  ;;  %vm8683_vm5 = vmand %vm8443_vm15, %vm11299_vm9  ;;  %v7255_v29 = vunpack.i.l.bf16 %v7254_v12  ;;  %v7250_v24 = vunpack.i.l.bf16 %v7249_v5  ;;  %6455 = vmatpush1.bf16.msk.msra.mxu1 %vm8671_vm6, %v6454_v33 }
  0xcc   : > { %11298 = vst [vmem:[#allocation22_spill] sm:$0xff] %v11297_v56  ;;  %vm8702_vm8 = vmand %vm8655_vm12, %vm11302_vm11  ;;  %6374 = vmatprep.subr.msk.bf16.mxu0 %vm8569_vm3, %v6373_v1  ;;  %vm8713_vm15 = vcmp.eq.s32.totalorder %v569_v41, 1  ;;  %v11309_v12 = vrot.slane %v8476_v48, %v8075_v15  ;;  %vm8731_vm9 = vcmp.eq.s32.totalorder %v616_v51, 1  ;;  %v499_v5 = vrot.slane %v8617_v40, %v8090_v20  ;;  %v7259_v51 = vpop.permute.xlu0 %7258 }
  0xcd   : > { %6377 = vmatpush1.bf16.msk.msra.mxu0 %vm8623_vm1, %v6376_v38  ;;  %vm8746_vm10 = vcmp.eq.s32.totalorder %v565_v2, 1  ;;  %vm8750_vm13 = vcmp.eq.s32.totalorder %v604_v23, 1  ;;  %v8757_v38 = vsel %vm8683_vm5, 1, %v11318_v49  ;;  %v8766_v2 = vsel %vm8702_vm8, 1, %v11318_v49  ;;  %vm8772_vm5 = vmpackc.low %vm8558_vm2, %vm8554_vm14 }
  0xce   : > { %vm8727_vm0 = vcmp.eq.s32.totalorder %v11309_v12, 1  ;;  %v7264_v12 = vpop.permute.xlu1 %7263  ;;  %v11317_v13 = vsel %vm8750_vm13, 4294967295, %v11316_v13  ;;  %v7261_v7 = vunpack.i.h.bf16 %v7259_v51  ;;  %v7260_v16 = vunpack.i.l.bf16 %v7259_v51 }
  0xcf   : > { %v7266_v23 = vunpack.i.h.bf16 %v7264_v12  ;;  %v7265_v56 = vunpack.i.l.bf16 %v7264_v12  ;;  %v11320_v45 = vsel %vm8772_vm5, 4294967295, %v11319_v45  ;;  %v11322_v25 = vrot.slane %v8476_v48, %v8093_v21 }
  0xd0   : > { %11321 = vst [vmem:[#allocation23_spill] sm:$0xff] %v11320_v45  ;;  %v11323_v33 = vmov 0  ;;  %v11325_v59 = vrot.slane %v8481_v55, %v8093_v21  ;;  %v11326_v12 = vmov 0  ;;  %vm11328_vm6 = vcmp.lt.s32.totalorder %v8087_v19, 57 }
  0xd1   : > { %vm8779_vm11 = vcmp.eq.s32.totalorder %v11322_v25, 1  ;;  %v662_v42 = vsel %vm11328_vm6, %v7255_v29, %v7256_v31  ;;  %vm11329_vm14 = vmmov %vm11328_vm6  ;;  %vm11332_vm3 = vnez %v11263_v57  ;;  %v11333_v55 = vmov 0 }
  0xd2   : > { %v11324_v33 = vsel %vm8779_vm11, 4294967295, %v11323_v33  ;;  %vm8786_vm8 = vcmp.eq.s32.totalorder %v11325_v59, 1  ;;  %v663_v43 = vsel %vm11329_vm14, %v7251_v4, %v7255_v29  ;;  %vm11330_vm2 = vmmov %vm11328_vm6  ;;  %vm11341_vm13 = vnez %v11272_v36  ;;  %v7274_v57 = vpop.permute.xlu1 %7273 }
  0xd3   : > { %v11327_v12 = vsel %vm8786_vm8, 4294967295, %v11326_v12  ;;  %v664_v48 = vsel %vm11330_vm2, %v7250_v24, %v7251_v4  ;;  %vm11331_vm1 = vmmov %vm11330_vm2  ;;  %vm11336_vm8 = vcmp.lt.s32.totalorder %v8087_v19, 56  ;;  %v11392_v1 = vmov 0 }
  0xd4   : > { %v665_v25 = vsel %vm11331_vm1, %v7256_v31, %v7250_v24  ;;  %vm8802_vm11 = vmpackc.low %vm11332_vm3, %vm8573_vm7  ;;  %v702_v51 = vsel %vm11336_vm8, %v7265_v56, %v7266_v23  ;;  %vm11340_vm1 = vnez %v11270_v50  ;;  %v7269_v31 = vpop.permute.xlu0 %7268  ;;  %vm11345_vm7 = vnez %v11279_v62 }
  0xd5   : > { %v11334_v55 = vsel %vm8802_vm11, 4294967295, %v11333_v55  ;;  %vm11337_vm6 = vmmov %vm11336_vm8  ;;  %v8824_v44 = vpack.c.bf16 %v702_v51, %v662_v42  ;;  %vm11346_vm8 = vnez %v11281_v8  ;;  %v11350_v50 = vrot.slane %v8540_v63, %v8072_v14 }
  0xd6   : > { %11335 = vst [vmem:[#allocation24_spill] sm:$0xff] %v11334_v55  ;;  %v703_v29 = vsel %vm11337_vm6, %v7261_v7, %v7265_v56  ;;  %vm11338_vm14 = vmmov %vm11337_vm6  ;;  %v1570_v62 = vrot.slane %v8766_v2, %v8090_v20  ;;  %v1574_v8 = vrot.slane %v8766_v2, %v8072_v14  ;;  %v1578_v42 = vrot.slane %v8766_v2, %v8093_v21  ;;  %v7284_v55 = vpop.permute.xlu1 %7283 }
  0xd7   : > { %v704_v4 = vsel %vm11338_vm14, %v7260_v16, %v7261_v7  ;;  %vm11339_vm2 = vmmov %vm11337_vm6  ;;  %v8828_v7 = vpack.c.bf16 %v703_v29, %v663_v43  ;;  %vm8845_vm14 = vcmp.eq.s32.totalorder %v503_v47, 1  ;;  %v1582_v43 = vrot.slane %v8766_v2, %v8075_v15  ;;  %6458 = vmatprep.subr.msk.bf16.mxu1 %vm8802_vm11, %v8824_v44 }
  0xd8   : > { %v705_v24 = vsel %vm11339_vm2, %v7266_v23, %v7260_v16  ;;  %vm8818_vm3 = vmpackc.low %vm11341_vm13, %vm11340_vm1  ;;  %v8822_v59 = vpack.c.bf16 %v704_v4, %v664_v48  ;;  %v11347_v16 = vmov 0  ;;  %vm8841_vm13 = vcmp.eq.s32.totalorder %v11350_v50, 1 }
  0xd9   : > { %v11343_v3 = vsel %vm8818_vm3, 4294967295, %v11342_v3  ;;  %v8826_v56 = vpack.c.bf16 %v705_v24, %v665_v25  ;;  %vm8834_vm6 = vmpackc.low %vm11346_vm8, %vm11345_vm7  ;;  %vm11355_vm2 = vcmp.ge.s32.totalorder %v8059_v11, 1  ;;  %v7276_v48 = vunpack.i.h.bf16 %v7274_v57 }
  0xda   : > { %11344 = vst [vmem:[#allocation25_spill] sm:$0xff] %v11343_v3  ;;  %v11348_v16 = vsel %vm8834_vm6, 4294967295, %v11347_v16  ;;  %vm8861_vm1 = vmand %vm8655_vm12, %vm11355_vm2  ;;  %v7275_v25 = vunpack.i.l.bf16 %v7274_v57  ;;  %v7271_v51 = vunpack.i.h.bf16 %v7269_v31  ;;  %v7270_v29 = vunpack.i.l.bf16 %v7269_v31  ;;  %6380 = vmatprep.subr.msk.bf16.mxu0 %vm8772_vm5, %v8822_v59  ;;  %6461 = vmatpush1.bf16.msk.msra.mxu1 %vm8834_vm6, %v8828_v7  ;;  %v7279_v3 = vpop.permute.xlu0 %7278 }
  0xdb   : > { %11349 = vst [vmem:[#allocation26_spill] sm:$0xff] %v11348_v16  ;;  %v11358_v2 = vrot.slane %v8540_v63, %v8075_v15  ;;  %v11361_v24 = vrot.slane %v8617_v40, %v8075_v15  ;;  %6383 = vmatpush1.bf16.msk.msra.mxu0 %vm8818_vm3, %v8826_v56  ;;  %v359_v31 = vrot.slane %v8757_v38, %v8072_v14  ;;  %vm8901_vm11 = vcmp.eq.s32.totalorder %v460_v37, 1  ;;  %vm8927_vm2 = vmpackc.low %vm8717_vm4, %vm8713_vm15 }
  0xdc   : > { %v367_v50 = vrot.slane %v8757_v38, %v8075_v15  ;;  %vm8905_vm3 = vcmp.eq.s32.totalorder %v499_v5, 1  ;;  %v8916_v16 = vsel %vm8861_vm1, 1, %v11318_v49  ;;  %v8921_v37 = vsel %vm8655_vm12, 1, %v11318_v49 }
  0xdd   : > { %vm8874_vm7 = vcmp.eq.s32.totalorder %v11358_v2, 1  ;;  %vm8881_vm8 = vcmp.eq.s32.totalorder %v11361_v24, 1  ;;  %v355_v2 = vrot.slane %v8757_v38, %v8090_v20  ;;  %v7286_v5 = vunpack.i.h.bf16 %v7284_v55 }
  0xde   : > { %v7285_v61 = vunpack.i.l.bf16 %v7284_v55  ;;  %v7281_v52 = vunpack.i.h.bf16 %v7279_v3  ;;  %v7280_v17 = vunpack.i.l.bf16 %v7279_v3  ;;  %v11368_v24 = vmov 0 }
  0xdf   : > { %v11369_v24 = vsel %vm8927_vm2, 4294967295, %v11368_v24  ;;  %v11371_v47 = vrot.slane %v8540_v63, %v8093_v21  ;;  %vm8941_vm12 = vcmp.eq.s32.totalorder %v11374_v6, 1  ;;  %v11375_v55 = vmov 0 }
  0xe0   : > { %11370 = vst [vmem:[#allocation27_spill] sm:$0xff] %v11369_v24  ;;  %v11376_v55 = vsel %vm8941_vm12, 4294967295, %v11375_v55  ;;  %vm11377_vm6 = vcmp.lt.s32.totalorder %v8087_v19, 64  ;;  %v11381_v40 = vmov 0  ;;  %vm8961_vm12 = vcmp.eq.s32.totalorder %v1570_v62, 1 }
  0xe1   : > { %vm8934_vm1 = vcmp.eq.s32.totalorder %v11371_v47, 1  ;;  %v557_v53 = vsel %vm11377_vm6, %v7275_v25, %v7276_v48  ;;  %vm11378_vm15 = vmmov %vm11377_vm6  ;;  %v11384_v47 = vmov 0  ;;  %v11429_v24 = vmov 0 }
  0xe2   : > { %v11373_v28 = vsel %vm8934_vm1, 4294967295, %v11372_v28  ;;  %v558_v58 = vsel %vm11378_vm15, %v7271_v51, %v7275_v25  ;;  %vm11379_vm4 = vmmov %vm11377_vm6  ;;  %v11385_v47 = vsel %vm8961_vm12, 4294967295, %v11384_v47  ;;  %vm8965_vm6 = vcmp.eq.s32.totalorder %v1574_v8, 1 }
  0xe3   : > { %v559_v63 = vsel %vm11379_vm4, %v7270_v29, %v7271_v51  ;;  %vm11380_vm5 = vmmov %vm11379_vm4  ;;  %11386 = vst [vmem:[#allocation29_spill] sm:$0xff] %v11385_v47  ;;  %v11387_v25 = vmov 0  ;;  %vm8969_vm15 = vcmp.eq.s32.totalorder %v1578_v42, 1  ;;  %v11389_v51 = vmov 0 }
  0xe4   : > { %v560_v3 = vsel %vm11380_vm5, %v7276_v48, %v7270_v29  ;;  %vm8957_vm1 = vmpackc.low %vm8731_vm9, %vm8727_vm0  ;;  %v11388_v25 = vsel %vm8965_vm6, 4294967295, %v11387_v25  ;;  %v11390_v51 = vsel %vm8969_vm15, 4294967295, %v11389_v51  ;;  %vm8973_vm5 = vcmp.eq.s32.totalorder %v1582_v43, 1  ;;  %v7294_v43 = vpop.permute.xlu1 %7293  ;;  %v7289_v29 = vpop.permute.xlu0 %7288 }
  0xe5   : > { %v11382_v40 = vsel %vm8957_vm1, 4294967295, %v11381_v40  ;;  %11391 = vst [vmem:[#allocation30_spill] sm:$0xff] %v11390_v51  ;;  %v11393_v1 = vsel %vm8973_vm5, 4294967295, %v11392_v1  ;;  %vm11395_vm0 = vcmp.lt.s32.totalorder %v8087_v19, 63  ;;  %vm11399_vm15 = vnez %v11317_v13 }
  0xe6   : > { %11383 = vst [vmem:[#allocation28_spill] sm:$0xff] %v11382_v40  ;;  %11394 = vst [vmem:[#allocation31_spill] sm:$0xff] %v11393_v1  ;;  %v595_v41 = vsel %vm11395_vm0, %v7285_v61, %v7286_v5  ;;  %v11400_v42 = vmov 0  ;;  %v11411_v13 = vmov 0  ;;  %v1524_v36 = vrot.slane %v8921_v37, %v8093_v21 }
  0xe7   : > { %vm11396_vm9 = vmmov %vm11395_vm0  ;;  %v8995_v27 = vpack.c.bf16 %v595_v41, %v557_v53  ;;  %v7291_v41 = vunpack.i.h.bf16 %v7289_v29  ;;  %v11437_v23 = vmov 0 }
  0xe8   : > { %v596_v62 = vsel %vm11396_vm9, %v7281_v52, %v7285_v61  ;;  %vm11397_vm4 = vmmov %vm11395_vm0  ;;  %v7304_v53 = vpop.permute.xlu1 %7303  ;;  %v7299_v40 = vpop.permute.xlu0 %7298 }
  0xe9   : > { %v597_v8 = vsel %vm11397_vm4, %v7280_v17, %v7281_v52  ;;  %vm11398_vm12 = vmmov %vm11395_vm0  ;;  %11404 = vst [vmem:[#allocation34_spill] sm:$0xff] %v8995_v27  ;;  %v8999_v52 = vpack.c.bf16 %v596_v62, %v558_v58  ;;  %vm11407_vm0 = vnez %v11327_v12  ;;  %v1528_v12 = vrot.slane %v8921_v37, %v8075_v15  ;;  %6464 = vmatprep.subr.msk.bf16.mxu1 %vm8957_vm1, %v8995_v27 }
  0xea   : > { %v598_v48 = vsel %vm11398_vm12, %v7286_v5, %v7280_v17  ;;  %vm8989_vm6 = vmpackc.low %vm11399_vm15, %vm8746_vm10  ;;  %v8993_v6 = vpack.c.bf16 %v597_v8, %v559_v63  ;;  %vm11406_vm12 = vnez %v11324_v33  ;;  %vm9009_vm10 = vcmp.eq.s32.totalorder %v359_v31, 1 }
  0xeb   : > { %v11401_v42 = vsel %vm8989_vm6, 4294967295, %v11400_v42  ;;  %v8997_v61 = vpack.c.bf16 %v598_v48, %v560_v3  ;;  %vm9005_vm9 = vmpackc.low %vm11407_vm0, %vm11406_vm12  ;;  %v11412_v13 = vsel %vm9009_vm10, 4294967295, %v11411_v13  ;;  %v11413_v17 = vrot.slane %v8696_v30, %v8072_v14 }
  0xec   : > { %11402 = vst [vmem:[#allocation32_spill] sm:$0xff] %v11401_v42  ;;  %11403 = vst [vmem:[#allocation33_spill] sm:$0xff] %v8993_v6  ;;  %v11409_v0 = vsel %vm9005_vm9, 4294967295, %v11408_v0  ;;  %v1520_v33 = vrot.slane %v8921_v37, %v8072_v14  ;;  %vm11416_vm4 = vcmp.lt.s32.totalorder %v8084_v18, 7  ;;  %vm11417_vm12 = vcmp.lt.s32.totalorder %v8059_v11, 7  ;;  %6386 = vmatprep.subr.msk.bf16.mxu0 %vm8927_vm2, %v8993_v6  ;;  %6467 = vmatpush1.bf16.msk.msra.mxu1 %vm9005_vm9, %v8999_v52  ;;  %v7314_v46 = vpop.permute.xlu1 %7313  ;;  %v7309_v27 = vpop.permute.xlu0 %7308 }
  0xed   : > { %11405 = vst [vmem:[#allocation35_spill] sm:$0xff] %v8997_v61  ;;  %11410 = vst [vmem:[#allocation36_spill] sm:$0xff] %v11409_v0  ;;  %vm9016_vm15 = vcmp.eq.s32.totalorder %v11413_v17, 1  ;;  %v9029_v31 = vsel %vm11416_vm4, 1, %v11318_v49  ;;  %v7296_v63 = vunpack.i.h.bf16 %v7294_v43  ;;  %v7295_v3 = vunpack.i.l.bf16 %v7294_v43  ;;  %6389 = vmatpush1.bf16.msk.msra.mxu0 %vm8989_vm6, %v8997_v61 }
  0xee   : > { %vm11418_vm0 = vmmov %vm11416_vm4  ;;  %v7290_v62 = vunpack.i.l.bf16 %v7289_v29  ;;  %vm9045_vm4 = vcmp.eq.s32.totalorder %v367_v50, 1  ;;  %v11423_v48 = vrot.slane %v8696_v30, %v8075_v15  ;;  %v1495_v43 = vrot.slane %v8916_v16, %v8072_v14 }
  0xef   : > { %vm9035_vm10 = vmand %vm11418_vm0, %vm11417_vm12  ;;  %v1503_v50 = vrot.slane %v8916_v16, %v8075_v15  ;;  %v1491_v29 = vrot.slane %v8916_v16, %v8090_v20  ;;  %v11426_v42 = vmov 0  ;;  %vm9080_vm6 = vcmp.eq.s32.totalorder %v355_v2, 1 }
  0xf0   : > { %vm9052_vm12 = vcmp.eq.s32.totalorder %v11423_v48, 1  ;;  %v1499_v48 = vrot.slane %v8916_v16, %v8093_v21  ;;  %vm9075_vm0 = vmpackc.low %vm8845_vm14, %vm8841_vm13  ;;  %v11430_v24 = vsel %vm9080_vm6, 4294967295, %v11429_v24  ;;  %v11431_v16 = vrot.slane %v8696_v30, %v8090_v20 }
  0xf1   : > { %v11427_v42 = vsel %vm9075_vm0, 4294967295, %v11426_v42  ;;  %v11432_v0 = vmov 0  ;;  %v9098_v2 = vsel %vm9035_vm10, 1, %v11318_v49  ;;  %v7306_v60 = vunpack.i.h.bf16 %v7304_v53  ;;  %vm9106_vm13 = vmpackc.low %vm8881_vm8, %vm8874_vm7 }
  0xf2   : > { %11428 = vst [vmem:[#allocation37_spill] sm:$0xff] %v11427_v42  ;;  %vm9087_vm9 = vcmp.eq.s32.totalorder %v11431_v16, 1  ;;  %v7305_v35 = vunpack.i.l.bf16 %v7304_v53  ;;  %v7301_v16 = vunpack.i.h.bf16 %v7299_v40  ;;  %v7300_v32 = vunpack.i.l.bf16 %v7299_v40 }
  0xf3   : > { %v11433_v0 = vsel %vm9087_vm9, 4294967295, %v11432_v0  ;;  %v11435_v22 = vsel %vm9106_vm13, 4294967295, %v11434_v22  ;;  %v11436_v58 = vrot.slane %v8757_v38, %v8093_v21  ;;  %v11439_v53 = vrot.slane %v8696_v30, %v8093_v21 }
  0xf4   : > { %v11440_v40 = vmov 0  ;;  %vm11442_vm1 = vcmp.lt.s32.totalorder %v8087_v19, 71  ;;  %vm11447_vm9 = vcmp.lt.s32.totalorder %v8084_v18, 7  ;;  %v11487_v5 = vmov 0 }
  0xf5   : > { %vm9113_vm14 = vcmp.eq.s32.totalorder %v11436_v58, 1  ;;  %vm9120_vm10 = vcmp.eq.s32.totalorder %v11439_v53, 1  ;;  %v451_v4 = vsel %vm11442_vm1, %v7295_v3, %v7296_v63  ;;  %vm11443_vm7 = vmmov %vm11442_vm1 }
  0xf6   : > { %v11438_v23 = vsel %vm9113_vm14, 4294967295, %v11437_v23  ;;  %v11441_v40 = vsel %vm9120_vm10, 4294967295, %v11440_v40  ;;  %v452_v57 = vsel %vm11443_vm7, %v7291_v41, %v7295_v3  ;;  %vm11444_vm8 = vmmov %vm11442_vm1  ;;  %vm11446_vm14 = vcmp.ge.s32.totalorder %v8054_v10, 1 }
  0xf7   : > { %v453_v38 = vsel %vm11444_vm8, %v7290_v62, %v7291_v41  ;;  %vm11445_vm2 = vmmov %vm11442_vm1  ;;  %vm11450_vm10 = vcmp.lt.s32.totalorder %v8087_v19, 65 }
  0xf8   : > { %v454_v58 = vsel %vm11445_vm2, %v7296_v63, %v7290_v62  ;;  %vm9136_vm6 = vmand %vm11447_vm9, %vm11446_vm14  ;;  %v490_v53 = vsel %vm11450_vm10, %v7305_v35, %v7306_v60  ;;  %v11454_v62 = vmov 0  ;;  %vm11456_vm9 = vnez %v11373_v28 }
  0xf9   : > { %vm11451_vm1 = vmmov %vm11450_vm10  ;;  %v9158_v61 = vpack.c.bf16 %v490_v53, %v451_v4  ;;  %vm11457_vm14 = vnez %v11376_v55  ;;  %v11470_v4 = vmov 0  ;;  %v1436_v53 = vrot.slane %v9098_v2, %v8090_v20 }
  0xfa   : > { %v491_v3 = vsel %vm11451_vm1, %v7301_v16, %v7305_v35  ;;  %vm11452_vm7 = vmmov %vm11451_vm1 }
  0xfb   : > { %v492_v41 = vsel %vm11452_vm7, %v7300_v32, %v7301_v16  ;;  %vm11453_vm8 = vmmov %vm11451_vm1  ;;  %v9162_v16 = vpack.c.bf16 %v491_v3, %v452_v57  ;;  %vm11465_vm1 = vnez %v11385_v47  ;;  %vm11466_vm7 = vnez %v11388_v25  ;;  %6470 = vmatprep.subr.msk.bf16.mxu1 %vm9106_vm13, %v9158_v61 }
  0xfc   : > { %v493_v63 = vsel %vm11453_vm8, %v7306_v60, %v7300_v32  ;;  %vm9152_vm2 = vmpackc.low %vm8905_vm3, %vm8901_vm11  ;;  %v9156_v6 = vpack.c.bf16 %v492_v41, %v453_v38  ;;  %v11458_v32 = vmov 0  ;;  %vm9172_vm11 = vcmp.eq.s32.totalorder %v1495_v43, 1 }
  0xfd   : > { %v11455_v62 = vsel %vm9152_vm2, 4294967295, %v11454_v62  ;;  %v9160_v35 = vpack.c.bf16 %v493_v63, %v454_v58  ;;  %vm9168_vm10 = vmpackc.low %vm11457_vm14, %vm11456_vm9  ;;  %vm9176_vm3 = vcmp.eq.s32.totalorder %v1520_v33, 1  ;;  %v1587_v45 = vsel %vm11465_vm1, %v8645_v54, 0.0 }
  0xfe   : > { %v11459_v32 = vsel %vm9168_vm10, 4294967295, %v11458_v32  ;;  %v1588_v28 = vsel %vm11466_vm7, %v8641_v39, 0.0  ;;  %vm11467_vm8 = vnez %v11390_v51  ;;  %v1590_v43 = vsel %vm8973_vm5, %v8649_v34, 0.0  ;;  %6392 = vmatprep.subr.msk.bf16.mxu0 %vm9075_vm0, %v9156_v6  ;;  %6473 = vmatpush1.bf16.msk.msra.mxu1 %vm9168_vm10, %v9162_v16 }
  0xff   : > { %11460 = vst [vmem:[#allocation38_spill] sm:$0xff] %v11459_v32  ;;  %v1589_v55 = vsel %vm11467_vm8, %v8637_v26, 0.0  ;;  %vm9192_vm9 = vcmp.eq.s32.totalorder %v1503_v50, 1  ;;  %vm9196_vm14 = vcmp.eq.s32.totalorder %v1528_v12, 1  ;;  %vm11472_vm1 = vcmp.lt.s32.totalorder %v8059_v11, 7  ;;  %6395 = vmatpush1.bf16.msk.msra.mxu0 %vm9152_vm2, %v9160_v35 }
 0x100   : > { %v11471_v4 = vsel %vm9196_vm14, 4294967295, %v11470_v4  ;;  %vm9204_vm7 = vmand %vm9136_vm6, %vm11472_vm1  ;;  %v7316_v26 = vunpack.i.h.bf16 %v7314_v46  ;;  %v7315_v54 = vunpack.i.l.bf16 %v7314_v46  ;;  %v7311_v57 = vunpack.i.h.bf16 %v7309_v27 }
 0x101   : > { %v7310_v34 = vunpack.i.l.bf16 %v7309_v27  ;;  %vm9214_vm5 = vcmp.eq.s32.totalorder %v1491_v29, 1  ;;  %v11475_v12 = vmov 0  ;;  %v11477_v50 = vrot.slane %v8921_v37, %v8090_v20 }
 0x102   : > { %v11476_v12 = vsel %vm9214_vm5, 4294967295, %v11475_v12  ;;  %v11478_v38 = vmov 0  ;;  %vm9228_vm8 = vcmp.eq.s32.totalorder %v1499_v48, 1  ;;  %v11480_v46 = vmov 0  ;;  %v7324_v48 = vpop.permute.xlu1 %7323 }
 0x103   : > { %vm9221_vm1 = vcmp.eq.s32.totalorder %v11477_v50, 1  ;;  %v11481_v46 = vsel %vm9228_vm8, 4294967295, %v11480_v46  ;;  %vm9232_vm13 = vcmp.eq.s32.totalorder %v1524_v36, 1  ;;  %v11482_v27 = vmov 0  ;;  %v7319_v36 = vpop.permute.xlu0 %7318 }
 0x104   : > { %v11479_v38 = vsel %vm9221_vm1, 4294967295, %v11478_v38  ;;  %v11483_v27 = vsel %vm9232_vm13, 4294967295, %v11482_v27  ;;  %v1440_v29 = vrot.slane %v9098_v2, %v8072_v14  ;;  %v1448_v37 = vrot.slane %v9098_v2, %v8075_v15 }
 0x105   : > { %v1410_v58 = vrot.slane %v9029_v31, %v8090_v20  ;;  %vm11484_vm2 = vnez %v11412_v13  ;;  %v11485_v3 = vmov 0  ;;  %v6130_v41 = vpack.c.bf16 %v1588_v28, %v1587_v45 }
 0x106   : > { %vm9251_vm0 = vmpackc.low %vm9016_vm15, %vm11484_vm2  ;;  %v6131_v63 = vpack.c.bf16 %v1590_v43, %v1589_v55  ;;  %v1418_v50 = vrot.slane %v9029_v31, %v8093_v21  ;;  %v9260_v47 = vsel %vm9204_vm7, 1, %v11318_v49  ;;  %v7326_v32 = vunpack.i.h.bf16 %v7324_v48 }
 0x107   : > { %v11486_v3 = vsel %vm9251_vm0, 4294967295, %v11485_v3  ;;  %v7325_v1 = vunpack.i.l.bf16 %v7324_v48  ;;  %v7321_v51 = vunpack.i.h.bf16 %v7319_v36  ;;  %v7320_v13 = vunpack.i.l.bf16 %v7319_v36  ;;  %vm9266_vm15 = vmpackc.low %vm9052_vm12, %vm9045_vm4 }
 0x108   : > { %v11488_v5 = vsel %vm9266_vm15, 4294967295, %v11487_v5  ;;  %vm11489_vm2 = vcmp.lt.s32.totalorder %v8087_v19, 73  ;;  %vm11493_vm8 = vcmp.ge.s32.totalorder %v8059_v11, 1  ;;  %vm11494_vm1 = vcmp.lt.s32.totalorder %v8084_v18, 7 }
 0x109   : > { %v345_v45 = vsel %vm11489_vm2, %v7315_v54, %v7316_v26  ;;  %vm11490_vm10 = vmmov %vm11489_vm2  ;;  %vm11495_vm12 = vcmp.lt.s32.totalorder %v8087_v19, 72  ;;  %v11086_v36 = vmov 0.0|0.0   ;;  %v1335_v60 = vrot.slane %v9260_v47, %v8072_v14 }
 0x10a   : > { %v346_v28 = vsel %vm11490_vm10, %v7311_v57, %v7315_v54  ;;  %vm11491_vm7 = vmmov %vm11489_vm2  ;;  %v385_v8 = vsel %vm11495_vm12, %v7325_v1, %v7326_v32  ;;  %v5719_v33 = vcombine.low %v6130_v41, %v11086_v36 }
 0x10b   : > { %v347_v55 = vsel %vm11491_vm7, %v7310_v34, %v7311_v57  ;;  %vm11492_vm13 = vmmov %vm11489_vm2  ;;  %vm11499_vm7 = vnez %v11430_v24  ;;  %v9300_v57 = vpack.c.bf16 %v385_v8, %v345_v45  ;;  %v11505_v24 = vmov 0 }
 0x10c   : > { %v348_v43 = vsel %vm11492_vm13, %v7316_v26, %v7310_v34  ;;  %vm1352_vm4 = vmand %vm11494_vm1, %vm11493_vm8  ;;  %vm11500_vm13 = vnez %v11433_v0  ;;  %v11501_v26 = vmov 0  ;;  %vm11504_vm8 = vnez %v11441_v40 }
 0x10d   : > { %vm11496_vm5 = vmmov %vm11495_vm12  ;;  %v1353_v40 = vsel %vm1352_vm4, 1, %v11318_v49  ;;  %6476 = vmatprep.subr.msk.bf16.mxu1 %vm9266_vm15, %v9300_v57  ;;  %vm11517_vm4 = vcmp.ge.s32.totalorder %v8059_v11, 1  ;;  %vm9377_vm15 = vcmp.eq.s32.totalorder %v1418_v50, 1  ;;  %v1331_v50 = vrot.slane %v9260_v47, %v8090_v20 }
 0x10e   : > { %v386_v17 = vsel %vm11496_vm5, %v7321_v51, %v7325_v1  ;;  %vm11497_vm2 = vmmov %vm11496_vm5  ;;  %vm11503_vm5 = vnez %v11438_v23  ;;  %v1444_v23 = vrot.slane %v9098_v2, %v8093_v21  ;;  %v9399_v8 = vsel %vm9136_vm6, 1, %v11318_v49 }
 0x10f   : > { %v387_v39 = vsel %vm11497_vm2, %v7320_v13, %v7321_v51  ;;  %vm11498_vm10 = vmmov %vm11497_vm2  ;;  %v9304_v1 = vpack.c.bf16 %v386_v17, %v346_v28  ;;  %v11507_v51 = vrot.slane %v9029_v31, %v8072_v14  ;;  %v11533_v17 = vmov 0 }
 0x110   : > { %v388_v54 = vsel %vm11498_vm10, %v7326_v32, %v7320_v13  ;;  %vm9294_vm14 = vmpackc.low %vm11500_vm13, %vm11499_vm7  ;;  %v9298_v18 = vpack.c.bf16 %v387_v39, %v347_v55  ;;  %v11510_v32 = vrot.slane %v9029_v31, %v8075_v15  ;;  %v5720_v31 = vcombine.high %v6130_v41, %v11086_v36 }
 0x111   : > { %v11502_v26 = vsel %vm9294_vm14, 4294967295, %v11501_v26  ;;  %v9302_v34 = vpack.c.bf16 %v388_v54, %v348_v43  ;;  %vm9310_vm1 = vmpackc.low %vm11504_vm8, %vm11503_vm5  ;;  %vm9317_vm12 = vcmp.eq.s32.totalorder %v11507_v51, 1  ;;  %v5722_v13 = vcombine.high %v6131_v63, %v11086_v36  ;;  %v11577_v43 = vld [vmem:[#allocation35_spill] sm:$0xff] }
 0x112   : > { %v11506_v24 = vsel %vm9310_vm1, 4294967295, %v11505_v24  ;;  %vm9324_vm2 = vcmp.eq.s32.totalorder %v11510_v32, 1  ;;  %6398 = vmatprep.subr.msk.bf16.mxu0 %vm9251_vm0, %v9298_v18  ;;  %vm9339_vm10 = vcmp.eq.s32.totalorder %v1440_v29, 1  ;;  %vm9343_vm7 = vcmp.eq.s32.totalorder %v1448_v37, 1  ;;  %vm9351_vm13 = vmand %vm9136_vm6, %vm11517_vm4  ;;  %6479 = vmatpush1.bf16.msk.msra.mxu1 %vm9310_vm1, %v9304_v1 }
 0x113   : > { %6401 = vmatpush1.bf16.msk.msra.mxu0 %vm9294_vm14, %v9302_v34  ;;  %vm9365_vm5 = vmpackc.low %vm9176_vm3, %vm9172_vm11  ;;  %v11520_v29 = vmov 0  ;;  %vm9369_vm8 = vcmp.eq.s32.totalorder %v1410_v58, 1  ;;  %vm9373_vm4 = vcmp.eq.s32.totalorder %v1436_v53, 1  ;;  %2033 = vmatprep.subr.bf16.mxu1 %v5722_v13  ;;  %vm11528_vm11 = vnez %v11471_v4 }
 0x114   : > { %v11521_v29 = vsel %vm9365_vm5, 4294967295, %v11520_v29  ;;  %1992 = vmatprep.subr.bf16.mxu0 %v5720_v31  ;;  %vm9387_vm3 = vmpackc.low %vm11528_vm11, %vm9192_vm9  ;;  %v1361_v58 = vrot.slane %v1353_v40, %v8072_v14  ;;  %v1343_v53 = vrot.slane %v9260_v47, %v8075_v15  ;;  %v5721_v4 = vcombine.low %v6131_v63, %v11086_v36 }
 0x115   : > { %v11530_v9 = vsel %vm9387_vm3, 4294967295, %v11529_v9  ;;  %vm11531_vm9 = vnez %v11476_v12  ;;  %vm11532_vm11 = vnez %v11479_v38  ;;  %v1369_v39 = vrot.slane %v1353_v40, %v8075_v15  ;;  %v9425_v12 = vpop.permute.xlu1 %7333  ;;  %v9427_v38 = vpop.permute.xlu0 %7328 }
 0x116   : > { %vm9407_vm1 = vmpackc.low %vm11532_vm11, %vm11531_vm9  ;;  %v9415_v30 = vsel %vm9351_vm13, 1, %v11318_v49  ;;  %vm11535_vm6 = vnez %v11481_v46  ;;  %vm11536_vm14 = vnez %v11483_v27  ;;  %v11537_v41 = vmov 0  ;;  %2034 = vmatpush2.bf16.msra.mxu1 %v5721_v4 }
 0x117   : > { %v11534_v17 = vsel %vm9407_vm1, 4294967295, %v11533_v17  ;;  %vm9421_vm0 = vmpackc.low %vm11536_vm14, %vm11535_vm6  ;;  %vm9429_vm9 = vcmp.eq.s32.totalorder %v1444_v23, 1  ;;  %v11539_v63 = vmov 0  ;;  %v1357_v54 = vrot.slane %v1353_v40, %v8090_v20  ;;  %1993 = vmatpush2.bf16.msra.mxu0 %v5719_v33  ;;  %6482 = vmatprep.subr.msk.bf16.mxu1 %vm9387_vm3, %v8826_v56 }
 0x118   : > { %v11538_v41 = vsel %vm9421_vm0, 4294967295, %v11537_v41  ;;  %v11540_v63 = vsel %vm9429_vm9, 4294967295, %v11539_v63  ;;  %v1339_v51 = vrot.slane %v9260_v47, %v8093_v21  ;;  %v1365_v46 = vrot.slane %v1353_v40, %v8093_v21  ;;  %6404 = vmatprep.subr.msk.bf16.mxu0 %vm9365_vm5, %v8828_v7 }
 0x119   : > { %v1281_v27 = vrot.slane %v9399_v8, %v8072_v14  ;;  %v1289_v32 = vrot.slane %v9399_v8, %v8075_v15  ;;  %v1277_v23 = vrot.slane %v9399_v8, %v8090_v20  ;;  %vm11541_vm13 = vcmp.lt.s32.totalorder %v8054_v10, 7  ;;  %v7344_v33 = vpop.permute.xlu1 %7343  ;;  %v7339_v4 = vpop.permute.xlu0 %7338 }
 0x11a   : > { %v9447_v31 = vsel %vm11541_vm13, 1, %v11318_v49  ;;  %vm11542_vm11 = vcmp.lt.s32.totalorder %v8059_v11, 7  ;;  %vm11543_vm6 = vmmov %vm11541_vm13  ;;  %v11546_v11 = vmov 0  ;;  %vm9476_vm14 = vcmp.eq.s32.totalorder %v1343_v53, 1  ;;  %6485 = vmatpush2.bf16.msk.msra.mxu1 %vm9421_vm0, %v8824_v44 }
 0x11b   : > { %vm9453_vm9 = vmand %vm11543_vm6, %vm11542_vm11  ;;  %vm9472_vm6 = vcmp.eq.s32.totalorder %v1335_v60, 1  ;;  %v1256_v56 = vrot.slane %v9415_v30, %v8072_v14  ;;  %v1264_v0 = vrot.slane %v9415_v30, %v8075_v15  ;;  %v11552_v40 = vmov 0  ;;  %6407 = vmatpush2.bf16.msk.msra.mxu0 %vm9407_vm1, %v8822_v59 }
 0x11c   : > { %vm9467_vm13 = vmpackc.low %vm9339_vm10, %vm9317_vm12  ;;  %vm9492_vm10 = vcmp.eq.s32.totalorder %v1361_v58, 1  ;;  %vm9496_vm11 = vcmp.eq.s32.totalorder %v1369_v39, 1  ;;  %vm9500_vm3 = vcmp.eq.s32.totalorder %v1331_v50, 1  ;;  %v11558_v28 = vmov 0 }
 0x11d   : > { %v11547_v11 = vsel %vm9467_vm13, 4294967295, %v11546_v11  ;;  %vm9488_vm12 = vmpackc.low %vm9343_vm7, %vm9324_vm2  ;;  %v11559_v28 = vsel %vm9500_vm3, 4294967295, %v11558_v28  ;;  %v1252_v48 = vrot.slane %v9415_v30, %v8090_v20  ;;  %v11560_v2 = vmov 0  ;;  %6410 = vmatprep.subr.msk.bf16.mxu0 %vm9467_vm13, %v8999_v52 }
 0x11e   : > { %v11553_v40 = vsel %vm9488_vm12, 4294967295, %v11552_v40  ;;  %vm9510_vm2 = vmpackc.low %vm9373_vm4, %vm9369_vm8  ;;  %vm9514_vm7 = vcmp.eq.s32.totalorder %v1357_v54, 1  ;;  %vm9518_vm5 = vcmp.eq.s32.totalorder %v1339_v51, 1  ;;  %vm9522_vm3 = vcmp.eq.s32.totalorder %v1365_v46, 1  ;;  %6488 = vmatprep.subr.msk.bf16.mxu1 %vm9488_vm12, %v11577_v43 }
 0x11f   : > { %v11561_v2 = vsel %vm9510_vm2, 4294967295, %v11560_v2  ;;  %v11566_v53 = vmov 0  ;;  %v9529_v37 = vsel %vm9453_vm9, 1, %v11318_v49  ;;  %vm11568_vm8 = vnez %v11540_v63 }
 0x120   : > { %v11567_v53 = vsel %vm9522_vm3, 4294967295, %v11566_v53  ;;  %vm9541_vm4 = vmpackc.low %vm11568_vm8, %vm9377_vm15  ;;  %v11569_v55 = vmov 0  ;;  %vm9545_vm3 = vcmp.eq.s32.totalorder %v1281_v27, 1  ;;  %vm9549_vm9 = vcmp.eq.s32.totalorder %v1289_v32, 1 }
 0x121   : > { %v11570_v55 = vsel %vm9541_vm4, 4294967295, %v11569_v55  ;;  %vm9553_vm1 = vcmp.eq.s32.totalorder %v1277_v23, 1  ;;  %v1260_v44 = vrot.slane %v9415_v30, %v8093_v21  ;;  %vm9569_vm15 = vmpackc.low %vm9492_vm10, %vm9472_vm6  ;;  %v11578_v39 = vmov 0 }
 0x122   : > { %v11579_v39 = vsel %vm9569_vm15, 4294967295, %v11578_v39  ;;  %vm9573_vm8 = vcmp.eq.s32.totalorder %v1256_v56, 1  ;;  %vm9577_vm0 = vcmp.eq.s32.totalorder %v1264_v0, 1  ;;  %v1285_v63 = vrot.slane %v9399_v8, %v8093_v21  ;;  %vm9589_vm6 = vmpackc.low %vm9496_vm11, %vm9476_vm14  ;;  %v11591_v56 = vld [vmem:[#allocation33_spill] sm:$0xff] }
 0x123   : > { %v1162_v54 = vrot.slane %v9447_v31, %v8072_v14  ;;  %v11584_v51 = vmov 0  ;;  %vm9593_vm10 = vcmp.eq.s32.totalorder %v1252_v48, 1  ;;  %v1201_v27 = vrot.slane %v9529_v37, %v8072_v14  ;;  %6413 = vmatpush2.bf16.msk.msra.mxu0 %vm9510_vm2, %v11591_v56 }
 0x124   : > { %v11585_v51 = vsel %vm9589_vm6, 4294967295, %v11584_v51  ;;  %v1170_v8 = vrot.slane %v9447_v31, %v8075_v15  ;;  %v1209_v32 = vrot.slane %v9529_v37, %v8075_v15  ;;  %v7336_v23 = vunpack.i.h.bf16 %v9425_v12  ;;  %v11592_v15 = vld [vmem:[#allocation34_spill] sm:$0xff]  ;;  %6416 = vmatprep.subr.msk.bf16.mxu0 %vm9569_vm15, %v9162_v16 }
 0x125   : > { %v7335_v47 = vunpack.i.l.bf16 %v9425_v12  ;;  %v7331_v10 = vunpack.i.h.bf16 %v9427_v38  ;;  %v7330_v7 = vunpack.i.l.bf16 %v9427_v38  ;;  %vm11588_vm14 = vnez %v11559_v28  ;;  %6491 = vmatpush2.bf16.msk.msra.mxu1 %vm9541_vm4, %v11592_v15 }
 0x126   : > { %vm9611_vm11 = vmpackc.low %vm9514_vm7, %vm11588_vm14  ;;  %v11589_v14 = vmov 0  ;;  %v7346_v12 = vunpack.i.h.bf16 %v7344_v33  ;;  %v7345_v0 = vunpack.i.l.bf16 %v7344_v33  ;;  %v7341_v13 = vunpack.i.h.bf16 %v7339_v4  ;;  %6494 = vmatprep.subr.msk.bf16.mxu1 %vm9589_vm6, %v9160_v35 }
 0x127   : > { %v11590_v14 = vsel %vm9611_vm11, 4294967295, %v11589_v14  ;;  %v7340_v38 = vunpack.i.l.bf16 %v7339_v4  ;;  %vm11593_vm12 = vnez %v11567_v53  ;;  %v11594_v45 = vmov 0  ;;  %vm9639_vm14 = vmpackc.low %vm9545_vm3, %vm9573_vm8  ;;  %6419 = vmatpush2.bf16.msk.msra.mxu0 %vm9611_vm11, %v9156_v6 }
 0x128   : > { %vm9625_vm7 = vmpackc.low %vm11593_vm12, %vm9518_vm5  ;;  %vm9643_vm5 = vcmp.eq.s32.totalorder %v1260_v44, 1  ;;  %vm9647_vm12 = vcmp.eq.s32.totalorder %v1285_v63, 1  ;;  %v1158_v16 = vrot.slane %v9447_v31, %v8090_v20  ;;  %v1197_v35 = vrot.slane %v9529_v37, %v8090_v20  ;;  %6422 = vmatprep.subr.msk.bf16.mxu0 %vm9639_vm14, %v9304_v1 }
 0x129   : > { %v11595_v45 = vsel %vm9625_vm7, 4294967295, %v11594_v45  ;;  %vm9659_vm3 = vmpackc.low %vm9549_vm9, %vm9577_vm0  ;;  %v11602_v58 = vmov 0  ;;  %vm9663_vm8 = vcmp.eq.s32.totalorder %v1162_v54, 1  ;;  %vm9667_vm6 = vcmp.eq.s32.totalorder %v1201_v27, 1  ;;  %6497 = vmatpush2.bf16.msk.msra.mxu1 %vm9625_vm7, %v9158_v61 }
 0x12a   : > { %v11603_v58 = vsel %vm9659_vm3, 4294967295, %v11602_v58  ;;  %v1166_v44 = vrot.slane %v9447_v31, %v8093_v21  ;;  %v1205_v20 = vrot.slane %v9529_v37, %v8093_v21  ;;  %vm11608_vm4 = vcmp.lt.s32.totalorder %v8087_v19, 120  ;;  %vm9681_vm0 = vmpackc.low %vm9553_vm1, %vm9593_vm10  ;;  %6500 = vmatprep.subr.msk.bf16.mxu1 %vm9659_vm3, %v9302_v34 }
 0x12b   : > { %v1151_v49 = vsel %vm11608_vm4, %v7331_v10, %v7335_v47  ;;  %v11609_v43 = vmov 0  ;;  %vm9685_vm9 = vcmp.eq.s32.totalorder %v1170_v8, 1  ;;  %vm1213_vm15 = vcmp.eq.s32.totalorder %v1209_v32, 1  ;;  %vm11613_vm2 = vmmov %vm11608_vm4  ;;  %6425 = vmatpush2.bf16.msk.msra.mxu0 %vm9681_vm0, %v9298_v18  ;;  %v1680_v32 = vpop.permute.xlu0 %1679 }
 0x12c   : > { %v11610_v43 = vsel %vm9681_vm0, 4294967295, %v11609_v43  ;;  %v1153_v31 = vsel %vm11613_vm2, %v7336_v23, %v7330_v7  ;;  %vm11614_vm13 = vcmp.lt.s32.totalorder %v8087_v19, 119  ;;  %vm9705_vm1 = vmpackc.low %vm9647_vm12, %vm9643_vm5  ;;  %v11616_v59 = vmov 0 }
 0x12d   : > { %v1189_v21 = vsel %vm11614_vm13, %v7341_v13, %v7345_v0  ;;  %vm11615_vm4 = vmmov %vm11614_vm13  ;;  %v11617_v59 = vsel %vm9705_vm1, 4294967295, %v11616_v59  ;;  %v11619_v6 = vmov 0  ;;  %vm1171_vm2 = vcmp.eq.s32.totalorder %v1158_v16, 1  ;;  %6503 = vmatpush2.bf16.msk.msra.mxu1 %vm9705_vm1, %v9300_v57  ;;  %v7869_v57 = vld [vmem:[%s10902_s2] sm:$0xff] }
 0x12e   : > { %v1191_v37 = vsel %vm11615_vm4, %v7346_v12, %v7340_v38  ;;  %11618 = vst [vmem:[#allocation35_spill] sm:$0xff] %v11617_v59  ;;  %vm9719_vm13 = vmpackc.low %vm9667_vm6, %vm9663_vm8  ;;  %vm1210_vm10 = vcmp.eq.s32.totalorder %v1197_v35, 1  ;;  %vm11621_vm5 = vcmp.lt.s32.totalorder %v8087_v19, 120  ;;  %v11623_v34 = vmov 0 }
 0x12f   : > { %v11620_v6 = vsel %vm9719_vm13, 4294967295, %v11619_v6  ;;  %v1150_v61 = vsel %vm11621_vm5, %v7335_v47, %v7336_v23  ;;  %vm11622_vm12 = vmmov %vm11621_vm5  ;;  %vm1173_vm3 = vcmp.eq.s32.totalorder %v1166_v44, 1  ;;  %vm1212_vm7 = vcmp.eq.s32.totalorder %v1205_v20, 1 }
 0x130   : > { %v1152_v1 = vsel %vm11622_vm12, %v7330_v7, %v7331_v10  ;;  %vm9729_vm4 = vmpackc.low %vm1213_vm15, %vm9685_vm9  ;;  %vm11626_vm6 = vcmp.lt.s32.totalorder %v8087_v19, 119  ;;  %v6427_v52 = vpack.c.bf16 %v1189_v21, %v1151_v49  ;;  %v6505_v63 = vpack.c.bf16 %v1191_v37, %v1153_v31 }
 0x131   : > { %v11624_v34 = vsel %vm9729_vm4, 4294967295, %v11623_v34  ;;  %v1188_v4 = vsel %vm11626_vm6, %v7345_v0, %v7346_v12  ;;  %vm11627_vm8 = vmmov %vm11626_vm6  ;;  %v11628_v54 = vmov 0  ;;  %v11631_v46 = vmov 0 }
 0x132   : > { %11625 = vst [vmem:[#allocation33_spill] sm:$0xff] %v11624_v34  ;;  %v1190_v30 = vsel %vm11627_vm8, %v7340_v38, %v7341_v13  ;;  %vm9743_vm15 = vmpackc.low %vm1210_vm10, %vm1171_vm2  ;;  %6428 = vmatprep.subr.msk.bf16.mxu0 %vm9719_vm13, %v6427_v52  ;;  %6506 = vmatprep.subr.msk.bf16.mxu1 %vm9729_vm4, %v6505_v63  ;;  %v6508_v18 = vpack.c.bf16 %v1188_v4, %v1150_v61  ;;  %v2059_v7 = vstv %s2054_s13  ;;  %v9811_v61 = vld [vmem:[%s10903_s3] sm:$0xff]  ;;  %vm11639_vm5 = vcmask 785408  }
 0x133   : > { %v11629_v54 = vsel %vm9743_vm15, 4294967295, %v11628_v54  ;;  %vm9751_vm9 = vmpackc.low %vm1212_vm7, %vm1173_vm3  ;;  %v6430_v27 = vpack.c.bf16 %v1190_v30, %v1152_v1  ;;  %v5665_v8 = vcombine.low %v7869_v57, %v7869_v57  ;;  %v5782_v1 = vcombine.high %v9811_v61, %v9811_v61  ;;  %v7870_v30 = vld [vmem:[%s10906_s6] sm:$0xff] }
 0x134   : > { %11630 = vst [vmem:[#allocation34_spill] sm:$0xff] %v11629_v54  ;;  %v11632_v46 = vsel %vm9751_vm9, 4294967295, %v11631_v46  ;;  %6509 = vmatpush2.bf16.msk.msra.mxu1 %vm9751_vm9, %v6508_v18  ;;  %vm11640_vm12 = vmmov %vm11639_vm5  ;;  %v7919_v4 = vmov 1   ;;  %vm11641_vm6 = vcmp.lt.s32.totalorder %v8087_v19, 121  ;;  %vm11642_vm8 = vcmp.lt.s32.totalorder %v8087_v19, 127  ;;  %v11876_v54 = vld [vmem:[#allocation32_spill] sm:$0xff] }
 0x135   : > { %11633 = vst [vmem:[#allocation39_spill] sm:$0xff] %v11632_v46  ;;  %6431 = vmatpush2.bf16.msk.msra.mxu0 %vm9743_vm15, %v6430_v27  ;;  %7518 = vset.pattern.permute.xlu0 %v7919_v4  ;;  %v11729_v46 = vld [vmem:[#allocation32_spill] sm:$0xff] }
 0x137   : > { %2046 = vmatmul.mubr.bf16.vlgmr.msra.gmra.mxu1 %v5665_v8 }
 0x138   : > { %2005 = vmatmul.mubr.bf16.vlgmr.msra.gmra.mxu0 %v5665_v8  ;;  %5840 = vmatprep.mubr.msk.bf16.mxu1 %vm11640_vm12, %v5782_v1 }
 0x139   : > { %5839 = vmatprep.mubr.msk.bf16.mxu0 %vm11639_vm5, %v5782_v1  ;;  %vm11647_vm5 = vmmov %vm11641_vm6 }
 0x13a   : > { %vm11648_vm12 = vmmov %vm11647_vm5 }
 0x1f7   : > { %v2047_v47 = vpop.f32.mrf.mxu1 }
 0x1f8   : > { %v2006_v23 = vpop.f32.mrf.mxu0  ;;  %v2048_v0 = vadd.f32 %v2047_v47, %v1680_v32 }
 0x1f9   : > { %v2007_v10 = vadd.f32 %v2006_v23, %v1680_v32  ;;  %v2049_v15 = vpop.f32.mrf.mxu1 }
 0x1fa   : > { %v2008_v56 = vpop.f32.mrf.mxu0  ;;  %v2050_v38 = vadd.f32 %v2049_v15, %v1680_v32  ;;  %v2062_v20 = vmul.f32 %v2059_v7, %v2048_v0  ;;  %vm2057_vm10 = vcmp.ge.f32.partialorder %v2048_v0, 0.0 }
 0x1fb   : > { %v2060_v12 = vmul.f32 %v2059_v7, %v2007_v10  ;;  %v2009_v13 = vadd.f32 %v2008_v56, %v1680_v32  ;;  %v2051_v60 = vpop.f32.mrf.mxu1  ;;  %vm2055_vm7 = vcmp.ge.f32.partialorder %v2007_v10, 0.0 }
 0x1fc   : > { %v2010_v48 = vpop.f32.mrf.mxu0  ;;  %v2063_v35 = vmul.f32 %v2059_v7, %v2050_v38  ;;  %vm2058_vm2 = vcmp.ge.f32.partialorder %v2050_v38, 0.0  ;;  %v9772_v21 = vsel %vm2057_vm10, %v2048_v0, %v2062_v20 }
 0x1fd   : > { %vm2056_vm3 = vcmp.ge.f32.partialorder %v2009_v13, 0.0  ;;  %v2061_v16 = vmul.f32 %v2059_v7, %v2009_v13  ;;  %v2052_v50 = vpop.f32.mrf.mxu1  ;;  %v9762_v44 = vsel %vm2055_vm7, %v2007_v10, %v2060_v12  ;;  %vm11643_vm7 = vcmp.lt.s32.totalorder %v8087_v19, 1 }
 0x1fe   : > { %v2011_v53 = vpop.f32.mrf.mxu0  ;;  %v9768_v31 = vsel %vm2058_vm2, %v2050_v38, %v2063_v35 }
 0x1ff   : > { %v9764_v49 = vsel %vm2056_vm3, %v2009_v13, %v2061_v16  ;;  %v7353_v37 = vpack.i.bf16 %v9768_v31, %v9772_v21  ;;  %vm11644_vm3 = vmmov %vm11642_vm8 }
 0x200   : > { %v7358_v33 = vpack.i.bf16 %v9764_v49, %v9762_v44  ;;  %vm11645_vm2 = vmmov %vm11644_vm3 }
 0x201   : > { %vm11646_vm10 = vmmov %vm11645_vm2 }
 0x202   : > { %7359 = vrot.lane.b32.xlu0 %v7358_v33, %s7900_s17  ;;  %7349 = vrot.lane.b32.xlu1 %v7358_v33, %s7901_s18 }
 0x206   : > { %7369 = vrot.lane.b32.xlu0 %v7358_v33, %s7902_s19  ;;  %7354 = vrot.lane.b32.xlu1 %v7353_v37, %s7901_s18 }
 0x20a   : > { %7379 = vrot.lane.b32.xlu0 %v7358_v33, %s7903_s20  ;;  %7364 = vrot.lane.b32.xlu1 %v7353_v37, %s7900_s17 }
 0x20e   : > { %7389 = vrot.lane.b32.xlu0 %v7358_v33, %s7904_s21  ;;  %7374 = vrot.lane.b32.xlu1 %v7353_v37, %s7902_s19 }
 0x212   : > { %7399 = vrot.lane.b32.xlu0 %v7358_v33, %s7905_s22  ;;  %7384 = vrot.lane.b32.xlu1 %v7353_v37, %s7903_s20 }
 0x216   : > { %7409 = vrot.lane.b32.xlu0 %v7358_v33, %s7906_s23  ;;  %7394 = vrot.lane.b32.xlu1 %v7353_v37, %s7904_s21 }
 0x21a   : > { %7419 = vrot.lane.b32.xlu0 %v7358_v33, %s7907_s24  ;;  %7404 = vrot.lane.b32.xlu1 %v7353_v37, %s7905_s22 }
 0x21e   : > { %7429 = vrot.lane.b32.xlu0 %v7358_v33, %s7908_s25  ;;  %7414 = vrot.lane.b32.xlu1 %v7353_v37, %s7906_s23 }
 0x222   : > { %7439 = vrot.lane.b32.xlu0 %v7358_v33, %s7909_s26  ;;  %7424 = vrot.lane.b32.xlu1 %v7353_v37, %s7907_s24 }
 0x226   : > { %7449 = vrot.lane.b32.xlu0 %v7358_v33, %s11094_s29  ;;  %7434 = vrot.lane.b32.xlu1 %v7353_v37, %s7908_s25 }
 0x22a   : > { %7459 = vrot.lane.b32.xlu0 %v7358_v33, %s11084_s30  ;;  %7444 = vrot.lane.b32.xlu1 %v7353_v37, %s7909_s26 }
 0x22e   : > { %7469 = vrot.lane.b32.xlu0 %v7358_v33, %s11634_s14  ;;  %7454 = vrot.lane.b32.xlu1 %v7353_v37, %s11094_s29 }
 0x232   : > { %7479 = vrot.lane.b32.xlu0 %v7358_v33, %s11635_s15  ;;  %7464 = vrot.lane.b32.xlu1 %v7353_v37, %s11084_s30  ;;  %s5841_s30 = sld [smem:[#allocation3 + $0x1]] }
 0x236   : > { %7489 = vrot.lane.b32.xlu0 %v7358_v33, %s11636_s16  ;;  %7474 = vrot.lane.b32.xlu1 %v7353_v37, %s11634_s14 }
 0x23a   : > { %7499 = vrot.lane.b32.xlu0 %v7358_v33, %s11637_s9  ;;  %7484 = vrot.lane.b32.xlu1 %v7353_v37, %s11635_s15 }
 0x23e   : > { %7509 = vrot.lane.b32.xlu0 %v7358_v33, %s11638_s10  ;;  %7494 = vrot.lane.b32.xlu1 %v7353_v37, %s11636_s16 }
 0x242   : > { %7504 = vrot.lane.b32.xlu1 %v7353_v37, %s11637_s9  ;;  %2828 = vperm.xlu0 %7518, %v7870_v30  }
 0x246   : > { %7514 = vrot.lane.b32.xlu1 %v7353_v37, %s11638_s10 }
 0x274   : > { %v7360_v52 = vpop.permute.xlu0 %7359  ;;  %v7350_v63 = vpop.permute.xlu1 %7349 }
 0x275   : > { %v7362_v27 = vunpack.i.h.bf16 %v7360_v52  ;;  %v7361_v18 = vunpack.i.l.bf16 %v7360_v52  ;;  %v7352_v57 = vunpack.i.h.bf16 %v7350_v63  ;;  %v7351_v8 = vunpack.i.l.bf16 %v7350_v63 }
 0x277   : > { %v2498_v47 = vsel %vm11641_vm6, %v7361_v18, %v7362_v27  ;;  %v2482_v10 = vsel %vm11642_vm8, %v7351_v8, %v7352_v57  ;;  %vm11649_vm6 = vmmov %vm11647_vm5 }
 0x278   : > { %v7370_v32 = vpop.permute.xlu0 %7369  ;;  %v7355_v23 = vpop.permute.xlu1 %7354  ;;  %v6566_v38 = vpack.c.bf16 %v2498_v47, %v2482_v10 }
 0x279   : > { %v7372_v7 = vunpack.i.h.bf16 %v7370_v32  ;;  %v7371_v56 = vunpack.i.l.bf16 %v7370_v32  ;;  %v7357_v15 = vunpack.i.h.bf16 %v7355_v23  ;;  %v7356_v12 = vunpack.i.l.bf16 %v7355_v23 }
 0x27b   : > { %v2438_v16 = vsel %vm11643_vm7, %v7371_v56, %v7372_v7  ;;  %v2480_v35 = vsel %vm11644_vm3, %v7356_v12, %v7357_v15  ;;  %v2481_v53 = vsel %vm11645_vm2, %v7352_v57, %v7356_v12  ;;  %v2483_v50 = vsel %vm11646_vm10, %v7357_v15, %v7351_v8  ;;  %v11650_v15 = vld [vmem:[#allocation7_spill] sm:$0xff] }
 0x27c   : > { %v7380_v0 = vpop.permute.xlu0 %7379  ;;  %v7365_v13 = vpop.permute.xlu1 %7364  ;;  %vm11651_vm8 = vnez %v11650_v15  ;;  %v6569_v12 = vpack.c.bf16 %v9764_v49, %v2438_v16  ;;  %vm11654_vm3 = vcmp.lt.s32.totalorder %v8087_v19, 7  ;;  %vm11655_vm2 = vcmp.lt.s32.totalorder %v8087_v19, 1  ;;  %v11661_v16 = vld [vmem:[#allocation10_spill] sm:$0xff] }
 0x27d   : > { %v7367_v48 = vunpack.i.h.bf16 %v7365_v13  ;;  %v7366_v60 = vunpack.i.l.bf16 %v7365_v13  ;;  %v7382_v20 = vunpack.i.h.bf16 %v7380_v0  ;;  %v7381_v4 = vunpack.i.l.bf16 %v7380_v0  ;;  %vm11656_vm10 = vmmov %vm11655_vm2 }
 0x27f   : > { %v2499_v33 = vsel %vm11647_vm5, %v7367_v48, %v7361_v18  ;;  %v2496_v37 = vsel %vm11648_vm12, %v7366_v60, %v7367_v48  ;;  %v2497_v1 = vsel %vm11649_vm6, %v7362_v27, %v7366_v60  ;;  %v11652_v18 = vld [vmem:[#allocation8_spill] sm:$0xff]  ;;  %vm11657_vm5 = vmmov %vm11655_vm2  ;;  %v11658_v60 = vld [vmem:[#allocation9_spill] sm:$0xff]  ;;  %vm11660_vm6 = vcmp.lt.s32.totalorder %v8087_v19, 8 }
 0x280   : > { %v6644_v30 = vpack.c.bf16 %v2496_v37, %v2480_v35  ;;  %v7390_v52 = vpop.permute.xlu0 %7389  ;;  %v7375_v63 = vpop.permute.xlu1 %7374  ;;  %v6563_v32 = vpack.c.bf16 %v2497_v1, %v2481_v53  ;;  %v6641_v23 = vpack.c.bf16 %v2499_v33, %v2483_v50  ;;  %vm11653_vm7 = vnez %v11652_v18 }
 0x281   : > { %v7392_v57 = vunpack.i.h.bf16 %v7390_v52  ;;  %v7391_v47 = vunpack.i.l.bf16 %v7390_v52  ;;  %v7377_v10 = vunpack.i.h.bf16 %v7375_v63  ;;  %v7376_v8 = vunpack.i.l.bf16 %v7375_v63 }
 0x282   : > { %6564 = vmatprep.subr.msk.bf16.mxu0 %vm11651_vm8, %v6563_v32  ;;  %6642 = vmatprep.subr.msk.bf16.mxu1 %vm11653_vm7, %v6641_v23  ;;  %vm11659_vm12 = vnez %v11658_v60  ;;  %v2378_v35 = vsel %vm11660_vm6, %v7381_v4, %v7382_v20  ;;  %vm11662_vm7 = vnez %v11661_v16  ;;  %v11665_v32 = vld [vmem:[#allocation13_spill] sm:$0xff] }
 0x283   : > { %v2394_v27 = vsel %vm11654_vm3, %v7391_v47, %v7392_v57  ;;  %v2439_v0 = vsel %vm11655_vm2, %v7377_v10, %v7371_v56  ;;  %v2436_v13 = vsel %vm11656_vm10, %v7376_v8, %v7377_v10  ;;  %v2437_v48 = vsel %vm11657_vm5, %v7372_v7, %v7376_v8  ;;  %6567 = vmatpush1.bf16.msk.msra.mxu0 %vm11659_vm12, %v6566_v38  ;;  %v11663_v56 = vld [vmem:[#allocation11_spill] sm:$0xff]  ;;  %v11671_v8 = vld [vmem:[#allocation14_spill] sm:$0xff]  ;;  %v11713_v16 = vld [vmem:[#allocation25_spill] sm:$0xff] }
 0x284   : > { %v6572_v49 = vpack.c.bf16 %v9762_v44, %v2439_v0  ;;  %6645 = vmatpush1.bf16.msk.msra.mxu1 %vm11662_vm7, %v6644_v30  ;;  %v7400_v53 = vpop.permute.xlu0 %7399  ;;  %v7385_v50 = vpop.permute.xlu1 %7384  ;;  %vm11664_vm3 = vnez %v11663_v56  ;;  %v6575_v33 = vpack.c.bf16 %v2394_v27, %v2378_v35  ;;  %v6650_v37 = vpack.c.bf16 %v9772_v21, %v2437_v48  ;;  %v11667_v44 = vld [vmem:[#allocation12_spill] sm:$0xff]  ;;  %v11669_v10 = vld [vmem:[#allocation15_spill] sm:$0xff] }
 0x285   : > { %6570 = vmatprep.subr.msk.bf16.mxu0 %vm11664_vm3, %v6569_v12  ;;  %v7402_v7 = vunpack.i.h.bf16 %v7400_v53  ;;  %v7401_v1 = vunpack.i.l.bf16 %v7400_v53  ;;  %v7387_v52 = vunpack.i.h.bf16 %v7385_v50  ;;  %v7386_v38 = vunpack.i.l.bf16 %v7385_v50 }
 0x286   : > { %v6647_v63 = vpack.c.bf16 %v9768_v31, %v2436_v13  ;;  %vm11666_vm2 = vnez %v11665_v32  ;;  %vm11668_vm10 = vnez %v11667_v44  ;;  %vm11670_vm5 = vnez %v11669_v10 }
 0x287   : > { %6573 = vmatpush1.bf16.msk.msra.mxu0 %vm11666_vm2, %v6572_v49  ;;  %vm11672_vm6 = vnez %v11671_v8  ;;  %vm11673_vm3 = vcmp.lt.s32.totalorder %v8087_v19, 55  ;;  %vm11674_vm2 = vcmp.lt.s32.totalorder %v8087_v19, 8  ;;  %v11681_v8 = vld [vmem:[#allocation17_spill] sm:$0xff] }
 0x288   : > { %6648 = vmatprep.subr.msk.bf16.mxu1 %vm11668_vm10, %v6647_v63  ;;  %v7410_v30 = vpop.permute.xlu0 %7409  ;;  %v7395_v23 = vpop.permute.xlu1 %7394  ;;  %6576 = vmatprep.subr.msk.bf16.mxu0 %vm11670_vm5, %v6575_v33  ;;  %v9872_v31 = vsel %vm11673_vm3, %v7401_v1, %v7402_v7  ;;  %v2379_v13 = vsel %vm11674_vm2, %v7387_v52, %v7381_v4  ;;  %vm11675_vm10 = vmmov %vm11674_vm2  ;;  %vm11677_vm5 = vcmp.lt.s32.totalorder %v8087_v19, 9 }
 0x289   : > { %6651 = vmatpush1.bf16.msk.msra.mxu1 %vm11672_vm6, %v6650_v37  ;;  %v7412_v21 = vunpack.i.h.bf16 %v7410_v30  ;;  %v7411_v12 = vunpack.i.l.bf16 %v7410_v30  ;;  %v7397_v27 = vunpack.i.h.bf16 %v7395_v23  ;;  %v7396_v0 = vunpack.i.l.bf16 %v7395_v23  ;;  %vm11676_vm7 = vmmov %vm11674_vm2 }
 0x28a   : > { %v2376_v48 = vsel %vm11675_vm10, %v7386_v38, %v7387_v52  ;;  %v2377_v35 = vsel %vm11676_vm7, %v7382_v20, %v7386_v38  ;;  %vm11678_vm6 = vcmp.lt.s32.totalorder %v8087_v19, 7  ;;  %vm11682_vm7 = vnez %v11681_v8  ;;  %v11697_v8 = vld [vmem:[#allocation21_spill] sm:$0xff] }
 0x28b   : > { %v2334_v49 = vsel %vm11677_vm5, %v7411_v12, %v7412_v21  ;;  %v2395_v53 = vsel %vm11678_vm6, %v7397_v27, %v7391_v47  ;;  %vm11679_vm12 = vmmov %vm11678_vm6  ;;  %v11683_v47 = vld [vmem:[#allocation16_spill] sm:$0xff]  ;;  %vm11689_vm5 = vcmp.lt.s32.totalorder %v8087_v19, 57 }
 0x28c   : > { %v2392_v50 = vsel %vm11679_vm12, %v7396_v0, %v7397_v27  ;;  %vm11680_vm3 = vmmov %vm11678_vm6  ;;  %v6581_v4 = vpack.c.bf16 %v2334_v49, %v9872_v31  ;;  %v6578_v37 = vpack.c.bf16 %v2395_v53, %v2379_v13  ;;  %v7420_v30 = vpop.permute.xlu0 %7419  ;;  %v7405_v23 = vpop.permute.xlu1 %7404  ;;  %vm11684_vm2 = vnez %v11683_v47  ;;  %v11685_v27 = vld [vmem:[#allocation19_spill] sm:$0xff] }
 0x28d   : > { %v2393_v33 = vsel %vm11680_vm3, %v7392_v57, %v7396_v0  ;;  %v6653_v63 = vpack.c.bf16 %v2392_v50, %v2376_v48  ;;  %v7422_v20 = vunpack.i.h.bf16 %v7420_v30  ;;  %v7421_v38 = vunpack.i.l.bf16 %v7420_v30  ;;  %v11687_v57 = vld [vmem:[#allocation18_spill] sm:$0xff] }
 0x28e   : > { %v6656_v52 = vpack.c.bf16 %v2393_v33, %v2377_v35  ;;  %v7407_v36 = vunpack.i.h.bf16 %v7405_v23  ;;  %v7406_v10 = vunpack.i.l.bf16 %v7405_v23  ;;  %6579 = vmatpush1.bf16.msk.msra.mxu0 %vm11682_vm7, %v6578_v37  ;;  %vm11686_vm12 = vnez %v11685_v27 }
 0x28f   : > { %6654 = vmatprep.subr.msk.bf16.mxu1 %vm11684_vm2, %v6653_v63  ;;  %6582 = vmatprep.subr.msk.bf16.mxu0 %vm11686_vm12, %v6581_v4  ;;  %vm11688_vm10 = vnez %v11687_v57  ;;  %v2258_v50 = vsel %vm11689_vm5, %v7421_v38, %v7422_v20  ;;  %vm11690_vm6 = vcmp.lt.s32.totalorder %v8087_v19, 55  ;;  %vm11694_vm2 = vcmp.lt.s32.totalorder %v8087_v19, 9 }
 0x290   : > { %6657 = vmatpush1.bf16.msk.msra.mxu1 %vm11688_vm10, %v6656_v52  ;;  %v7430_v0 = vpop.permute.xlu0 %7429  ;;  %v7415_v13 = vpop.permute.xlu1 %7414  ;;  %v9901_v33 = vsel %vm11690_vm6, %v7407_v36, %v7401_v1  ;;  %vm11691_vm3 = vmmov %vm11690_vm6  ;;  %vm11693_vm10 = vcmp.lt.s32.totalorder %v8087_v19, 56 }
 0x291   : > { %v7432_v48 = vunpack.i.h.bf16 %v7430_v0  ;;  %v7431_v35 = vunpack.i.l.bf16 %v7430_v0  ;;  %v7417_v49 = vunpack.i.h.bf16 %v7415_v13  ;;  %v7416_v53 = vunpack.i.l.bf16 %v7415_v13  ;;  %vm11692_vm12 = vmmov %vm11691_vm3 }
 0x292   : > { %v9905_v37 = vsel %vm11691_vm3, %v7406_v10, %v7407_v36  ;;  %v9909_v4 = vsel %vm11692_vm12, %v7402_v7, %v7406_v10  ;;  %vm11695_vm5 = vmmov %vm11694_vm2 }
 0x293   : > { %v2274_v63 = vsel %vm11693_vm10, %v7431_v35, %v7432_v48  ;;  %v2335_v52 = vsel %vm11694_vm2, %v7417_v49, %v7411_v12  ;;  %v2332_v30 = vsel %vm11695_vm5, %v7416_v53, %v7417_v49  ;;  %vm11696_vm6 = vmmov %vm11694_vm2  ;;  %vm11698_vm2 = vnez %v11697_v8  ;;  %v11699_v49 = vld [vmem:[#allocation20_spill] sm:$0xff] }
 0x294   : > { %v2333_v1 = vsel %vm11696_vm6, %v7412_v21, %v7416_v53  ;;  %v9919_v23 = vpack.c.bf16 %v2274_v63, %v2258_v50  ;;  %v6584_v36 = vpack.c.bf16 %v2335_v52, %v9901_v33  ;;  %v6659_v0 = vpack.c.bf16 %v2332_v30, %v9905_v37  ;;  %v7440_v10 = vpop.permute.xlu0 %7439  ;;  %v7425_v13 = vpop.permute.xlu1 %7424  ;;  %v11701_v21 = vld [vmem:[#allocation23_spill] sm:$0xff]  ;;  %v11703_v53 = vld [vmem:[#allocation22_spill] sm:$0xff] }
 0x295   : > { %v6662_v7 = vpack.c.bf16 %v2333_v1, %v9909_v4  ;;  %v7442_v57 = vunpack.i.h.bf16 %v7440_v10  ;;  %v7441_v27 = vunpack.i.l.bf16 %v7440_v10  ;;  %v7427_v47 = vunpack.i.h.bf16 %v7425_v13 }
 0x296   : > { %v7426_v12 = vunpack.i.l.bf16 %v7425_v13  ;;  %6585 = vmatpush1.bf16.msk.msra.mxu0 %vm11698_vm2, %v6584_v36  ;;  %vm11700_vm12 = vnez %v11699_v49  ;;  %vm11702_vm10 = vnez %v11701_v21  ;;  %vm11704_vm3 = vnez %v11703_v53 }
 0x297   : > { %6660 = vmatprep.subr.msk.bf16.mxu1 %vm11700_vm12, %v6659_v0  ;;  %6588 = vmatprep.subr.msk.bf16.mxu0 %vm11702_vm10, %v9919_v23  ;;  %vm11705_vm5 = vcmp.lt.s32.totalorder %v8087_v19, 64  ;;  %vm11706_vm6 = vcmp.lt.s32.totalorder %v8087_v19, 57  ;;  %vm11710_vm2 = vcmp.lt.s32.totalorder %v8087_v19, 56 }
 0x298   : > { %6663 = vmatpush1.bf16.msk.msra.mxu1 %vm11704_vm3, %v6662_v7  ;;  %v7450_v50 = vpop.permute.xlu0 %7449  ;;  %v7435_v63 = vpop.permute.xlu1 %7434  ;;  %v2198_v13 = vsel %vm11705_vm5, %v7441_v27, %v7442_v57  ;;  %v2259_v36 = vsel %vm11706_vm6, %v7427_v47, %v7421_v38  ;;  %vm11707_vm12 = vmmov %vm11706_vm6  ;;  %vm11709_vm3 = vcmp.lt.s32.totalorder %v8087_v19, 63 }
 0x299   : > { %v7452_v52 = vunpack.i.h.bf16 %v7450_v50  ;;  %v7451_v30 = vunpack.i.l.bf16 %v7450_v50  ;;  %v7437_v1 = vunpack.i.h.bf16 %v7435_v63  ;;  %v7436_v10 = vunpack.i.l.bf16 %v7435_v63  ;;  %vm11708_vm10 = vmmov %vm11706_vm6 }
 0x29a   : > { %v2256_v0 = vsel %vm11707_vm12, %v7426_v12, %v7427_v47  ;;  %v2257_v21 = vsel %vm11708_vm10, %v7422_v20, %v7426_v12  ;;  %vm11711_vm7 = vmmov %vm11710_vm2  ;;  %vm11722_vm6 = vcmp.lt.s32.totalorder %v8087_v19, 64 }
 0x29b   : > { %v2214_v7 = vsel %vm11709_vm3, %v7451_v30, %v7452_v52  ;;  %v2275_v50 = vsel %vm11710_vm2, %v7437_v1, %v7431_v35  ;;  %v2272_v63 = vsel %vm11711_vm7, %v7436_v10, %v7437_v1  ;;  %vm11712_vm5 = vmmov %vm11710_vm2  ;;  %vm11714_vm7 = vnez %v11713_v16  ;;  %v11717_v1 = vld [vmem:[#allocation27_spill] sm:$0xff] }
 0x29c   : > { %v2273_v53 = vsel %vm11712_vm5, %v7432_v48, %v7436_v10  ;;  %v9949_v49 = vpack.c.bf16 %v2214_v7, %v2198_v13  ;;  %v9951_v38 = vpack.c.bf16 %v2275_v50, %v2259_v36  ;;  %v9955_v8 = vpack.c.bf16 %v2272_v63, %v2256_v0  ;;  %v7460_v20 = vpop.permute.xlu0 %7459  ;;  %v7445_v12 = vpop.permute.xlu1 %7444  ;;  %v11715_v48 = vld [vmem:[#allocation24_spill] sm:$0xff]  ;;  %vm11723_vm5 = vmmov %vm11722_vm6 }
 0x29d   : > { %v9953_v47 = vpack.c.bf16 %v2273_v53, %v2257_v21  ;;  %v7462_v32 = vunpack.i.h.bf16 %v7460_v20  ;;  %v7461_v44 = vunpack.i.l.bf16 %v7460_v20  ;;  %v7447_v56 = vunpack.i.h.bf16 %v7445_v12  ;;  %v11719_v21 = vld [vmem:[#allocation26_spill] sm:$0xff] }
 0x29e   : > { %v7446_v35 = vunpack.i.l.bf16 %v7445_v12  ;;  %6591 = vmatpush1.bf16.msk.msra.mxu0 %vm11714_vm7, %v9951_v38  ;;  %vm11716_vm2 = vnez %v11715_v48  ;;  %vm11718_vm12 = vnez %v11717_v1  ;;  %vm11720_vm10 = vnez %v11719_v21 }
 0x29f   : > { %6666 = vmatprep.subr.msk.bf16.mxu1 %vm11716_vm2, %v9955_v8  ;;  %6594 = vmatprep.subr.msk.bf16.mxu0 %vm11718_vm12, %v9949_v49  ;;  %vm11721_vm3 = vcmp.lt.s32.totalorder %v8087_v19, 71  ;;  %v2199_v63 = vsel %vm11722_vm6, %v7447_v56, %v7441_v27  ;;  %vm11724_vm12 = vmmov %vm11723_vm5  ;;  %vm11726_vm2 = vcmp.lt.s32.totalorder %v8087_v19, 63  ;;  %vm11736_vm6 = vcmp.lt.s32.totalorder %v8087_v19, 73 }
 0x2a0   : > { %6669 = vmatpush1.bf16.msk.msra.mxu1 %vm11720_vm10, %v9953_v47  ;;  %v7470_v53 = vpop.permute.xlu0 %7469  ;;  %v7455_v10 = vpop.permute.xlu1 %7454  ;;  %v2138_v50 = vsel %vm11721_vm3, %v7461_v44, %v7462_v32  ;;  %v2196_v20 = vsel %vm11723_vm5, %v7446_v35, %v7447_v56  ;;  %v2197_v12 = vsel %vm11724_vm12, %v7442_v57, %v7446_v35  ;;  %vm11725_vm10 = vcmp.lt.s32.totalorder %v8087_v19, 65  ;;  %vm11727_vm7 = vmmov %vm11726_vm2 }
 0x2a1   : > { %v7472_v13 = vunpack.i.h.bf16 %v7470_v53  ;;  %v7471_v36 = vunpack.i.l.bf16 %v7470_v53  ;;  %v7457_v0 = vunpack.i.h.bf16 %v7455_v10  ;;  %v7456_v7 = vunpack.i.l.bf16 %v7455_v10  ;;  %vm11728_vm3 = vmmov %vm11726_vm2 }
 0x2a2   : > { %vm11733_vm12 = vnez %v11427_v42  ;;  %vm11737_vm5 = vcmp.lt.s32.totalorder %v8087_v19, 71 }
 0x2a3   : > { %v2154_v21 = vsel %vm11725_vm10, %v7471_v36, %v7472_v13  ;;  %v2215_v53 = vsel %vm11726_vm2, %v7457_v0, %v7451_v30  ;;  %v2212_v10 = vsel %vm11727_vm7, %v7456_v7, %v7457_v0  ;;  %v2213_v1 = vsel %vm11728_vm3, %v7452_v52, %v7456_v7  ;;  %v11731_v52 = vld [vmem:[#allocation28_spill] sm:$0xff]  ;;  %vm11738_vm3 = vmmov %vm11737_vm5 }
 0x2a4   : > { %v9985_v48 = vpack.c.bf16 %v2154_v21, %v2138_v50  ;;  %v9987_v27 = vpack.c.bf16 %v2215_v53, %v2199_v63  ;;  %v9989_v56 = vpack.c.bf16 %v2213_v1, %v2197_v12  ;;  %v9991_v16 = vpack.c.bf16 %v2212_v10, %v2196_v20  ;;  %v7480_v57 = vpop.permute.xlu0 %7479  ;;  %v7465_v35 = vpop.permute.xlu1 %7464  ;;  %v11734_v1 = vld [vmem:[#allocation36_spill] sm:$0xff] }
 0x2a5   : > { %v7482_v60 = vunpack.i.h.bf16 %v7480_v57  ;;  %v7481_v18 = vunpack.i.l.bf16 %v7480_v57  ;;  %v7467_v15 = vunpack.i.h.bf16 %v7465_v35  ;;  %v7466_v30 = vunpack.i.l.bf16 %v7465_v35 }
 0x2a6   : > { %vm11730_vm7 = vnez %v11729_v46  ;;  %vm11732_vm2 = vnez %v11731_v52  ;;  %vm11735_vm10 = vnez %v11734_v1 }
 0x2a7   : > { %6597 = vmatpush1.bf16.msk.msra.mxu0 %vm11730_vm7, %v9987_v27  ;;  %6672 = vmatprep.subr.msk.bf16.mxu1 %vm11732_vm2, %v9991_v16  ;;  %v2078_v12 = vsel %vm11736_vm6, %v7481_v18, %v7482_v60  ;;  %v2139_v53 = vsel %vm11737_vm5, %v7467_v15, %v7461_v44  ;;  %v2136_v10 = vsel %vm11738_vm3, %v7466_v30, %v7467_v15  ;;  %vm11741_vm2 = vcmp.lt.s32.totalorder %v8087_v19, 65 }
 0x2a8   : > { %6600 = vmatprep.subr.msk.bf16.mxu0 %vm11733_vm12, %v9985_v48  ;;  %6675 = vmatpush1.bf16.msk.msra.mxu1 %vm11735_vm10, %v9989_v56  ;;  %v7490_v21 = vpop.permute.xlu0 %7489  ;;  %v7475_v0 = vpop.permute.xlu1 %7474  ;;  %vm11739_vm12 = vmmov %vm11738_vm3  ;;  %vm11740_vm10 = vcmp.lt.s32.totalorder %v8087_v19, 72 }
 0x2a9   : > { %v7492_v7 = vunpack.i.h.bf16 %v7490_v21  ;;  %v7491_v50 = vunpack.i.l.bf16 %v7490_v21  ;;  %v7477_v63 = vunpack.i.h.bf16 %v7475_v0  ;;  %v7476_v20 = vunpack.i.l.bf16 %v7475_v0  ;;  %vm11742_vm7 = vmmov %vm11741_vm2 }
 0x2aa   : > { %v2137_v57 = vsel %vm11739_vm12, %v7462_v32, %v7466_v30  ;;  %vm11743_vm6 = vmmov %vm11741_vm2  ;;  %vm11744_vm12 = vnez %v11455_v62 }
 0x2ab   : > { %v2094_v35 = vsel %vm11740_vm10, %v7491_v50, %v7492_v7  ;;  %v2155_v21 = vsel %vm11741_vm2, %v7477_v63, %v7471_v36  ;;  %v2152_v0 = vsel %vm11742_vm7, %v7476_v20, %v7477_v63  ;;  %v2153_v1 = vsel %vm11743_vm6, %v7472_v13, %v7476_v20  ;;  %v11748_v36 = vld [vmem:[#allocation30_spill] sm:$0xff] }
 0x2ac   : > { %v10021_v42 = vpack.c.bf16 %v2094_v35, %v2078_v12  ;;  %v6602_v44 = vpack.c.bf16 %v2155_v21, %v2139_v53  ;;  %v6623_v52 = vpack.c.bf16 %v2153_v1, %v2137_v57  ;;  %v10023_v15 = vpack.c.bf16 %v2152_v0, %v2136_v10  ;;  %v7485_v46 = vpop.permute.xlu1 %7484  ;;  %v11752_v20 = vld [vmem:[#allocation38_spill] sm:$0xff]  ;;  %v11754_v53 = vld [vmem:[#allocation29_spill] sm:$0xff] }
 0x2ad   : > { %v7487_v32 = vunpack.i.h.bf16 %v7485_v46  ;;  %v7486_v30 = vunpack.i.l.bf16 %v7485_v46  ;;  %vm11745_vm2 = vnez %v11435_v22  ;;  %vm11746_vm7 = vnez %v11388_v25  ;;  %v11750_v46 = vld [vmem:[#allocation31_spill] sm:$0xff] }
 0x2ae   : > { %6603 = vmatpush1.bf16.msk.msra.mxu0 %vm11744_vm12, %v6602_v44  ;;  %6678 = vmatprep.subr.msk.bf16.mxu1 %vm11745_vm2, %v10023_v15  ;;  %v2737_v13 = vsel %vm11746_vm7, %v9909_v4, 0.0  ;;  %vm11747_vm10 = vnez %v11486_v3  ;;  %vm11749_vm5 = vnez %v11748_v36  ;;  %vm11751_vm3 = vnez %v11750_v46 }
 0x2af   : > { %6606 = vmatprep.subr.msk.bf16.mxu0 %vm11747_vm10, %v10021_v42  ;;  %v2738_v1 = vsel %vm11749_vm5, %v9905_v37, 0.0  ;;  %v2739_v63 = vsel %vm11751_vm3, %v9901_v33, 0.0  ;;  %vm11753_vm6 = vnez %v11752_v20  ;;  %vm11755_vm2 = vnez %v11754_v53 }
 0x2b0   : > { %6681 = vmatpush1.bf16.msk.msra.mxu1 %vm11753_vm6, %v6623_v52  ;;  %v7495_v12 = vpop.permute.xlu1 %7494  ;;  %v2736_v4 = vsel %vm11755_vm2, %v9872_v31, 0.0  ;;  %vm11756_vm10 = vcmp.lt.s32.totalorder %v8087_v19, 73  ;;  %v6187_v0 = vpack.c.bf16 %v2739_v63, %v2738_v1  ;;  %vm11759_vm6 = vcmp.lt.s32.totalorder %v8087_v19, 72 }
 0x2b1   : > { %v7497_v10 = vunpack.i.h.bf16 %v7495_v12  ;;  %v7496_v57 = vunpack.i.l.bf16 %v7495_v12  ;;  %v6186_v35 = vpack.c.bf16 %v2737_v13, %v2736_v4  ;;  %v2079_v21 = vsel %vm11756_vm10, %v7487_v32, %v7481_v18  ;;  %vm11757_vm5 = vmmov %vm11756_vm10 }
 0x2b2   : > { %v2076_v37 = vsel %vm11757_vm5, %v7486_v30, %v7487_v32  ;;  %vm11758_vm3 = vmmov %vm11757_vm5  ;;  %v11762_v18 = vmov 0.0|0.0   ;;  %vm11763_vm10 = vnez %v11502_v26  ;;  %vm11764_vm5 = vnez %v11488_v5 }
 0x2b3   : > { %v2077_v33 = vsel %vm11758_vm3, %v7482_v60, %v7486_v30  ;;  %v2095_v20 = vsel %vm11759_vm6, %v7497_v10, %v7491_v50  ;;  %vm11760_vm7 = vmmov %vm11759_vm6  ;;  %v5836_v46 = vcombine.high %v6186_v35, %v11762_v18  ;;  %v5838_v60 = vcombine.high %v6187_v0, %v11762_v18  ;;  %v7500_v30 = vpop.permute.xlu0 %7499 }
 0x2b4   : > { %v2092_v53 = vsel %vm11760_vm7, %v7496_v57, %v7497_v10  ;;  %vm11761_vm2 = vmmov %vm11759_vm6  ;;  %v6608_v13 = vpack.c.bf16 %v2095_v20, %v2079_v21  ;;  %vm11765_vm3 = vnez %v11506_v24  ;;  %v7505_v50 = vpop.permute.xlu1 %7504  ;;  %v5837_v32 = vcombine.low %v6187_v0, %v11762_v18 }
 0x2b5   : > { %v2093_v31 = vsel %vm11761_vm2, %v7492_v7, %v7496_v57  ;;  %v6683_v4 = vpack.c.bf16 %v2092_v53, %v2076_v37  ;;  %v5835_v7 = vcombine.low %v6186_v35, %v11762_v18  ;;  %vm11766_vm2 = vnez %v11521_v29 }
 0x2b6   : > { %v6629_v12 = vpack.c.bf16 %v2093_v31, %v2077_v33  ;;  %6609 = vmatpush1.bf16.msk.msra.mxu0 %vm11763_vm10, %v6608_v13  ;;  %vm11767_vm7 = vnez %v11530_v9  ;;  %vm11768_vm6 = vnez %v11534_v17  ;;  %v7502_v63 = vunpack.i.h.bf16 %v7500_v30 }
 0x2b7   : > { %6684 = vmatprep.subr.msk.bf16.mxu1 %vm11764_vm5, %v6683_v4  ;;  %3140 = vmatprep.subr.bf16.mxu0 %v5836_v46  ;;  %vm11770_vm5 = vnez %v11538_v41 }
 0x2b8   : > { %6687 = vmatpush1.bf16.msk.msra.mxu1 %vm11765_vm3, %v6629_v12  ;;  %v7515_v1 = vpop.permute.xlu1 %7514  ;;  %vm11769_vm3 = vnez %v11547_v11 }
 0x2b9   : > { %3181 = vmatprep.subr.bf16.mxu1 %v5838_v60  ;;  %v7516_v46 = vunpack.i.l.bf16 %v7515_v1 }
 0x2ba   : > { %3141 = vmatpush2.bf16.msra.mxu0 %v5835_v7 }
 0x2bb   : > { %6612 = vmatprep.subr.msk.bf16.mxu0 %vm11766_vm2, %v9953_v47  ;;  %vm11771_vm2 = vnez %v11553_v40  ;;  %v7510_v47 = vpop.permute.xlu0 %7509 }
 0x2bc   : > { %3182 = vmatpush2.bf16.msra.mxu1 %v5837_v32 }
 0x2bd   : > { %6690 = vmatprep.subr.msk.bf16.mxu1 %vm11767_vm7, %v9951_v38  ;;  %vm11772_vm7 = vnez %v11561_v2  ;;  %v7512_v38 = vunpack.i.h.bf16 %v7510_v47 }
 0x2be   : > { %6615 = vmatpush2.bf16.msk.msra.mxu0 %vm11768_vm6, %v9919_v23  ;;  %v7517_v23 = vunpack.i.h.bf16 %v7515_v1  ;;  %vm11773_vm6 = vnez %v11579_v39 }
 0x2bf   : > { %6618 = vmatprep.subr.msk.bf16.mxu0 %vm11769_vm3, %v9989_v56  ;;  %vm11774_vm3 = vnez %v11570_v55  ;;  %v7507_v56 = vunpack.i.h.bf16 %v7505_v50  ;;  %v2829_v33 = vpop.permute.xlu0 %2828 }
 0x2c0   : > { %6693 = vmatpush2.bf16.msk.msra.mxu1 %vm11770_vm5, %v9955_v8  ;;  %v7506_v8 = vunpack.i.l.bf16 %v7505_v50  ;;  %vm11775_vm5 = vnez %v11585_v51 }
 0x2c1   : > { %6696 = vmatprep.subr.msk.bf16.mxu1 %vm11771_vm2, %v9987_v27  ;;  %v7511_v27 = vunpack.i.l.bf16 %v7510_v47  ;;  %vm11776_vm2 = vcmp.lt.s32.totalorder %v8087_v19, 119 }
 0x2c2   : > { %6621 = vmatpush2.bf16.msk.msra.mxu0 %vm11772_vm7, %v9949_v49  ;;  %v2557_v20 = vsel %vm11776_vm2, %v7512_v38, %v7516_v46  ;;  %v7501_v49 = vunpack.i.l.bf16 %v7500_v30 }
 0x2c3   : > { %6624 = vmatprep.subr.msk.bf16.mxu0 %vm11773_vm6, %v6623_v52  ;;  %vm11777_vm6 = vmmov %vm11776_vm2  ;;  %vm11780_vm2 = vnez %v11603_v58  ;;  %v12071_v58 = vld [vmem:[#allocation35_spill] sm:$0xff] }
 0x2c4   : > { %6699 = vmatpush2.bf16.msk.msra.mxu1 %vm11774_vm3, %v9991_v16  ;;  %v2559_v52 = vsel %vm11777_vm6, %v7517_v23, %v7511_v27  ;;  %vm11779_vm3 = vcmp.lt.s32.totalorder %v8087_v19, 120  ;;  %vm11781_vm7 = vmmov %vm11777_vm6  ;;  %v2556_v10 = vsel %vm11777_vm6, %v7516_v46, %v7517_v23 }
 0x2c5   : > { %6702 = vmatprep.subr.msk.bf16.mxu1 %vm11775_vm5, %v6602_v44  ;;  %vm11778_vm5 = vnez %v11595_v45  ;;  %v2541_v16 = vsel %vm11779_vm3, %v7502_v63, %v7506_v8 }
 0x2c6   : > { %6627 = vmatpush2.bf16.msk.msra.mxu0 %vm9611_vm11, %v9985_v48  ;;  %v2558_v48 = vsel %vm11781_vm7, %v7511_v27, %v7512_v38  ;;  %vm11782_vm11 = vmmov %vm11779_vm3  ;;  %v6635_v53 = vpack.c.bf16 %v2557_v20, %v2541_v16 }
 0x2c7   : > { %6630 = vmatprep.subr.msk.bf16.mxu0 %vm9639_vm14, %v6629_v12  ;;  %v2543_v44 = vsel %vm11782_vm11, %v7507_v56, %v7501_v49  ;;  %vm11783_vm11 = vmmov %vm11779_vm3 }
 0x2c8   : > { %6705 = vmatpush2.bf16.msk.msra.mxu1 %vm11778_vm5, %v10023_v15  ;;  %v6713_v57 = vpack.c.bf16 %v2559_v52, %v2543_v44  ;;  %v2542_v15 = vsel %vm11779_vm3, %v7501_v49, %v7502_v63  ;;  %v2540_v21 = vsel %vm11783_vm11, %v7506_v8, %v7507_v56 }
 0x2c9   : > { %6708 = vmatprep.subr.msk.bf16.mxu1 %vm11780_vm2, %v6608_v13  ;;  %v6638_v35 = vpack.c.bf16 %v2558_v48, %v2542_v15  ;;  %v6716_v37 = vpack.c.bf16 %v2556_v10, %v2540_v21  ;;  %v3207_v13 = vstv %s5841_s30  ;;  %v10187_v48 = vld [vmem:[%s10904_s4] sm:$0xff]  ;;  %v7920_v10 = vmov 2  }
 0x2ca   : > { %6633 = vmatpush2.bf16.msk.msra.mxu0 %vm9681_vm0, %v10021_v42  ;;  %v5781_v42 = vcombine.low %v9811_v61, %v9811_v61  ;;  %11786 = vst [vmem:[#allocation30_spill] sm:$0xff] %v10187_v48  ;;  %v5899_v44 = vcombine.high %v10187_v48, %v10187_v48  ;;  %7689 = vset.pattern.permute.xlu0 %v7920_v10 }
 0x2cb   : > { %6636 = vmatprep.subr.msk.bf16.mxu0 %vm9719_vm13, %v6635_v53  ;;  %v10196_v53 = vld [vmem:[%s10906_s6] sm:$0xff] }
 0x2cc   : > { %6711 = vmatpush2.bf16.msk.msra.mxu1 %vm9705_vm1, %v6683_v4  ;;  %11789 = vst [vmem:[#allocation40_spill] sm:$0xff] %v10196_v53 }
 0x2cd   : > { %6714 = vmatprep.subr.msk.bf16.mxu1 %vm9729_vm4, %v6713_v57 }
 0x2ce   : > { %6639 = vmatpush2.bf16.msk.msra.mxu0 %vm9743_vm15, %v6638_v35 }
 0x2d0   : > { %6717 = vmatpush2.bf16.msk.msra.mxu1 %vm9751_vm9, %v6716_v37  ;;  %vm11796_vm9 = vcmp.lt.s32.totalorder %v8087_v19, 121 }
 0x2d1   : > { %3153 = vmatmul.mubr.bf16.vlgmr.msra.gmra.mxu0 %v5781_v42  ;;  %vm11797_vm15 = vmmov %vm11796_vm9 }
 0x2d2   : > { %vm11798_vm4 = vmmov %vm11796_vm9 }
 0x2d3   : > { %3194 = vmatmul.mubr.bf16.vlgmr.msra.gmra.mxu1 %v5781_v42 }
 0x391   : > { %v3154_v31 = vpop.f32.mrf.mxu0 }
 0x392   : > { %v3155_v12 = vadd.f32 %v3154_v31, %v2829_v33 }
 0x393   : > { %v3195_v4 = vpop.f32.mrf.mxu1  ;;  %v3156_v60 = vpop.f32.mrf.mxu0 }
 0x394   : > { %v3208_v7 = vmul.f32 %v3207_v13, %v3155_v12  ;;  %v3196_v50 = vadd.f32 %v3195_v4, %v2829_v33  ;;  %v3157_v32 = vadd.f32 %v3156_v60, %v2829_v33  ;;  %vm3203_vm7 = vcmp.ge.f32.partialorder %v3155_v12, 0.0 }
 0x395   : > { %v3197_v30 = vpop.f32.mrf.mxu1  ;;  %v3158_v1 = vpop.f32.mrf.mxu0 }
 0x396   : > { %v3198_v61 = vadd.f32 %v3197_v30, %v2829_v33  ;;  %vm3204_vm6 = vcmp.ge.f32.partialorder %v3157_v32, 0.0  ;;  %v3209_v47 = vmul.f32 %v3207_v13, %v3157_v32  ;;  %v10138_v8 = vsel %vm3203_vm7, %v3155_v12, %v3208_v7 }
 0x397   : > { %v3199_v46 = vpop.f32.mrf.mxu1  ;;  %v3159_v38 = vpop.f32.mrf.mxu0  ;;  %v3210_v27 = vmul.f32 %v3207_v13, %v3196_v50  ;;  %vm3205_vm11 = vcmp.ge.f32.partialorder %v3196_v50, 0.0  ;;  %vm11787_vm7 = vcmask 785408  }
 0x398   : > { %vm3206_vm3 = vcmp.ge.f32.partialorder %v3198_v61, 0.0  ;;  %v3211_v23 = vmul.f32 %v3207_v13, %v3198_v61  ;;  %v10140_v56 = vsel %vm3204_vm6, %v3157_v32, %v3209_v47  ;;  %5956 = vmatprep.mubr.msk.bf16.mxu0 %vm11787_vm7, %v5899_v44  ;;  %vm11788_vm6 = vmmov %vm11787_vm7  ;;  %vm11792_vm7 = vcmp.lt.s32.totalorder %v8087_v19, 1 }
 0x399   : > { %v3200_v63 = vpop.f32.mrf.mxu1  ;;  %v7529_v20 = vpack.i.bf16 %v10140_v56, %v10138_v8  ;;  %v10148_v52 = vsel %vm3205_vm11, %v3196_v50, %v3210_v27  ;;  %5957 = vmatprep.mubr.msk.bf16.mxu1 %vm11788_vm6, %v5899_v44  ;;  %vm11791_vm11 = vcmp.lt.s32.totalorder %v8087_v19, 127 }
 0x39a   : > { %v10144_v49 = vsel %vm3206_vm3, %v3198_v61, %v3211_v23  ;;  %vm11790_vm3 = vcmp.lt.s32.totalorder %v8087_v19, 121  ;;  %vm11793_vm6 = vmmov %vm11791_vm11 }
 0x39b   : > { %7530 = vrot.lane.b32.xlu0 %v7529_v20, %s7900_s17  ;;  %7520 = vrot.lane.b32.xlu1 %v7529_v20, %s7901_s18  ;;  %v7524_v16 = vpack.i.bf16 %v10144_v49, %v10148_v52 }
 0x39f   : > { %7540 = vrot.lane.b32.xlu0 %v7529_v20, %s7902_s19  ;;  %7525 = vrot.lane.b32.xlu1 %v7524_v16, %s7901_s18 }
 0x3a3   : > { %7550 = vrot.lane.b32.xlu0 %v7529_v20, %s7903_s20  ;;  %7535 = vrot.lane.b32.xlu1 %v7524_v16, %s7900_s17 }
 0x3a7   : > { %7560 = vrot.lane.b32.xlu0 %v7529_v20, %s7904_s21  ;;  %7545 = vrot.lane.b32.xlu1 %v7524_v16, %s7902_s19 }
 0x3ab   : > { %7570 = vrot.lane.b32.xlu0 %v7529_v20, %s7905_s22  ;;  %7555 = vrot.lane.b32.xlu1 %v7524_v16, %s7903_s20 }
 0x3af   : > { %7580 = vrot.lane.b32.xlu0 %v7529_v20, %s7906_s23  ;;  %7565 = vrot.lane.b32.xlu1 %v7524_v16, %s7904_s21 }
 0x3b3   : > { %7590 = vrot.lane.b32.xlu0 %v7529_v20, %s7907_s24  ;;  %7575 = vrot.lane.b32.xlu1 %v7524_v16, %s7905_s22 }
 0x3b7   : > { %7600 = vrot.lane.b32.xlu0 %v7529_v20, %s7908_s25  ;;  %7585 = vrot.lane.b32.xlu1 %v7524_v16, %s7906_s23 }
 0x3bb   : > { %7610 = vrot.lane.b32.xlu0 %v7529_v20, %s7909_s26  ;;  %7595 = vrot.lane.b32.xlu1 %v7524_v16, %s7907_s24 }
 0x3bf   : > { %7620 = vrot.lane.b32.xlu0 %v7529_v20, %s11094_s29  ;;  %7605 = vrot.lane.b32.xlu1 %v7524_v16, %s7908_s25 }
 0x3c3   : > { %7630 = vrot.lane.b32.xlu0 %v7529_v20, %s11785_s11  ;;  %7615 = vrot.lane.b32.xlu1 %v7524_v16, %s7909_s26 }
 0x3c7   : > { %7640 = vrot.lane.b32.xlu0 %v7529_v20, %s11634_s14  ;;  %7625 = vrot.lane.b32.xlu1 %v7524_v16, %s11094_s29  ;;  %s5958_s29 = sld [smem:[#allocation3 + $0x2]] }
 0x3cb   : > { %7650 = vrot.lane.b32.xlu0 %v7529_v20, %s11635_s15  ;;  %7635 = vrot.lane.b32.xlu1 %v7524_v16, %s11785_s11 }
 0x3cf   : > { %7660 = vrot.lane.b32.xlu0 %v7529_v20, %s11636_s16  ;;  %7645 = vrot.lane.b32.xlu1 %v7524_v16, %s11634_s14 }
 0x3d3   : > { %7670 = vrot.lane.b32.xlu0 %v7529_v20, %s11637_s9  ;;  %7655 = vrot.lane.b32.xlu1 %v7524_v16, %s11635_s15 }
 0x3d7   : > { %7680 = vrot.lane.b32.xlu0 %v7529_v20, %s11638_s10  ;;  %7665 = vrot.lane.b32.xlu1 %v7524_v16, %s11636_s16 }
 0x3db   : > { %7675 = vrot.lane.b32.xlu1 %v7524_v16, %s11637_s9  ;;  %3976 = vperm.xlu0 %7689, %v10196_v53  }
 0x3df   : > { %7685 = vrot.lane.b32.xlu1 %v7524_v16, %s11638_s10 }
 0x40d   : > { %v7531_v57 = vpop.permute.xlu0 %7530  ;;  %v7521_v15 = vpop.permute.xlu1 %7520 }
 0x40e   : > { %v7533_v35 = vunpack.i.h.bf16 %v7531_v57  ;;  %v7532_v21 = vunpack.i.l.bf16 %v7531_v57  ;;  %v7523_v37 = vunpack.i.h.bf16 %v7521_v15  ;;  %v7522_v42 = vunpack.i.l.bf16 %v7521_v15 }
 0x410   : > { %v3646_v13 = vsel %vm11790_vm3, %v7532_v21, %v7533_v35  ;;  %v3630_v12 = vsel %vm11791_vm11, %v7522_v42, %v7523_v37  ;;  %vm11794_vm3 = vmmov %vm11793_vm6 }
 0x411   : > { %v7541_v33 = vpop.permute.xlu0 %7540  ;;  %v7526_v31 = vpop.permute.xlu1 %7525  ;;  %v6774_v61 = vpack.c.bf16 %v3646_v13, %v3630_v12  ;;  %vm11795_vm11 = vmmov %vm11794_vm3 }
 0x412   : > { %v7543_v4 = vunpack.i.h.bf16 %v7541_v33  ;;  %v7542_v60 = vunpack.i.l.bf16 %v7541_v33  ;;  %v7528_v7 = vunpack.i.h.bf16 %v7526_v31  ;;  %v7527_v50 = vunpack.i.l.bf16 %v7526_v31 }
 0x414   : > { %v3586_v46 = vsel %vm11792_vm7, %v7542_v60, %v7543_v4  ;;  %v3628_v23 = vsel %vm11793_vm6, %v7527_v50, %v7528_v7  ;;  %v3629_v38 = vsel %vm11794_vm3, %v7523_v37, %v7527_v50  ;;  %v3631_v27 = vsel %vm11795_vm11, %v7528_v7, %v7522_v42  ;;  %vm11804_vm6 = vmmov %vm11792_vm7 }
 0x415   : > { %v7551_v32 = vpop.permute.xlu0 %7550  ;;  %v7536_v30 = vpop.permute.xlu1 %7535  ;;  %v6777_v7 = vpack.c.bf16 %v10140_v56, %v3586_v46  ;;  %vm11807_vm11 = vcmp.lt.s32.totalorder %v8087_v19, 8 }
 0x416   : > { %v7538_v1 = vunpack.i.h.bf16 %v7536_v30  ;;  %v7537_v47 = vunpack.i.l.bf16 %v7536_v30  ;;  %v7553_v63 = vunpack.i.h.bf16 %v7551_v32  ;;  %v7552_v10 = vunpack.i.l.bf16 %v7551_v32 }
 0x418   : > { %v3647_v20 = vsel %vm11796_vm9, %v7538_v1, %v7532_v21  ;;  %v3644_v16 = vsel %vm11797_vm15, %v7537_v47, %v7538_v1  ;;  %v3645_v44 = vsel %vm11798_vm4, %v7533_v35, %v7537_v47  ;;  %v11800_v21 = vld [vmem:[#allocation8_spill] sm:$0xff]  ;;  %vm11802_vm4 = vcmp.lt.s32.totalorder %v8087_v19, 7  ;;  %vm11803_vm9 = vmmov %vm11792_vm7 }
 0x419   : > { %v6771_v57 = vpack.c.bf16 %v3645_v44, %v3629_v38  ;;  %v6849_v15 = vpack.c.bf16 %v3647_v20, %v3631_v27  ;;  %v6852_v33 = vpack.c.bf16 %v3644_v16, %v3628_v23  ;;  %v7561_v31 = vpop.permute.xlu0 %7560  ;;  %v7546_v13 = vpop.permute.xlu1 %7545  ;;  %vm11801_vm15 = vnez %v11800_v21  ;;  %v11805_v23 = vld [vmem:[#allocation9_spill] sm:$0xff]  ;;  %v11808_v20 = vld [vmem:[#allocation10_spill] sm:$0xff] }
 0x41a   : > { %v7563_v37 = vunpack.i.h.bf16 %v7561_v31  ;;  %v7562_v12 = vunpack.i.l.bf16 %v7561_v31  ;;  %v7548_v50 = vunpack.i.h.bf16 %v7546_v13  ;;  %v7547_v42 = vunpack.i.l.bf16 %v7546_v13  ;;  %v11812_v13 = vld [vmem:[#allocation12_spill] sm:$0xff]  ;;  %v11860_v21 = vld [vmem:[#allocation25_spill] sm:$0xff] }
 0x41b   : > { %6772 = vmatprep.subr.msk.bf16.mxu0 %vm11651_vm8, %v6771_v57  ;;  %6850 = vmatprep.subr.msk.bf16.mxu1 %vm11801_vm15, %v6849_v15  ;;  %vm11806_vm3 = vnez %v11805_v23  ;;  %v3526_v56 = vsel %vm11807_vm11, %v7552_v10, %v7553_v63  ;;  %v11810_v57 = vld [vmem:[#allocation11_spill] sm:$0xff] }
 0x41c   : > { %v3542_v35 = vsel %vm11802_vm4, %v7562_v12, %v7563_v37  ;;  %v3587_v32 = vsel %vm11803_vm9, %v7548_v50, %v7542_v60  ;;  %v3584_v1 = vsel %vm11792_vm7, %v7547_v42, %v7548_v50  ;;  %v3585_v47 = vsel %vm11804_vm6, %v7543_v4, %v7547_v42  ;;  %6775 = vmatpush1.bf16.msk.msra.mxu0 %vm11806_vm3, %v6774_v61  ;;  %v11818_v50 = vld [vmem:[#allocation15_spill] sm:$0xff] }
 0x41d   : > { %v6780_v46 = vpack.c.bf16 %v10138_v8, %v3587_v32  ;;  %v6855_v38 = vpack.c.bf16 %v10144_v49, %v3584_v1  ;;  %v6858_v27 = vpack.c.bf16 %v10148_v52, %v3585_v47  ;;  %vm11809_vm4 = vnez %v11808_v20  ;;  %v7571_v60 = vpop.permute.xlu0 %7570  ;;  %v7556_v16 = vpop.permute.xlu1 %7555  ;;  %v11814_v8 = vld [vmem:[#allocation13_spill] sm:$0xff]  ;;  %v11816_v49 = vld [vmem:[#allocation14_spill] sm:$0xff] }
 0x41e   : > { %6853 = vmatpush1.bf16.msk.msra.mxu1 %vm11809_vm4, %v6852_v33  ;;  %v6783_v44 = vpack.c.bf16 %v3542_v35, %v3526_v56  ;;  %vm11811_vm9 = vnez %v11810_v57  ;;  %v7573_v4 = vunpack.i.h.bf16 %v7571_v60  ;;  %v7572_v61 = vunpack.i.l.bf16 %v7571_v60 }
 0x41f   : > { %6778 = vmatprep.subr.msk.bf16.mxu0 %vm11811_vm9, %v6777_v7  ;;  %v7558_v15 = vunpack.i.h.bf16 %v7556_v16  ;;  %v7557_v31 = vunpack.i.l.bf16 %v7556_v16  ;;  %vm11813_vm7 = vnez %v11812_v13  ;;  %vm11815_vm6 = vnez %v11814_v8  ;;  %v11828_v13 = vld [vmem:[#allocation17_spill] sm:$0xff] }
 0x420   : > { %6856 = vmatprep.subr.msk.bf16.mxu1 %vm11813_vm7, %v6855_v38  ;;  %6781 = vmatpush1.bf16.msk.msra.mxu0 %vm11815_vm6, %v6780_v46  ;;  %vm11817_vm11 = vnez %v11816_v49  ;;  %vm11819_vm4 = vnez %v11818_v50  ;;  %vm11820_vm9 = vcmp.lt.s32.totalorder %v8087_v19, 55  ;;  %vm11821_vm7 = vcmp.lt.s32.totalorder %v8087_v19, 8 }
 0x421   : > { %v7581_v52 = vpop.permute.xlu0 %7580  ;;  %v7566_v33 = vpop.permute.xlu1 %7565  ;;  %6784 = vmatprep.subr.msk.bf16.mxu0 %vm11819_vm4, %v6783_v44  ;;  %v10251_v1 = vsel %vm11820_vm9, %v7572_v61, %v7573_v4  ;;  %v3527_v47 = vsel %vm11821_vm7, %v7558_v15, %v7552_v10  ;;  %vm11822_vm6 = vmmov %vm11821_vm7  ;;  %vm11824_vm3 = vcmp.lt.s32.totalorder %v8087_v19, 9  ;;  %vm11825_vm4 = vcmp.lt.s32.totalorder %v8087_v19, 7 }
 0x422   : > { %6859 = vmatpush1.bf16.msk.msra.mxu1 %vm11817_vm11, %v6858_v27  ;;  %v7583_v42 = vunpack.i.h.bf16 %v7581_v52  ;;  %v7582_v7 = vunpack.i.l.bf16 %v7581_v52  ;;  %v7568_v35 = vunpack.i.h.bf16 %v7566_v33  ;;  %v7567_v32 = vunpack.i.l.bf16 %v7566_v33  ;;  %vm11823_vm11 = vmmov %vm11822_vm6 }
 0x423   : > { %v3524_v56 = vsel %vm11822_vm6, %v7557_v31, %v7558_v15  ;;  %v3525_v46 = vsel %vm11823_vm11, %v7553_v63, %v7557_v31  ;;  %vm11826_vm15 = vmmov %vm11825_vm4  ;;  %vm11836_vm6 = vcmp.lt.s32.totalorder %v8087_v19, 57  ;;  %vm11837_vm11 = vcmp.lt.s32.totalorder %v8087_v19, 55 }
 0x424   : > { %v3482_v38 = vsel %vm11824_vm3, %v7582_v7, %v7583_v42  ;;  %v3543_v27 = vsel %vm11825_vm4, %v7568_v35, %v7562_v12  ;;  %v3540_v60 = vsel %vm11826_vm15, %v7567_v32, %v7568_v35  ;;  %vm11827_vm9 = vmmov %vm11825_vm4  ;;  %vm11829_vm3 = vnez %v11828_v13  ;;  %v11830_v12 = vld [vmem:[#allocation16_spill] sm:$0xff]  ;;  %v11832_v35 = vld [vmem:[#allocation19_spill] sm:$0xff] }
 0x425   : > { %v3541_v16 = vsel %vm11827_vm9, %v7563_v37, %v7567_v32  ;;  %v6789_v10 = vpack.c.bf16 %v3482_v38, %v10251_v1  ;;  %v6786_v44 = vpack.c.bf16 %v3543_v27, %v3527_v47  ;;  %v6861_v52 = vpack.c.bf16 %v3540_v60, %v3524_v56  ;;  %v7591_v33 = vpop.permute.xlu0 %7590  ;;  %v7576_v50 = vpop.permute.xlu1 %7575  ;;  %v11834_v37 = vld [vmem:[#allocation18_spill] sm:$0xff]  ;;  %vm11838_vm9 = vmmov %vm11837_vm11  ;;  %v11844_v13 = vld [vmem:[#allocation21_spill] sm:$0xff] }
 0x426   : > { %v6864_v15 = vpack.c.bf16 %v3541_v16, %v3525_v46  ;;  %v7593_v63 = vunpack.i.h.bf16 %v7591_v33  ;;  %v7592_v31 = vunpack.i.l.bf16 %v7591_v33  ;;  %v7578_v49 = vunpack.i.h.bf16 %v7576_v50 }
 0x427   : > { %v7577_v8 = vunpack.i.l.bf16 %v7576_v50  ;;  %6787 = vmatpush1.bf16.msk.msra.mxu0 %vm11829_vm3, %v6786_v44  ;;  %vm11831_vm4 = vnez %v11830_v12  ;;  %vm11833_vm15 = vnez %v11832_v35  ;;  %vm11835_vm7 = vnez %v11834_v37 }
 0x428   : > { %6862 = vmatprep.subr.msk.bf16.mxu1 %vm11831_vm4, %v6861_v52  ;;  %6790 = vmatprep.subr.msk.bf16.mxu0 %vm11833_vm15, %v6789_v10  ;;  %v3406_v50 = vsel %vm11836_vm6, %v7592_v31, %v7593_v63  ;;  %v10280_v60 = vsel %vm11837_vm11, %v7578_v49, %v7572_v61  ;;  %vm11839_vm15 = vmmov %vm11838_vm9  ;;  %vm11841_vm4 = vcmp.lt.s32.totalorder %v8087_v19, 9 }
 0x429   : > { %6865 = vmatpush1.bf16.msk.msra.mxu1 %vm11835_vm7, %v6864_v15  ;;  %v7601_v32 = vpop.permute.xlu0 %7600  ;;  %v7586_v47 = vpop.permute.xlu1 %7585  ;;  %v10284_v16 = vsel %vm11838_vm9, %v7577_v8, %v7578_v49  ;;  %v10288_v10 = vsel %vm11839_vm15, %v7573_v4, %v7577_v8  ;;  %vm11840_vm7 = vcmp.lt.s32.totalorder %v8087_v19, 56  ;;  %vm11842_vm6 = vmmov %vm11841_vm4 }
 0x42a   : > { %v7603_v56 = vunpack.i.h.bf16 %v7601_v32  ;;  %v7602_v46 = vunpack.i.l.bf16 %v7601_v32  ;;  %v7588_v38 = vunpack.i.h.bf16 %v7586_v47  ;;  %v7587_v27 = vunpack.i.l.bf16 %v7586_v47  ;;  %vm11843_vm11 = vmmov %vm11841_vm4 }
 0x42c   : > { %v3422_v44 = vsel %vm11840_vm7, %v7602_v46, %v7603_v56  ;;  %v3483_v52 = vsel %vm11841_vm4, %v7588_v38, %v7582_v7  ;;  %v3480_v15 = vsel %vm11842_vm6, %v7587_v27, %v7588_v38  ;;  %v3481_v61 = vsel %vm11843_vm11, %v7583_v42, %v7587_v27  ;;  %v11846_v38 = vld [vmem:[#allocation20_spill] sm:$0xff]  ;;  %v11848_v42 = vld [vmem:[#allocation23_spill] sm:$0xff]  ;;  %v11850_v27 = vld [vmem:[#allocation22_spill] sm:$0xff] }
 0x42d   : > { %v10298_v33 = vpack.c.bf16 %v3422_v44, %v3406_v50  ;;  %v6792_v49 = vpack.c.bf16 %v3483_v52, %v10280_v60  ;;  %v6867_v32 = vpack.c.bf16 %v3480_v15, %v10284_v16  ;;  %v6870_v4 = vpack.c.bf16 %v3481_v61, %v10288_v10  ;;  %v7611_v8 = vpop.permute.xlu0 %7610  ;;  %v7596_v47 = vpop.permute.xlu1 %7595 }
 0x42e   : > { %v7613_v37 = vunpack.i.h.bf16 %v7611_v8  ;;  %v7612_v35 = vunpack.i.l.bf16 %v7611_v8  ;;  %v7598_v12 = vunpack.i.h.bf16 %v7596_v47  ;;  %v7597_v7 = vunpack.i.l.bf16 %v7596_v47 }
 0x42f   : > { %vm11845_vm4 = vnez %v11844_v13  ;;  %vm11847_vm15 = vnez %v11846_v38  ;;  %vm11849_vm7 = vnez %v11848_v42  ;;  %vm11851_vm9 = vnez %v11850_v27 }
 0x430   : > { %6793 = vmatpush1.bf16.msk.msra.mxu0 %vm11845_vm4, %v6792_v49  ;;  %6868 = vmatprep.subr.msk.bf16.mxu1 %vm11847_vm15, %v6867_v32  ;;  %vm11852_vm6 = vcmp.lt.s32.totalorder %v8087_v19, 64  ;;  %vm11853_vm11 = vcmp.lt.s32.totalorder %v8087_v19, 57  ;;  %vm11857_vm4 = vcmp.lt.s32.totalorder %v8087_v19, 56 }
 0x431   : > { %6796 = vmatprep.subr.msk.bf16.mxu0 %vm11849_vm7, %v10298_v33  ;;  %6871 = vmatpush1.bf16.msk.msra.mxu1 %vm11851_vm9, %v6870_v4  ;;  %v7621_v50 = vpop.permute.xlu0 %7620  ;;  %v7606_v44 = vpop.permute.xlu1 %7605  ;;  %v3346_v47 = vsel %vm11852_vm6, %v7612_v35, %v7613_v37  ;;  %v3407_v49 = vsel %vm11853_vm11, %v7598_v12, %v7592_v31  ;;  %vm11854_vm15 = vmmov %vm11853_vm11  ;;  %vm11856_vm9 = vcmp.lt.s32.totalorder %v8087_v19, 63 }
 0x432   : > { %v7623_v52 = vunpack.i.h.bf16 %v7621_v50  ;;  %v7622_v15 = vunpack.i.l.bf16 %v7621_v50  ;;  %v7608_v61 = vunpack.i.h.bf16 %v7606_v44  ;;  %v7607_v8 = vunpack.i.l.bf16 %v7606_v44  ;;  %vm11855_vm7 = vmmov %vm11853_vm11 }
 0x433   : > { %v3404_v32 = vsel %vm11854_vm15, %v7597_v7, %v7598_v12  ;;  %v3405_v42 = vsel %vm11855_vm7, %v7593_v63, %v7597_v7  ;;  %vm11858_vm3 = vmmov %vm11857_vm4  ;;  %vm11869_vm11 = vcmp.lt.s32.totalorder %v8087_v19, 64 }
 0x434   : > { %v3362_v4 = vsel %vm11856_vm9, %v7622_v15, %v7623_v52  ;;  %v3423_v50 = vsel %vm11857_vm4, %v7608_v61, %v7602_v46  ;;  %v3420_v44 = vsel %vm11858_vm3, %v7607_v8, %v7608_v61  ;;  %vm11859_vm6 = vmmov %vm11858_vm3  ;;  %vm11861_vm3 = vnez %v11860_v21  ;;  %v11864_v61 = vld [vmem:[#allocation27_spill] sm:$0xff] }
 0x435   : > { %v3421_v27 = vsel %vm11859_vm6, %v7603_v56, %v7607_v8  ;;  %v10328_v38 = vpack.c.bf16 %v3362_v4, %v3346_v47  ;;  %v10330_v31 = vpack.c.bf16 %v3423_v50, %v3407_v49  ;;  %v10334_v13 = vpack.c.bf16 %v3420_v44, %v3404_v32  ;;  %v7631_v63 = vpop.permute.xlu0 %7630  ;;  %v7616_v7 = vpop.permute.xlu1 %7615  ;;  %v11862_v56 = vld [vmem:[#allocation24_spill] sm:$0xff]  ;;  %vm11870_vm6 = vmmov %vm11869_vm11 }
 0x436   : > { %v10332_v12 = vpack.c.bf16 %v3421_v27, %v3405_v42  ;;  %v7633_v57 = vunpack.i.h.bf16 %v7631_v63  ;;  %v7632_v20 = vunpack.i.l.bf16 %v7631_v63  ;;  %v7618_v23 = vunpack.i.h.bf16 %v7616_v7  ;;  %v11866_v42 = vld [vmem:[#allocation26_spill] sm:$0xff] }
 0x437   : > { %v7617_v46 = vunpack.i.l.bf16 %v7616_v7  ;;  %6799 = vmatpush1.bf16.msk.msra.mxu0 %vm11861_vm3, %v10330_v31  ;;  %vm11863_vm4 = vnez %v11862_v56  ;;  %vm11865_vm15 = vnez %v11864_v61  ;;  %vm11867_vm7 = vnez %v11866_v42 }
 0x438   : > { %6874 = vmatprep.subr.msk.bf16.mxu1 %vm11863_vm4, %v10334_v13  ;;  %6802 = vmatprep.subr.msk.bf16.mxu0 %vm11865_vm15, %v10328_v38  ;;  %vm11868_vm9 = vcmp.lt.s32.totalorder %v8087_v19, 71  ;;  %v3347_v44 = vsel %vm11869_vm11, %v7618_v23, %v7612_v35  ;;  %vm11871_vm15 = vmmov %vm11870_vm6  ;;  %vm11873_vm4 = vcmp.lt.s32.totalorder %v8087_v19, 63  ;;  %vm11884_vm11 = vcmp.lt.s32.totalorder %v8087_v19, 73 }
 0x439   : > { %6877 = vmatpush1.bf16.msk.msra.mxu1 %vm11867_vm7, %v10332_v12  ;;  %v7641_v27 = vpop.permute.xlu0 %7640  ;;  %v7626_v8 = vpop.permute.xlu1 %7625  ;;  %v3286_v50 = vsel %vm11868_vm9, %v7632_v20, %v7633_v57  ;;  %v3344_v63 = vsel %vm11870_vm6, %v7617_v46, %v7618_v23  ;;  %v3345_v7 = vsel %vm11871_vm15, %v7613_v37, %v7617_v46  ;;  %vm11872_vm7 = vcmp.lt.s32.totalorder %v8087_v19, 65  ;;  %vm11874_vm3 = vmmov %vm11873_vm4 }
 0x43a   : > { %v7643_v47 = vunpack.i.h.bf16 %v7641_v27  ;;  %v7642_v49 = vunpack.i.l.bf16 %v7641_v27  ;;  %v7628_v32 = vunpack.i.h.bf16 %v7626_v8  ;;  %v7627_v4 = vunpack.i.l.bf16 %v7626_v8  ;;  %vm11875_vm9 = vmmov %vm11874_vm3 }
 0x43b   : > { %vm11885_vm6 = vcmp.lt.s32.totalorder %v8087_v19, 71 }
 0x43c   : > { %v3302_v42 = vsel %vm11872_vm7, %v7642_v49, %v7643_v47  ;;  %v3363_v27 = vsel %vm11873_vm4, %v7628_v32, %v7622_v15  ;;  %v3360_v8 = vsel %vm11874_vm3, %v7627_v4, %v7628_v32  ;;  %v3361_v61 = vsel %vm11875_vm9, %v7623_v52, %v7627_v4  ;;  %v11878_v52 = vld [vmem:[#allocation28_spill] sm:$0xff]  ;;  %vm11886_vm9 = vmmov %vm11885_vm6 }
 0x43d   : > { %v10364_v56 = vpack.c.bf16 %v3302_v42, %v3286_v50  ;;  %v10366_v35 = vpack.c.bf16 %v3363_v27, %v3347_v44  ;;  %v10368_v23 = vpack.c.bf16 %v3361_v61, %v3345_v7  ;;  %v10370_v21 = vpack.c.bf16 %v3360_v8, %v3344_v63  ;;  %v7651_v37 = vpop.permute.xlu0 %7650  ;;  %v7636_v46 = vpop.permute.xlu1 %7635  ;;  %v11880_v42 = vld [vmem:[#allocation37_spill] sm:$0xff]  ;;  %v11882_v61 = vld [vmem:[#allocation36_spill] sm:$0xff] }
 0x43e   : > { %v7653_v30 = vunpack.i.h.bf16 %v7651_v37  ;;  %v7652_v53 = vunpack.i.l.bf16 %v7651_v37  ;;  %v7638_v0 = vunpack.i.h.bf16 %v7636_v46  ;;  %v7637_v15 = vunpack.i.l.bf16 %v7636_v46 }
 0x43f   : > { %vm11877_vm3 = vnez %v11876_v54  ;;  %vm11879_vm4 = vnez %v11878_v52  ;;  %vm11881_vm15 = vnez %v11880_v42  ;;  %vm11883_vm7 = vnez %v11882_v61 }
 0x440   : > { %6805 = vmatpush1.bf16.msk.msra.mxu0 %vm11877_vm3, %v10366_v35  ;;  %6880 = vmatprep.subr.msk.bf16.mxu1 %vm11879_vm4, %v10370_v21  ;;  %v3226_v27 = vsel %vm11884_vm11, %v7652_v53, %v7653_v30  ;;  %v3287_v8 = vsel %vm11885_vm6, %v7638_v0, %v7632_v20  ;;  %v3284_v37 = vsel %vm11886_vm9, %v7637_v15, %v7638_v0  ;;  %vm11889_vm4 = vcmp.lt.s32.totalorder %v8087_v19, 65 }
 0x441   : > { %6808 = vmatprep.subr.msk.bf16.mxu0 %vm11881_vm15, %v10364_v56  ;;  %6883 = vmatpush1.bf16.msk.msra.mxu1 %vm11883_vm7, %v10368_v23  ;;  %v7661_v32 = vpop.permute.xlu0 %7660  ;;  %v7646_v4 = vpop.permute.xlu1 %7645  ;;  %vm11887_vm15 = vmmov %vm11885_vm6  ;;  %vm11888_vm7 = vcmp.lt.s32.totalorder %v8087_v19, 72 }
 0x442   : > { %v7663_v50 = vunpack.i.h.bf16 %v7661_v32  ;;  %v7662_v44 = vunpack.i.l.bf16 %v7661_v32  ;;  %v7648_v63 = vunpack.i.h.bf16 %v7646_v4  ;;  %v7647_v7 = vunpack.i.l.bf16 %v7646_v4  ;;  %vm11890_vm3 = vmmov %vm11889_vm4 }
 0x443   : > { %v3285_v46 = vsel %vm11887_vm15, %v7633_v57, %v7637_v15  ;;  %vm11891_vm11 = vmmov %vm11890_vm3  ;;  %vm11894_vm15 = vnez %v11486_v3 }
 0x444   : > { %v3242_v61 = vsel %vm11888_vm7, %v7662_v44, %v7663_v50  ;;  %v3303_v32 = vsel %vm11889_vm4, %v7648_v63, %v7642_v49  ;;  %v3300_v4 = vsel %vm11890_vm3, %v7647_v7, %v7648_v63  ;;  %v3301_v42 = vsel %vm11891_vm11, %v7643_v47, %v7647_v7  ;;  %v11900_v7 = vld [vmem:[#allocation29_spill] sm:$0xff] }
 0x445   : > { %v10400_v52 = vpack.c.bf16 %v3242_v61, %v3226_v27  ;;  %v6810_v20 = vpack.c.bf16 %v3303_v32, %v3287_v8  ;;  %v6831_v54 = vpack.c.bf16 %v3301_v42, %v3285_v46  ;;  %v10402_v0 = vpack.c.bf16 %v3300_v4, %v3284_v37  ;;  %v7656_v48 = vpop.permute.xlu1 %7655  ;;  %v11898_v61 = vld [vmem:[#allocation38_spill] sm:$0xff] }
 0x446   : > { %v7658_v57 = vunpack.i.h.bf16 %v7656_v48  ;;  %v7657_v15 = vunpack.i.l.bf16 %v7656_v48  ;;  %vm11892_vm4 = vnez %v11435_v22  ;;  %vm11893_vm3 = vnez %v11388_v25  ;;  %v11896_v48 = vld [vmem:[#allocation31_spill] sm:$0xff] }
 0x447   : > { %6811 = vmatpush1.bf16.msk.msra.mxu0 %vm11744_vm12, %v6810_v20  ;;  %6886 = vmatprep.subr.msk.bf16.mxu1 %vm11892_vm4, %v10402_v0  ;;  %v3885_v47 = vsel %vm11893_vm3, %v10288_v10, 0.0  ;;  %vm11895_vm7 = vnez %v11748_v36  ;;  %vm11897_vm6 = vnez %v11896_v48  ;;  %vm11899_vm9 = vnez %v11898_v61 }
 0x448   : > { %6814 = vmatprep.subr.msk.bf16.mxu0 %vm11894_vm15, %v10400_v52  ;;  %v3886_v49 = vsel %vm11895_vm7, %v10284_v16, 0.0  ;;  %v3887_v42 = vsel %vm11897_vm6, %v10280_v60, 0.0  ;;  %6889 = vmatpush1.bf16.msk.msra.mxu1 %vm11899_vm9, %v6831_v54  ;;  %vm11901_vm11 = vnez %v11900_v7  ;;  %vm11902_vm15 = vcmp.lt.s32.totalorder %v8087_v19, 73 }
 0x449   : > { %v7666_v63 = vpop.permute.xlu1 %7665  ;;  %v3884_v10 = vsel %vm11901_vm11, %v10251_v1, 0.0  ;;  %v3227_v46 = vsel %vm11902_vm15, %v7658_v57, %v7652_v53  ;;  %vm11903_vm7 = vmmov %vm11902_vm15  ;;  %v6243_v32 = vpack.c.bf16 %v3887_v42, %v3886_v49  ;;  %vm11905_vm9 = vcmp.lt.s32.totalorder %v8087_v19, 72 }
 0x44a   : > { %v7668_v27 = vunpack.i.h.bf16 %v7666_v63  ;;  %v7667_v8 = vunpack.i.l.bf16 %v7666_v63  ;;  %v6242_v37 = vpack.c.bf16 %v3885_v47, %v3884_v10  ;;  %v3224_v16 = vsel %vm11903_vm7, %v7657_v15, %v7658_v57  ;;  %vm11904_vm6 = vmmov %vm11903_vm7 }
 0x44b   : > { %v3225_v60 = vsel %vm11904_vm6, %v7653_v30, %v7657_v15  ;;  %vm11906_vm3 = vmmov %vm11905_vm9  ;;  %vm11908_vm15 = vnez %v11488_v5  ;;  %v5955_v30 = vcombine.high %v6243_v32, %v11762_v18  ;;  %vm11909_vm7 = vnez %v11506_v24  ;;  %v7671_v15 = vpop.permute.xlu0 %7670 }
 0x44c   : > { %v3243_v4 = vsel %vm11905_vm9, %v7668_v27, %v7662_v44  ;;  %v3240_v7 = vsel %vm11906_vm3, %v7667_v8, %v7668_v27  ;;  %vm11907_vm11 = vmmov %vm11906_vm3  ;;  %v5953_v53 = vcombine.high %v6242_v37, %v11762_v18  ;;  %v5954_v57 = vcombine.low %v6243_v32, %v11762_v18 }
 0x44d   : > { %v3241_v1 = vsel %vm11907_vm11, %v7663_v50, %v7667_v8  ;;  %v6816_v47 = vpack.c.bf16 %v3243_v4, %v3227_v46  ;;  %v6891_v10 = vpack.c.bf16 %v3240_v7, %v3224_v16  ;;  %v5952_v50 = vcombine.low %v6242_v37, %v11762_v18  ;;  %v7676_v44 = vpop.permute.xlu1 %7675  ;;  %v11928_v4 = vld [vmem:[#allocation30_spill] sm:$0xff] }
 0x44e   : > { %v6837_v63 = vpack.c.bf16 %v3241_v1, %v3225_v60  ;;  %vm11910_vm3 = vnez %v11521_v29  ;;  %vm11911_vm6 = vnez %v11530_v9  ;;  %vm11912_vm9 = vnez %v11534_v17  ;;  %v11929_v1 = vld [vmem:[#allocation34_spill] sm:$0xff] }
 0x44f   : > { %6817 = vmatpush1.bf16.msk.msra.mxu0 %vm11763_vm10, %v6816_v47  ;;  %6892 = vmatprep.subr.msk.bf16.mxu1 %vm11908_vm15, %v6891_v10  ;;  %vm11913_vm11 = vnez %v11547_v11  ;;  %v7673_v7 = vunpack.i.h.bf16 %v7671_v15 }
 0x450   : > { %4288 = vmatprep.subr.bf16.mxu0 %v5953_v53  ;;  %6895 = vmatpush1.bf16.msk.msra.mxu1 %vm11909_vm7, %v6837_v63  ;;  %vm11914_vm7 = vnez %v11538_v41  ;;  %v4355_v53 = vstv %s5958_s29 }
 0x451   : > { %4329 = vmatprep.subr.bf16.mxu1 %v5955_v30  ;;  %v7686_v49 = vpop.permute.xlu1 %7685 }
 0x452   : > { %v7687_v42 = vunpack.i.l.bf16 %v7686_v49 }
 0x453   : > { %4289 = vmatpush2.bf16.msra.mxu0 %v5952_v50 }
 0x454   : > { %6820 = vmatprep.subr.msk.bf16.mxu0 %vm11910_vm3, %v10332_v12  ;;  %4330 = vmatpush2.bf16.msra.mxu1 %v5954_v57  ;;  %vm11915_vm3 = vnez %v11553_v40  ;;  %v7681_v12 = vpop.permute.xlu0 %7680 }
 0x455   : > { %6898 = vmatprep.subr.msk.bf16.mxu1 %vm11911_vm6, %v10330_v31  ;;  %vm11916_vm6 = vnez %v11561_v2  ;;  %v7683_v31 = vunpack.i.h.bf16 %v7681_v12 }
 0x457   : > { %6823 = vmatpush2.bf16.msk.msra.mxu0 %vm11912_vm9, %v10298_v33  ;;  %v7688_v33 = vunpack.i.h.bf16 %v7686_v49  ;;  %vm11917_vm9 = vnez %v11579_v39 }
 0x458   : > { %6826 = vmatprep.subr.msk.bf16.mxu0 %vm11913_vm11, %v10368_v23  ;;  %6901 = vmatpush2.bf16.msk.msra.mxu1 %vm11914_vm7, %v10334_v13  ;;  %vm11918_vm11 = vnez %v11570_v55  ;;  %v7677_v13 = vunpack.i.l.bf16 %v7676_v44  ;;  %vm11919_vm7 = vnez %v11585_v51  ;;  %v7678_v23 = vunpack.i.h.bf16 %v7676_v44 }
 0x459   : > { %6904 = vmatprep.subr.msk.bf16.mxu1 %vm11915_vm3, %v10366_v35  ;;  %v7682_v35 = vunpack.i.l.bf16 %v7681_v12  ;;  %vm11920_vm3 = vcmp.lt.s32.totalorder %v8087_v19, 119 }
 0x45a   : > { %v3705_v27 = vsel %vm11920_vm3, %v7683_v31, %v7687_v42 }
 0x45b   : > { %6829 = vmatpush2.bf16.msk.msra.mxu0 %vm11916_vm6, %v10328_v38  ;;  %vm11921_vm6 = vnez %v11590_v14 }
 0x45c   : > { %6832 = vmatprep.subr.msk.bf16.mxu0 %vm11917_vm9, %v6831_v54  ;;  %6907 = vmatpush2.bf16.msk.msra.mxu1 %vm11918_vm11, %v10370_v21  ;;  %v7672_v54 = vunpack.i.l.bf16 %v7671_v15  ;;  %vm11922_vm9 = vmmov %vm11920_vm3 }
 0x45d   : > { %6910 = vmatprep.subr.msk.bf16.mxu1 %vm11919_vm7, %v6810_v20  ;;  %v3707_v38 = vsel %vm11922_vm9, %v7688_v33, %v7682_v35  ;;  %vm11923_vm7 = vcmp.lt.s32.totalorder %v8087_v19, 120  ;;  %vm11925_vm9 = vmmov %vm11920_vm3 }
 0x45e   : > { %v3689_v21 = vsel %vm11923_vm7, %v7673_v7, %v7677_v13  ;;  %v3704_v37 = vsel %vm11925_vm9, %v7687_v42, %v7688_v33  ;;  %vm11930_vm9 = vnez %v11929_v1 }
 0x45f   : > { %6835 = vmatpush2.bf16.msk.msra.mxu0 %vm11921_vm6, %v10364_v56  ;;  %v3706_v56 = vsel %vm11920_vm3, %v7682_v35, %v7683_v31  ;;  %vm11924_vm6 = vmmov %vm11923_vm7  ;;  %v6843_v8 = vpack.c.bf16 %v3705_v27, %v3689_v21  ;;  %vm11927_vm3 = vnez %v11624_v34  ;;  %v12022_v34 = vld [vmem:[#allocation32_spill] sm:$0xff] }
 0x460   : > { %6838 = vmatprep.subr.msk.bf16.mxu0 %vm9639_vm14, %v6837_v63  ;;  %6913 = vmatpush2.bf16.msk.msra.mxu1 %vm11778_vm5, %v10402_v0  ;;  %v3691_v20 = vsel %vm11924_vm6, %v7678_v23, %v7672_v54  ;;  %vm11926_vm7 = vmmov %vm11924_vm6  ;;  %v3688_v32 = vsel %vm11924_vm6, %v7677_v13, %v7678_v23  ;;  %v3977_v63 = vpop.permute.xlu0 %3976 }
 0x461   : > { %6916 = vmatprep.subr.msk.bf16.mxu1 %vm11780_vm2, %v6816_v47  ;;  %v6921_v46 = vpack.c.bf16 %v3707_v38, %v3691_v20  ;;  %v3690_v0 = vsel %vm11926_vm7, %v7672_v54, %v7673_v7  ;;  %v6924_v60 = vpack.c.bf16 %v3704_v37, %v3688_v32  ;;  %v11931_v47 = vld [vmem:[#allocation39_spill] sm:$0xff]  ;;  %v10566_v37 = vld [vmem:[%s10905_s5] sm:$0xff] }
 0x462   : > { %v6846_v16 = vpack.c.bf16 %v3706_v56, %v3690_v0  ;;  %vm11932_vm7 = vnez %v11931_v47  ;;  %11934 = vst [vmem:[#allocation31_spill] sm:$0xff] %v10566_v37  ;;  %v7921_v0 = vmov 3  }
 0x463   : > { %6841 = vmatpush2.bf16.msk.msra.mxu0 %vm9681_vm0, %v10400_v52  ;;  %v5898_v52 = vcombine.low %v11928_v4, %v11928_v4  ;;  %7860 = vset.pattern.permute.xlu0 %v7921_v0 }
 0x464   : > { %6844 = vmatprep.subr.msk.bf16.mxu0 %vm9719_vm13, %v6843_v8  ;;  %6919 = vmatpush2.bf16.msk.msra.mxu1 %vm9705_vm1, %v6891_v10  ;;  %vm11943_vm1 = vcmp.lt.s32.totalorder %v8087_v19, 121 }
 0x465   : > { %6922 = vmatprep.subr.msk.bf16.mxu1 %vm11927_vm3, %v6921_v46  ;;  %v6016_v46 = vcombine.high %v10566_v37, %v10566_v37  ;;  %vm11944_vm13 = vmmov %vm11943_vm1 }
 0x466   : > { %vm11945_vm0 = vmmov %vm11943_vm1 }
 0x467   : > { %6847 = vmatpush2.bf16.msk.msra.mxu0 %vm11930_vm9, %v6846_v16  ;;  %v11937_v16 = vld [vmem:[#allocation40_spill] sm:$0xff] }
 0x468   : > { %6925 = vmatpush2.bf16.msk.msra.mxu1 %vm11932_vm7, %v6924_v60 }
 0x46a   : > { %4301 = vmatmul.mubr.bf16.vlgmr.msra.gmra.mxu0 %v5898_v52 }
 0x46b   : > { %4342 = vmatmul.mubr.bf16.vlgmr.msra.gmra.mxu1 %v5898_v52 }
 0x52a   : > { %v4302_v10 = vpop.f32.mrf.mxu0 }
 0x52b   : > { %v4303_v30 = vadd.f32 %v4302_v10, %v3977_v63  ;;  %v4343_v50 = vpop.f32.mrf.mxu1 }
 0x52c   : > { %v4304_v44 = vpop.f32.mrf.mxu0  ;;  %v4344_v15 = vadd.f32 %v4343_v50, %v3977_v63 }
 0x52d   : > { %v4356_v57 = vmul.f32 %v4355_v53, %v4303_v30  ;;  %v4305_v49 = vadd.f32 %v4304_v44, %v3977_v63  ;;  %v4345_v12 = vpop.f32.mrf.mxu1  ;;  %vm4351_vm6 = vcmp.ge.f32.partialorder %v4303_v30, 0.0 }
 0x52e   : > { %v4346_v42 = vadd.f32 %v4345_v12, %v3977_v63  ;;  %v4306_v33 = vpop.f32.mrf.mxu0  ;;  %v4358_v27 = vmul.f32 %v4355_v53, %v4344_v15  ;;  %vm4353_vm3 = vcmp.ge.f32.partialorder %v4344_v15, 0.0 }
 0x52f   : > { %vm4352_vm9 = vcmp.ge.f32.partialorder %v4305_v49, 0.0  ;;  %v4357_v31 = vmul.f32 %v4355_v53, %v4305_v49  ;;  %v4347_v13 = vpop.f32.mrf.mxu1  ;;  %v10517_v7 = vsel %vm4351_vm6, %v4303_v30, %v4356_v57  ;;  %vm11939_vm6 = vcmp.lt.s32.totalorder %v8087_v19, 127 }
 0x530   : > { %vm4354_vm7 = vcmp.ge.f32.partialorder %v4346_v42, 0.0  ;;  %v4359_v35 = vmul.f32 %v4355_v53, %v4346_v42  ;;  %v4307_v23 = vpop.f32.mrf.mxu0  ;;  %v10527_v20 = vsel %vm4353_vm3, %v4344_v15, %v4358_v27  ;;  %vm11935_vm3 = vcmask 785408  }
 0x531   : > { %v10519_v54 = vsel %vm4352_vm9, %v4305_v49, %v4357_v31  ;;  %v4348_v38 = vpop.f32.mrf.mxu1  ;;  %6073 = vmatprep.mubr.msk.bf16.mxu0 %vm11935_vm3, %v6016_v46  ;;  %vm11936_vm9 = vmmov %vm11935_vm3  ;;  %vm11940_vm3 = vcmp.lt.s32.totalorder %v8087_v19, 1 }
 0x532   : > { %v7700_v21 = vpack.i.bf16 %v10519_v54, %v10517_v7  ;;  %v10523_v56 = vsel %vm4354_vm7, %v4346_v42, %v4359_v35  ;;  %6074 = vmatprep.mubr.msk.bf16.mxu1 %vm11936_vm9, %v6016_v46  ;;  %vm11938_vm7 = vcmp.lt.s32.totalorder %v8087_v19, 121  ;;  %vm11941_vm9 = vmmov %vm11939_vm6 }
 0x533   : > { %v7695_v8 = vpack.i.bf16 %v10523_v56, %v10527_v20 }
 0x534   : > { %7701 = vrot.lane.b32.xlu0 %v7700_v21, %s7900_s17  ;;  %7691 = vrot.lane.b32.xlu1 %v7700_v21, %s7901_s18 }
 0x538   : > { %7711 = vrot.lane.b32.xlu0 %v7700_v21, %s7902_s19  ;;  %7696 = vrot.lane.b32.xlu1 %v7695_v8, %s7901_s18 }
 0x53c   : > { %7721 = vrot.lane.b32.xlu0 %v7700_v21, %s7903_s20  ;;  %7706 = vrot.lane.b32.xlu1 %v7695_v8, %s7900_s17  ;;  %s11933_s17 = smov 63  }
 0x540   : > { %7731 = vrot.lane.b32.xlu0 %v7700_v21, %s7904_s21  ;;  %7716 = vrot.lane.b32.xlu1 %v7695_v8, %s7902_s19 }
 0x544   : > { %7741 = vrot.lane.b32.xlu0 %v7700_v21, %s7905_s22  ;;  %7726 = vrot.lane.b32.xlu1 %v7695_v8, %s7903_s20  ;;  %s5606_s20 = sshll.u32 %s12084_s28, 2 }
 0x548   : > { %7751 = vrot.lane.b32.xlu0 %v7700_v21, %s7906_s23  ;;  %7736 = vrot.lane.b32.xlu1 %v7695_v8, %s7904_s21 }
 0x54c   : > { %7761 = vrot.lane.b32.xlu0 %v7700_v21, %s7907_s24  ;;  %7746 = vrot.lane.b32.xlu1 %v7695_v8, %s7905_s22 }
 0x550   : > { %7771 = vrot.lane.b32.xlu0 %v7700_v21, %s7908_s25  ;;  %7756 = vrot.lane.b32.xlu1 %v7695_v8, %s7906_s23  ;;  %s317_s23 = scalar_lea.vmem %s10908_s8, %s5606_s20 }
 0x554   : > { %7781 = vrot.lane.b32.xlu0 %v7700_v21, %s7909_s26  ;;  %7766 = vrot.lane.b32.xlu1 %v7695_v8, %s7907_s24 }
 0x558   : > { %7791 = vrot.lane.b32.xlu0 %v7700_v21, %s11933_s17  ;;  %7776 = vrot.lane.b32.xlu1 %v7695_v8, %s7908_s25 }
 0x55c   : > { %7801 = vrot.lane.b32.xlu0 %v7700_v21, %s11785_s11  ;;  %7786 = vrot.lane.b32.xlu1 %v7695_v8, %s7909_s26 }
 0x560   : > { %7811 = vrot.lane.b32.xlu0 %v7700_v21, %s11634_s14  ;;  %7796 = vrot.lane.b32.xlu1 %v7695_v8, %s11933_s17 }
 0x564   : > { %7821 = vrot.lane.b32.xlu0 %v7700_v21, %s11635_s15  ;;  %7806 = vrot.lane.b32.xlu1 %v7695_v8, %s11785_s11 }
 0x568   : > { %7831 = vrot.lane.b32.xlu0 %v7700_v21, %s11636_s16  ;;  %7816 = vrot.lane.b32.xlu1 %v7695_v8, %s11634_s14 }
 0x56c   : > { %7841 = vrot.lane.b32.xlu0 %v7700_v21, %s11637_s9  ;;  %7826 = vrot.lane.b32.xlu1 %v7695_v8, %s11635_s15 }
 0x570   : > { %7851 = vrot.lane.b32.xlu0 %v7700_v21, %s11638_s10  ;;  %7836 = vrot.lane.b32.xlu1 %v7695_v8, %s11636_s16 }
 0x574   : > { %7846 = vrot.lane.b32.xlu1 %v7695_v8, %s11637_s9  ;;  %5124 = vperm.xlu0 %7860, %v11937_v16  }
 0x578   : > { %7856 = vrot.lane.b32.xlu1 %v7695_v8, %s11638_s10 }
 0x5a6   : > { %v7702_v32 = vpop.permute.xlu0 %7701  ;;  %v7692_v60 = vpop.permute.xlu1 %7691 }
 0x5a7   : > { %v7704_v4 = vunpack.i.h.bf16 %v7702_v32  ;;  %v7703_v52 = vunpack.i.l.bf16 %v7702_v32  ;;  %v7694_v63 = vunpack.i.h.bf16 %v7692_v60  ;;  %v7693_v10 = vunpack.i.l.bf16 %v7692_v60 }
 0x5a9   : > { %v4794_v50 = vsel %vm11938_vm7, %v7703_v52, %v7704_v4  ;;  %v4778_v44 = vsel %vm11939_vm6, %v7693_v10, %v7694_v63  ;;  %vm11942_vm7 = vmmov %vm11939_vm6 }
 0x5aa   : > { %v7712_v53 = vpop.permute.xlu0 %7711  ;;  %v7697_v30 = vpop.permute.xlu1 %7696  ;;  %v6982_v31 = vpack.c.bf16 %v4794_v50, %v4778_v44 }
 0x5ab   : > { %v7714_v57 = vunpack.i.h.bf16 %v7712_v53  ;;  %v7713_v15 = vunpack.i.l.bf16 %v7712_v53  ;;  %v7699_v49 = vunpack.i.h.bf16 %v7697_v30  ;;  %v7698_v12 = vunpack.i.l.bf16 %v7697_v30 }
 0x5ad   : > { %v4734_v23 = vsel %vm11940_vm3, %v7713_v15, %v7714_v57  ;;  %v4776_v27 = vsel %vm11941_vm9, %v7698_v12, %v7699_v49  ;;  %v4777_v38 = vsel %vm11942_vm7, %v7694_v63, %v7698_v12  ;;  %v4779_v21 = vsel %vm11939_vm6, %v7699_v49, %v7693_v10  ;;  %vm11951_vm9 = vmmov %vm11940_vm3 }
 0x5ae   : > { %v7722_v42 = vpop.permute.xlu0 %7721  ;;  %v7707_v33 = vpop.permute.xlu1 %7706  ;;  %v6985_v49 = vpack.c.bf16 %v10519_v54, %v4734_v23 }
 0x5af   : > { %v7709_v13 = vunpack.i.h.bf16 %v7707_v33  ;;  %v7708_v35 = vunpack.i.l.bf16 %v7707_v33  ;;  %v7724_v8 = vunpack.i.h.bf16 %v7722_v42  ;;  %v7723_v32 = vunpack.i.l.bf16 %v7722_v42 }
 0x5b1   : > { %v4795_v46 = vsel %vm11943_vm1, %v7709_v13, %v7703_v52  ;;  %v4792_v0 = vsel %vm11944_vm13, %v7708_v35, %v7709_v13  ;;  %v4793_v16 = vsel %vm11945_vm0, %v7704_v4, %v7708_v35  ;;  %v11947_v52 = vld [vmem:[#allocation8_spill] sm:$0xff]  ;;  %vm11949_vm0 = vcmp.lt.s32.totalorder %v8087_v19, 7  ;;  %vm11950_vm13 = vmmov %vm11940_vm3 }
 0x5b2   : > { %v6979_v60 = vpack.c.bf16 %v4793_v16, %v4777_v38  ;;  %v7057_v53 = vpack.c.bf16 %v4795_v46, %v4779_v21  ;;  %v7060_v30 = vpack.c.bf16 %v4792_v0, %v4776_v27  ;;  %v7732_v50 = vpop.permute.xlu0 %7731  ;;  %v7717_v44 = vpop.permute.xlu1 %7716  ;;  %vm11948_vm1 = vnez %v11947_v52  ;;  %v11952_v27 = vld [vmem:[#allocation9_spill] sm:$0xff]  ;;  %v11955_v21 = vld [vmem:[#allocation10_spill] sm:$0xff]  ;;  %v11957_v16 = vld [vmem:[#allocation11_spill] sm:$0xff] }
 0x5b3   : > { %v7734_v63 = vunpack.i.h.bf16 %v7732_v50  ;;  %v7733_v12 = vunpack.i.l.bf16 %v7732_v50  ;;  %v7719_v33 = vunpack.i.h.bf16 %v7717_v44  ;;  %v7718_v10 = vunpack.i.l.bf16 %v7717_v44  ;;  %v11959_v50 = vld [vmem:[#allocation12_spill] sm:$0xff]  ;;  %v11965_v44 = vld [vmem:[#allocation15_spill] sm:$0xff] }
 0x5b4   : > { %6980 = vmatprep.subr.msk.bf16.mxu0 %vm11651_vm8, %v6979_v60  ;;  %7058 = vmatprep.subr.msk.bf16.mxu1 %vm11948_vm1, %v7057_v53  ;;  %vm11953_vm7 = vnez %v11952_v27  ;;  %vm11954_vm8 = vcmp.lt.s32.totalorder %v8087_v19, 8  ;;  %vm11956_vm6 = vnez %v11955_v21  ;;  %vm11958_vm1 = vnez %v11957_v16 }
 0x5b5   : > { %v4690_v4 = vsel %vm11949_vm0, %v7733_v12, %v7734_v63  ;;  %v4735_v42 = vsel %vm11950_vm13, %v7719_v33, %v7713_v15  ;;  %v4732_v13 = vsel %vm11940_vm3, %v7718_v10, %v7719_v33  ;;  %v4733_v35 = vsel %vm11951_vm9, %v7714_v57, %v7718_v10  ;;  %6983 = vmatpush1.bf16.msk.msra.mxu0 %vm11953_vm7, %v6982_v31 }
 0x5b6   : > { %v4674_v47 = vsel %vm11954_vm8, %v7723_v32, %v7724_v8  ;;  %v6988_v54 = vpack.c.bf16 %v10517_v7, %v4735_v42  ;;  %v7063_v23 = vpack.c.bf16 %v10523_v56, %v4732_v13  ;;  %v7066_v38 = vpack.c.bf16 %v10527_v20, %v4733_v35  ;;  %7061 = vmatpush1.bf16.msk.msra.mxu1 %vm11956_vm6, %v7060_v30  ;;  %v7742_v15 = vpop.permute.xlu0 %7741  ;;  %v7727_v46 = vpop.permute.xlu1 %7726  ;;  %v11961_v7 = vld [vmem:[#allocation13_spill] sm:$0xff]  ;;  %v11963_v56 = vld [vmem:[#allocation14_spill] sm:$0xff]  ;;  %vm11968_vm6 = vmmov %vm11954_vm8 }
 0x5b7   : > { %v6991_v0 = vpack.c.bf16 %v4690_v4, %v4674_v47  ;;  %6986 = vmatprep.subr.msk.bf16.mxu0 %vm11958_vm1, %v6985_v49  ;;  %v7744_v57 = vunpack.i.h.bf16 %v7742_v15  ;;  %v7743_v31 = vunpack.i.l.bf16 %v7742_v15  ;;  %v7729_v60 = vunpack.i.h.bf16 %v7727_v46  ;;  %vm11969_vm1 = vmmov %vm11968_vm6 }
 0x5b8   : > { %v7728_v53 = vunpack.i.l.bf16 %v7727_v46  ;;  %vm11960_vm0 = vnez %v11959_v50  ;;  %vm11962_vm13 = vnez %v11961_v7  ;;  %vm11964_vm3 = vnez %v11963_v56  ;;  %v11974_v50 = vld [vmem:[#allocation17_spill] sm:$0xff]  ;;  %v11978_v7 = vld [vmem:[#allocation19_spill] sm:$0xff] }
 0x5b9   : > { %7064 = vmatprep.subr.msk.bf16.mxu1 %vm11960_vm0, %v7063_v23  ;;  %6989 = vmatpush1.bf16.msk.msra.mxu0 %vm11962_vm13, %v6988_v54  ;;  %vm11966_vm9 = vnez %v11965_v44  ;;  %vm11967_vm7 = vcmp.lt.s32.totalorder %v8087_v19, 55  ;;  %v4675_v42 = vsel %vm11954_vm8, %v7729_v60, %v7723_v32  ;;  %vm11970_vm0 = vcmp.lt.s32.totalorder %v8087_v19, 9 }
 0x5ba   : > { %7067 = vmatpush1.bf16.msk.msra.mxu1 %vm11964_vm3, %v7066_v38  ;;  %v7752_v20 = vpop.permute.xlu0 %7751  ;;  %v7737_v30 = vpop.permute.xlu1 %7736  ;;  %6992 = vmatprep.subr.msk.bf16.mxu0 %vm11966_vm9, %v6991_v0  ;;  %v10625_v4 = vsel %vm11967_vm7, %v7743_v31, %v7744_v57  ;;  %v4672_v13 = vsel %vm11968_vm6, %v7728_v53, %v7729_v60  ;;  %v4673_v35 = vsel %vm11969_vm1, %v7724_v8, %v7728_v53  ;;  %vm11971_vm13 = vcmp.lt.s32.totalorder %v8087_v19, 7 }
 0x5bb   : > { %v7754_v33 = vunpack.i.h.bf16 %v7752_v20  ;;  %v7753_v10 = vunpack.i.l.bf16 %v7752_v20  ;;  %v7739_v49 = vunpack.i.h.bf16 %v7737_v30  ;;  %v7738_v52 = vunpack.i.l.bf16 %v7737_v30  ;;  %vm11972_vm3 = vmmov %vm11971_vm13 }
 0x5bc   : > { %vm11973_vm9 = vmmov %vm11972_vm3  ;;  %vm11975_vm7 = vnez %v11974_v50  ;;  %vm11979_vm6 = vnez %v11978_v7  ;;  %v11990_v50 = vld [vmem:[#allocation21_spill] sm:$0xff]  ;;  %v11996_v7 = vld [vmem:[#allocation22_spill] sm:$0xff] }
 0x5bd   : > { %v4630_v27 = vsel %vm11970_vm0, %v7753_v10, %v7754_v33  ;;  %v4691_v47 = vsel %vm11971_vm13, %v7739_v49, %v7733_v12  ;;  %v4688_v54 = vsel %vm11972_vm3, %v7738_v52, %v7739_v49  ;;  %v4689_v23 = vsel %vm11973_vm9, %v7734_v63, %v7738_v52  ;;  %v11976_v12 = vld [vmem:[#allocation16_spill] sm:$0xff]  ;;  %v11980_v63 = vld [vmem:[#allocation18_spill] sm:$0xff] }
 0x5be   : > { %v6997_v32 = vpack.c.bf16 %v4630_v27, %v10625_v4  ;;  %v6994_v38 = vpack.c.bf16 %v4691_v47, %v4675_v42  ;;  %v7069_v21 = vpack.c.bf16 %v4688_v54, %v4672_v13  ;;  %v7072_v15 = vpack.c.bf16 %v4689_v23, %v4673_v35  ;;  %v7762_v46 = vpop.permute.xlu0 %7761  ;;  %v7747_v0 = vpop.permute.xlu1 %7746 }
 0x5bf   : > { %v7764_v8 = vunpack.i.h.bf16 %v7762_v46  ;;  %v7763_v16 = vunpack.i.l.bf16 %v7762_v46  ;;  %v7749_v60 = vunpack.i.h.bf16 %v7747_v0  ;;  %v7748_v53 = vunpack.i.l.bf16 %v7747_v0 }
 0x5c0   : > { %6995 = vmatpush1.bf16.msk.msra.mxu0 %vm11975_vm7, %v6994_v38  ;;  %vm11977_vm8 = vnez %v11976_v12  ;;  %vm11981_vm1 = vnez %v11980_v63  ;;  %vm11982_vm0 = vcmp.lt.s32.totalorder %v8087_v19, 57  ;;  %vm11983_vm13 = vcmp.lt.s32.totalorder %v8087_v19, 55  ;;  %v11992_v12 = vld [vmem:[#allocation20_spill] sm:$0xff] }
 0x5c1   : > { %7070 = vmatprep.subr.msk.bf16.mxu1 %vm11977_vm8, %v7069_v21  ;;  %6998 = vmatprep.subr.msk.bf16.mxu0 %vm11979_vm6, %v6997_v32  ;;  %v4554_v42 = vsel %vm11982_vm0, %v7763_v16, %v7764_v8  ;;  %v10654_v13 = vsel %vm11983_vm13, %v7749_v60, %v7743_v31  ;;  %vm11984_vm3 = vmmov %vm11983_vm13  ;;  %vm11986_vm7 = vcmp.lt.s32.totalorder %v8087_v19, 56  ;;  %vm11987_vm8 = vcmp.lt.s32.totalorder %v8087_v19, 9 }
 0x5c2   : > { %7073 = vmatpush1.bf16.msk.msra.mxu1 %vm11981_vm1, %v7072_v15  ;;  %v7772_v56 = vpop.permute.xlu0 %7771  ;;  %v7757_v20 = vpop.permute.xlu1 %7756  ;;  %v10658_v35 = vsel %vm11984_vm3, %v7748_v53, %v7749_v60  ;;  %vm11985_vm9 = vmmov %vm11984_vm3  ;;  %vm11991_vm0 = vnez %v11990_v50  ;;  %vm11993_vm13 = vnez %v11992_v12 }
 0x5c3   : > { %v7774_v30 = vunpack.i.h.bf16 %v7772_v56  ;;  %v7773_v44 = vunpack.i.l.bf16 %v7772_v56  ;;  %v7759_v49 = vunpack.i.h.bf16 %v7757_v20  ;;  %v7758_v52 = vunpack.i.l.bf16 %v7757_v20  ;;  %vm11988_vm6 = vmmov %vm11987_vm8 }
 0x5c4   : > { %v10662_v27 = vsel %vm11985_vm9, %v7744_v57, %v7748_v53  ;;  %vm11989_vm1 = vmmov %vm11988_vm6  ;;  %vm11997_vm9 = vnez %v11996_v7 }
 0x5c5   : > { %v4570_v47 = vsel %vm11986_vm7, %v7773_v44, %v7774_v30  ;;  %v4631_v54 = vsel %vm11987_vm8, %v7759_v49, %v7753_v10  ;;  %v4628_v23 = vsel %vm11988_vm6, %v7758_v52, %v7759_v49  ;;  %v4629_v31 = vsel %vm11989_vm1, %v7754_v33, %v7758_v52  ;;  %v11994_v33 = vld [vmem:[#allocation23_spill] sm:$0xff] }
 0x5c6   : > { %v10672_v32 = vpack.c.bf16 %v4570_v47, %v4554_v42  ;;  %v7000_v38 = vpack.c.bf16 %v4631_v54, %v10654_v13  ;;  %v7075_v21 = vpack.c.bf16 %v4628_v23, %v10658_v35  ;;  %v7078_v57 = vpack.c.bf16 %v4629_v31, %v10662_v27  ;;  %v7782_v15 = vpop.permute.xlu0 %7781  ;;  %v7767_v46 = vpop.permute.xlu1 %7766 }
 0x5c7   : > { %v7784_v0 = vunpack.i.h.bf16 %v7782_v15  ;;  %v7783_v60 = vunpack.i.l.bf16 %v7782_v15  ;;  %v7769_v53 = vunpack.i.h.bf16 %v7767_v46  ;;  %v7768_v10 = vunpack.i.l.bf16 %v7767_v46 }
 0x5c8   : > { %7001 = vmatpush1.bf16.msk.msra.mxu0 %vm11991_vm0, %v7000_v38  ;;  %7076 = vmatprep.subr.msk.bf16.mxu1 %vm11993_vm13, %v7075_v21  ;;  %vm11995_vm3 = vnez %v11994_v33  ;;  %vm11998_vm7 = vcmp.lt.s32.totalorder %v8087_v19, 64  ;;  %vm11999_vm8 = vcmp.lt.s32.totalorder %v8087_v19, 57  ;;  %vm12002_vm0 = vcmp.lt.s32.totalorder %v8087_v19, 63 }
 0x5c9   : > { %7004 = vmatprep.subr.msk.bf16.mxu0 %vm11995_vm3, %v10672_v32  ;;  %7079 = vmatpush1.bf16.msk.msra.mxu1 %vm11997_vm9, %v7078_v57  ;;  %v4494_v47 = vsel %vm11998_vm7, %v7783_v60, %v7784_v0  ;;  %v4555_v54 = vsel %vm11999_vm8, %v7769_v53, %v7763_v16  ;;  %vm12000_vm6 = vmmov %vm11999_vm8  ;;  %vm12003_vm13 = vcmp.lt.s32.totalorder %v8087_v19, 56 }
 0x5ca   : > { %v7792_v63 = vpop.permute.xlu0 %7791  ;;  %v7777_v56 = vpop.permute.xlu1 %7776  ;;  %v4552_v23 = vsel %vm12000_vm6, %v7768_v10, %v7769_v53  ;;  %vm12001_vm1 = vmmov %vm12000_vm6 }
 0x5cb   : > { %v7794_v20 = vunpack.i.h.bf16 %v7792_v63  ;;  %v7793_v49 = vunpack.i.l.bf16 %v7792_v63  ;;  %v7779_v52 = vunpack.i.h.bf16 %v7777_v56  ;;  %v7778_v42 = vunpack.i.l.bf16 %v7777_v56  ;;  %vm12004_vm3 = vmmov %vm12003_vm13  ;;  %v12006_v63 = vld [vmem:[#allocation25_spill] sm:$0xff]  ;;  %v12010_v56 = vld [vmem:[#allocation27_spill] sm:$0xff] }
 0x5cc   : > { %v4553_v31 = vsel %vm12001_vm1, %v7764_v8, %v7768_v10  ;;  %vm12005_vm9 = vmmov %vm12004_vm3  ;;  %vm12007_vm7 = vnez %v12006_v63  ;;  %vm12011_vm6 = vnez %v12010_v56 }
 0x5cd   : > { %v4510_v38 = vsel %vm12002_vm0, %v7793_v49, %v7794_v20  ;;  %v4571_v21 = vsel %vm12003_vm13, %v7779_v52, %v7773_v44  ;;  %v4568_v57 = vsel %vm12004_vm3, %v7778_v42, %v7779_v52  ;;  %v4569_v15 = vsel %vm12005_vm9, %v7774_v30, %v7778_v42  ;;  %v12008_v30 = vld [vmem:[#allocation24_spill] sm:$0xff]  ;;  %v12012_v52 = vld [vmem:[#allocation26_spill] sm:$0xff] }
 0x5ce   : > { %v10702_v46 = vpack.c.bf16 %v4510_v38, %v4494_v47  ;;  %v10704_v16 = vpack.c.bf16 %v4571_v21, %v4555_v54  ;;  %v10706_v53 = vpack.c.bf16 %v4569_v15, %v4553_v31  ;;  %v10708_v50 = vpack.c.bf16 %v4568_v57, %v4552_v23  ;;  %v7802_v8 = vpop.permute.xlu0 %7801  ;;  %v7787_v10 = vpop.permute.xlu1 %7786 }
 0x5cf   : > { %v7804_v12 = vunpack.i.h.bf16 %v7802_v8  ;;  %v7803_v33 = vunpack.i.l.bf16 %v7802_v8  ;;  %v7789_v7 = vunpack.i.h.bf16 %v7787_v10  ;;  %v7788_v44 = vunpack.i.l.bf16 %v7787_v10 }
 0x5d0   : > { %7007 = vmatpush1.bf16.msk.msra.mxu0 %vm12007_vm7, %v10704_v16  ;;  %vm12009_vm8 = vnez %v12008_v30  ;;  %vm12013_vm1 = vnez %v12012_v52  ;;  %vm12014_vm0 = vcmp.lt.s32.totalorder %v8087_v19, 71  ;;  %vm12015_vm13 = vcmp.lt.s32.totalorder %v8087_v19, 64 }
 0x5d1   : > { %7082 = vmatprep.subr.msk.bf16.mxu1 %vm12009_vm8, %v10708_v50  ;;  %7010 = vmatprep.subr.msk.bf16.mxu0 %vm12011_vm6, %v10702_v46  ;;  %v4434_v21 = vsel %vm12014_vm0, %v7803_v33, %v7804_v12  ;;  %v4495_v57 = vsel %vm12015_vm13, %v7789_v7, %v7783_v60  ;;  %vm12016_vm3 = vmmov %vm12015_vm13  ;;  %vm12018_vm7 = vcmp.lt.s32.totalorder %v8087_v19, 65  ;;  %vm12019_vm8 = vcmp.lt.s32.totalorder %v8087_v19, 63 }
 0x5d2   : > { %7085 = vmatpush1.bf16.msk.msra.mxu1 %vm12013_vm1, %v10706_v53  ;;  %v7812_v42 = vpop.permute.xlu0 %7811  ;;  %v7797_v47 = vpop.permute.xlu1 %7796  ;;  %v4492_v15 = vsel %vm12016_vm3, %v7788_v44, %v7789_v7  ;;  %vm12017_vm9 = vmmov %vm12016_vm3  ;;  %vm12023_vm0 = vnez %v12022_v34 }
 0x5d3   : > { %v7814_v54 = vunpack.i.h.bf16 %v7812_v42  ;;  %v7813_v23 = vunpack.i.l.bf16 %v7812_v42  ;;  %v7799_v31 = vunpack.i.h.bf16 %v7797_v47  ;;  %v7798_v38 = vunpack.i.l.bf16 %v7797_v47  ;;  %vm12020_vm6 = vmmov %vm12019_vm8 }
 0x5d4   : > { %v4493_v8 = vsel %vm12017_vm9, %v7784_v0, %v7788_v44  ;;  %vm12021_vm1 = vmmov %vm12020_vm6 }
 0x5d5   : > { %v4450_v10 = vsel %vm12018_vm7, %v7813_v23, %v7814_v54  ;;  %v4511_v63 = vsel %vm12019_vm8, %v7799_v31, %v7793_v49  ;;  %v4508_v30 = vsel %vm12020_vm6, %v7798_v38, %v7799_v31  ;;  %v4509_v56 = vsel %vm12021_vm1, %v7794_v20, %v7798_v38  ;;  %v12024_v20 = vld [vmem:[#allocation28_spill] sm:$0xff]  ;;  %v12026_v31 = vld [vmem:[#allocation37_spill] sm:$0xff] }
 0x5d6   : > { %v10738_v52 = vpack.c.bf16 %v4450_v10, %v4434_v21  ;;  %v10740_v60 = vpack.c.bf16 %v4511_v63, %v4495_v57  ;;  %v10742_v7 = vpack.c.bf16 %v4509_v56, %v4493_v8  ;;  %v10744_v42 = vpack.c.bf16 %v4508_v30, %v4492_v15  ;;  %v7822_v0 = vpop.permute.xlu0 %7821  ;;  %v7807_v44 = vpop.permute.xlu1 %7806  ;;  %v12028_v38 = vld [vmem:[#allocation36_spill] sm:$0xff] }
 0x5d7   : > { %v7824_v47 = vunpack.i.h.bf16 %v7822_v0  ;;  %v7823_v1 = vunpack.i.l.bf16 %v7822_v0  ;;  %v7809_v37 = vunpack.i.h.bf16 %v7807_v44  ;;  %v7808_v49 = vunpack.i.l.bf16 %v7807_v44 }
 0x5d8   : > { %7013 = vmatpush1.bf16.msk.msra.mxu0 %vm12023_vm0, %v10740_v60  ;;  %vm12025_vm13 = vnez %v12024_v20  ;;  %vm12027_vm3 = vnez %v12026_v31  ;;  %vm12029_vm9 = vnez %v12028_v38  ;;  %vm12030_vm7 = vcmp.lt.s32.totalorder %v8087_v19, 73 }
 0x5d9   : > { %7088 = vmatprep.subr.msk.bf16.mxu1 %vm12025_vm13, %v10744_v42  ;;  %7016 = vmatprep.subr.msk.bf16.mxu0 %vm12027_vm3, %v10738_v52  ;;  %v4374_v34 = vsel %vm12030_vm7, %v7823_v1, %v7824_v47  ;;  %vm12031_vm8 = vcmp.lt.s32.totalorder %v8087_v19, 71  ;;  %vm12034_vm0 = vcmp.lt.s32.totalorder %v8087_v19, 72  ;;  %vm12035_vm13 = vcmp.lt.s32.totalorder %v8087_v19, 65 }
 0x5da   : > { %7091 = vmatpush1.bf16.msk.msra.mxu1 %vm12029_vm9, %v10742_v7  ;;  %v7832_v21 = vpop.permute.xlu0 %7831  ;;  %v7817_v57 = vpop.permute.xlu1 %7816  ;;  %v4435_v30 = vsel %vm12031_vm8, %v7809_v37, %v7803_v33  ;;  %vm12032_vm6 = vmmov %vm12031_vm8  ;;  %vm12038_vm7 = vnez %v11388_v25  ;;  %vm12039_vm8 = vnez %v11486_v3 }
 0x5db   : > { %v7834_v15 = vunpack.i.h.bf16 %v7832_v21  ;;  %v7833_v8 = vunpack.i.l.bf16 %v7832_v21  ;;  %v7819_v10 = vunpack.i.h.bf16 %v7817_v57  ;;  %v7818_v63 = vunpack.i.l.bf16 %v7817_v57  ;;  %vm12033_vm1 = vmmov %vm12032_vm6 }
 0x5dc   : > { %v4432_v56 = vsel %vm12032_vm6, %v7808_v49, %v7809_v37  ;;  %v4433_v0 = vsel %vm12033_vm1, %v7804_v12, %v7808_v49  ;;  %vm12036_vm3 = vmmov %vm12035_vm13  ;;  %vm12040_vm6 = vnez %v11748_v36  ;;  %vm12041_vm1 = vnez %v11896_v48 }
 0x5dd   : > { %v4390_v44 = vsel %vm12034_vm0, %v7833_v8, %v7834_v15  ;;  %v4451_v20 = vsel %vm12035_vm13, %v7819_v10, %v7813_v23  ;;  %v4448_v31 = vsel %vm12036_vm3, %v7818_v63, %v7819_v10  ;;  %vm12037_vm9 = vmmov %vm12036_vm3  ;;  %v5034_v23 = vsel %vm12040_vm6, %v10658_v35, 0.0 }
 0x5de   : > { %v4449_v38 = vsel %vm12037_vm9, %v7814_v54, %v7818_v63  ;;  %v10774_v21 = vpack.c.bf16 %v4390_v44, %v4374_v34  ;;  %v7018_v33 = vpack.c.bf16 %v4451_v20, %v4435_v30  ;;  %v10776_v37 = vpack.c.bf16 %v4448_v31, %v4432_v56  ;;  %v7827_v59 = vpop.permute.xlu1 %7826  ;;  %v7842_v44 = vpop.permute.xlu0 %7841 }
 0x5df   : > { %v7039_v57 = vpack.c.bf16 %v4449_v38, %v4433_v0  ;;  %v7829_v12 = vunpack.i.h.bf16 %v7827_v59  ;;  %v7828_v49 = vunpack.i.l.bf16 %v7827_v59  ;;  %v5033_v54 = vsel %vm12038_vm7, %v10662_v27, 0.0  ;;  %v12043_v59 = vld [vmem:[#allocation29_spill] sm:$0xff] }
 0x5e0   : > { %7019 = vmatpush1.bf16.msk.msra.mxu0 %vm11744_vm12, %v7018_v33  ;;  %7094 = vmatprep.subr.msk.bf16.mxu1 %vm11892_vm4, %v10776_v37  ;;  %v5035_v62 = vsel %vm12041_vm1, %v10654_v13, 0.0  ;;  %vm12042_vm12 = vnez %v11898_v61  ;;  %vm12044_vm4 = vnez %v12043_v59  ;;  %vm12045_vm0 = vcmp.lt.s32.totalorder %v8087_v19, 73 }
 0x5e1   : > { %7022 = vmatprep.subr.msk.bf16.mxu0 %vm12039_vm8, %v10774_v21  ;;  %7097 = vmatpush1.bf16.msk.msra.mxu1 %vm12042_vm12, %v7039_v57  ;;  %v5032_v25 = vsel %vm12044_vm4, %v10625_v4, 0.0  ;;  %v4375_v63 = vsel %vm12045_vm0, %v7829_v12, %v7823_v1  ;;  %vm12046_vm13 = vmmov %vm12045_vm0  ;;  %v6299_v35 = vpack.c.bf16 %v5035_v62, %v5034_v23  ;;  %vm12048_vm9 = vcmp.lt.s32.totalorder %v8087_v19, 72 }
 0x5e2   : > { %v7837_v22 = vpop.permute.xlu1 %7836  ;;  %v6298_v3 = vpack.c.bf16 %v5033_v54, %v5032_v25  ;;  %v4372_v36 = vsel %vm12046_vm13, %v7828_v49, %v7829_v12  ;;  %vm12047_vm3 = vmmov %vm12045_vm0  ;;  %vm12051_vm6 = vnez %v11506_v24  ;;  %vm12054_vm1 = vnez %v11534_v17  ;;  %v7852_v26 = vpop.permute.xlu0 %7851  ;;  %v12081_v12 = vld [vmem:[#allocation6_spill] sm:$0xff] }
 0x5e3   : > { %v7839_v27 = vunpack.i.h.bf16 %v7837_v22  ;;  %v7838_v10 = vunpack.i.l.bf16 %v7837_v22  ;;  %v4373_v48 = vsel %vm12047_vm3, %v7824_v47, %v7828_v49  ;;  %vm12049_vm7 = vmmov %vm12048_vm9  ;;  %v6072_v47 = vcombine.high %v6299_v35, %v11762_v18 }
 0x5e4   : > { %vm12050_vm8 = vmmov %vm12049_vm7  ;;  %v6070_v1 = vcombine.high %v6298_v3, %v11762_v18  ;;  %v6071_v0 = vcombine.low %v6299_v35, %v11762_v18  ;;  %vm12055_vm12 = vnez %v11547_v11  ;;  %vm12056_vm4 = vnez %v11538_v41 }
 0x5e5   : > { %v4391_v61 = vsel %vm12048_vm9, %v7839_v27, %v7833_v8  ;;  %v4388_v13 = vsel %vm12049_vm7, %v7838_v10, %v7839_v27  ;;  %v4389_v4 = vsel %vm12050_vm8, %v7834_v15, %v7838_v10  ;;  %v6069_v15 = vcombine.low %v6298_v3, %v11762_v18 }
 0x5e6   : > { %v7024_v34 = vpack.c.bf16 %v4391_v61, %v4375_v63  ;;  %v7045_v30 = vpack.c.bf16 %v4389_v4, %v4373_v48  ;;  %v7099_v56 = vpack.c.bf16 %v4388_v13, %v4372_v36  ;;  %v7847_v8 = vpop.permute.xlu1 %7846  ;;  %vm12057_vm0 = vnez %v11553_v40 }
 0x5e7   : > { %vm12058_vm13 = vnez %v11561_v2  ;;  %vm12059_vm3 = vnez %v11579_v39  ;;  %v7848_v17 = vunpack.i.l.bf16 %v7847_v8  ;;  %vm12060_vm9 = vnez %v11585_v51 }
 0x5e8   : > { %7025 = vmatpush1.bf16.msk.msra.mxu0 %vm11763_vm10, %v7024_v34  ;;  %7100 = vmatprep.subr.msk.bf16.mxu1 %vm11908_vm15, %v7099_v56  ;;  %vm12052_vm10 = vnez %v11521_v29  ;;  %vm12053_vm15 = vnez %v11530_v9  ;;  %v7854_v9 = vunpack.i.h.bf16 %v7852_v26  ;;  %v7853_v41 = vunpack.i.l.bf16 %v7852_v26 }
 0x5e9   : > { %5436 = vmatprep.subr.bf16.mxu0 %v6070_v1  ;;  %7103 = vmatpush1.bf16.msk.msra.mxu1 %vm12051_vm6, %v7045_v30  ;;  %v7849_v11 = vunpack.i.h.bf16 %v7847_v8  ;;  %v7844_v40 = vunpack.i.h.bf16 %v7842_v44  ;;  %vm12061_vm7 = vcmp.lt.s32.totalorder %v8087_v19, 119  ;;  %vm12062_vm8 = vnez %v11590_v14 }
 0x5ea   : > { %5477 = vmatprep.subr.bf16.mxu1 %v6072_v47  ;;  %v7857_v5 = vpop.permute.xlu1 %7856  ;;  %v7843_v39 = vunpack.i.l.bf16 %v7842_v44  ;;  %vm12063_vm6 = vmmov %vm12061_vm7  ;;  %v12082_v48 = vlaneseq }
 0x5eb   : > { %v7858_v24 = vunpack.i.l.bf16 %v7857_v5  ;;  %v7859_v29 = vunpack.i.h.bf16 %v7857_v5 }
 0x5ec   : > { %5437 = vmatpush2.bf16.msra.mxu0 %v6069_v15 }
 0x5ed   : > { %7028 = vmatprep.subr.msk.bf16.mxu0 %vm12052_vm10, %v10706_v53  ;;  %5478 = vmatpush2.bf16.msra.mxu1 %v6071_v0  ;;  %v4853_v2 = vsel %vm12061_vm7, %v7854_v9, %v7858_v24  ;;  %v4855_v55 = vsel %vm12063_vm6, %v7859_v29, %v7853_v41  ;;  %vm12065_vm10 = vmmov %vm12063_vm6 }
 0x5ee   : > { %7106 = vmatprep.subr.msk.bf16.mxu1 %vm12053_vm15, %v10704_v16  ;;  %v4854_v14 = vsel %vm12065_vm10, %v7853_v41, %v7854_v9 }
 0x5ef   : > { %v5125_v31 = vpop.permute.xlu0 %5124 }
 0x5f0   : > { %7031 = vmatpush2.bf16.msk.msra.mxu0 %vm12054_vm1, %v10672_v32  ;;  %vm12067_vm1 = vmmov %vm12063_vm6 }
 0x5f1   : > { %7034 = vmatprep.subr.msk.bf16.mxu0 %vm12055_vm12, %v10742_v7  ;;  %7109 = vmatpush2.bf16.msk.msra.mxu1 %vm12056_vm4, %v10708_v50  ;;  %v4852_v28 = vsel %vm12067_vm1, %v7858_v24, %v7859_v29  ;;  %vm12072_vm12 = vnez %v12071_v58  ;;  %v12074_v50 = vld [vmem:[#allocation33_spill] sm:$0xff]  ;;  %v12077_v7 = vld [vmem:[#allocation34_spill] sm:$0xff] }
 0x5f2   : > { %7112 = vmatprep.subr.msk.bf16.mxu1 %vm12057_vm0, %v10740_v60  ;;  %vm12075_vm0 = vnez %v12074_v50  ;;  %v12076_v60 = vld [vmem:[#allocation31_spill] sm:$0xff] }
 0x5f4   : > { %7037 = vmatpush2.bf16.msk.msra.mxu0 %vm12058_vm13, %v10702_v46  ;;  %vm12078_vm13 = vnez %v12077_v7 }
 0x5f5   : > { %7040 = vmatprep.subr.msk.bf16.mxu0 %vm12059_vm3, %v7039_v57  ;;  %7115 = vmatpush2.bf16.msk.msra.mxu1 %vm11918_vm11, %v10744_v42  ;;  %vm12064_vm11 = vcmp.lt.s32.totalorder %v8087_v19, 120  ;;  %v12079_v42 = vld [vmem:[#allocation39_spill] sm:$0xff] }
 0x5f6   : > { %7118 = vmatprep.subr.msk.bf16.mxu1 %vm12060_vm9, %v7018_v33  ;;  %v4837_v51 = vsel %vm12064_vm11, %v7844_v40, %v7848_v17  ;;  %vm12066_vm15 = vmmov %vm12064_vm11  ;;  %vm12080_vm3 = vnez %v12079_v42  ;;  %vm5529_vm9 = vcmp.lt.s32.totalorder %v12082_v48, 512 }
 0x5f7   : > { %v4839_v18 = vsel %vm12066_vm15, %v7849_v11, %v7843_v39  ;;  %v7051_v32 = vpack.c.bf16 %v4853_v2, %v4837_v51 }
 0x5f8   : > { %7043 = vmatpush2.bf16.msk.msra.mxu0 %vm12062_vm8, %v10738_v52  ;;  %v7129_v46 = vpack.c.bf16 %v4855_v55, %v4839_v18 }
 0x5f9   : > { %7046 = vmatprep.subr.msk.bf16.mxu0 %vm9639_vm14, %v7045_v30  ;;  %7121 = vmatpush2.bf16.msk.msra.mxu1 %vm11778_vm5, %v10776_v37  ;;  %vm12068_vm14 = vnez %v11610_v43  ;;  %vm12069_vm5 = vmmov %vm12064_vm11  ;;  %v6015_v43 = vcombine.low %v12076_v60, %v12076_v60 }
 0x5fa   : > { %7124 = vmatprep.subr.msk.bf16.mxu1 %vm11780_vm2, %v7024_v34  ;;  %v4838_v45 = vsel %vm12069_vm5, %v7843_v39, %v7844_v40  ;;  %vm12070_vm2 = vnez %v11620_v6  ;;  %vm12073_vm4 = vmmov %vm12069_vm5  ;;  %v7922_v6 = vmov 1966171168  }
 0x5fb   : > { %v7054_v16 = vpack.c.bf16 %v4854_v14, %v4838_v45  ;;  %v4836_v53 = vsel %vm12073_vm4, %v7848_v17, %v7849_v11  ;;  %v5505_v20 = vunpack.c.l.s4 %v7922_v6 }
 0x5fc   : > { %7049 = vmatpush2.bf16.msk.msra.mxu0 %vm12068_vm14, %v10774_v21  ;;  %v7132_v52 = vpack.c.bf16 %v4852_v28, %v4836_v53 }
 0x5fd   : > { %7052 = vmatprep.subr.msk.bf16.mxu0 %vm12070_vm2, %v7051_v32  ;;  %7127 = vmatpush2.bf16.msk.msra.mxu1 %vm12072_vm12, %v7099_v56  ;;  %v5506_v19 = vunpack.c.0.s8 %v5505_v20 }
 0x5fe   : > { %7130 = vmatprep.subr.msk.bf16.mxu1 %vm12075_vm0, %v7129_v46 }
 0x5ff   : > { %v5509_v49 = vsub.s32 %v5506_v19, %v12081_v12 }
 0x600   : > { %7055 = vmatpush2.bf16.msk.msra.mxu0 %vm12078_vm13, %v7054_v16 }
 0x601   : > { %7133 = vmatpush2.bf16.msk.msra.mxu1 %vm12080_vm3, %v7132_v52 }
 0x603   : > { %5449 = vmatmul.mubr.bf16.vlgmr.msra.gmra.mxu0 %v6015_v43 }
 0x604   : > { %5490 = vmatmul.mubr.bf16.vlgmr.msra.gmra.mxu1 %v6015_v43 }
 0x6c3   : > { %v5450_v38 = vpop.f32.mrf.mxu0 }
 0x6c4   : > { %v5451_v21 = vadd.f32 %v5450_v38, %v5125_v31  ;;  %v5491_v33 = vpop.f32.mrf.mxu1 }
 0x6c5   : > { %v5452_v57 = vpop.f32.mrf.mxu0  ;;  %v5492_v23 = vadd.f32 %v5491_v33, %v5125_v31 }
 0x6c6   : > { %v5453_v37 = vadd.f32 %v5452_v57, %v5125_v31  ;;  %v5493_v54 = vpop.f32.mrf.mxu1 }
 0x6c7   : > { %v5494_v62 = vadd.f32 %v5493_v54, %v5125_v31  ;;  %v5454_v22 = vpop.f32.mrf.mxu0 }
 0x6c8   : > { %v5502_v59 = vcombine.low %v5451_v21, %v5453_v37  ;;  %v5495_v25 = vpop.f32.mrf.mxu1 }
 0x6c9   : > { %v5503_v27 = vcombine.low %v5492_v23, %v5494_v62  ;;  %v5455_v10 = vpop.f32.mrf.mxu0 }
 0x6ca   : > { %v5510_v3 = vrot.slane %v5502_v59, %v5509_v49  ;;  %v5496_v63 = vpop.f32.mrf.mxu1 }
 0x6cb   : > { %v5517_v36 = vrot.slane %v5503_v27, %v5509_v49 }
 0x6cd   : > { %v5518_v35 = vcombine.low %v5510_v3, %v5517_v36 }
 0x6cf   : > { %v5525_v61 = vrot.slane %v5518_v35, %v5509_v49 }
 0x6d1   : > { %5531 = vst.msk [vmem:[%s317_s23] sm:$0xf] %vm5529_vm9, %v5525_v61 }
 0x6d2 PF: > { %s19_s27 = sadd.s32 1, %s7896_s27  }
 0x6d3   : > { %p16_p1 = scmp.ge.s32.totalorder %s19_s27, 4  }
 0x6d5   :  { %18 = sbr.rel (!%p16_p1) target bundleno = 1 (0x1), region = 89 }
 0x6da   :  { %5551 = vsyncpa [#allocation4], 1 }
 0x6db   :  { %5553 = vsyncpa [#allocation4 + $0x1], 1 }

</bundles_post_ra>
